<compile_context>
chip_gen: v6e
topology: v6e:2x2x1
jax: 0.10.0
libtpu: 0.0.40
codegen_flags: <defaults>
</compile_context>

<pallas_src>
import functools
import math

import numpy as np
import jax
import jax.numpy as jnp
from jax.experimental import pallas as pl
from jax.experimental.pallas import tpu as pltpu


# -----------------------------------------------------------------------------
# Parameter / table construction
# -----------------------------------------------------------------------------

def make_positional_embedding(width: int, max_seq_length: int) -> jnp.ndarray:
    """Vectorised sinusoidal table, identical to the PyTorch __init__ double loop."""
    pos = np.arange(max_seq_length, dtype=np.float64)[:, None]
    i = np.arange(width, dtype=np.float64)[None, :]
    exponent = (i - (i % 2)) / width              # i for even cols, i-1 for odd cols
    angle = pos / np.power(10000.0, exponent)
    pe = np.where((np.arange(width) % 2)[None, :] == 0, np.sin(angle), np.cos(angle))
    return jnp.asarray(pe, dtype=jnp.float32)     # (S, W)


def init_params(key, config):
    width = config["width"]
    C = config["n_channels"]
    ph, pw = config["patch_size"]
    H, Wimg = config["img_size"]
    n_layers = config["n_layers"]
    emb_dim = config["emb_dim"]
    n_patches = (H // ph) * (Wimg // pw)
    seq = n_patches + 1

    keys = iter(jax.random.split(key, 4 + 12 * n_layers))

    def nrm(shape, scale):
        return jax.random.normal(next(keys), shape, jnp.float32) * scale

    params = {
        "conv_w": nrm((width, C, ph, pw), 0.1),
        "conv_b": nrm((width,), 0.02),
        "cls_token": nrm((1, 1, width), 1.0),
        "projection": nrm((width, emb_dim), 0.1),
        "pe": make_positional_embedding(width, seq),
        "layers": [],
    }
    for _ in range(n_layers):
        params["layers"].append({
            "ln1_g": jnp.ones((width,), jnp.float32),
            "ln1_b": jnp.zeros((width,), jnp.float32),
            "wq": nrm((width, width), 0.1), "bq": nrm((width,), 0.02),
            "wk": nrm((width, width), 0.1), "bk": nrm((width,), 0.02),
            "wv": nrm((width, width), 0.1), "bv": nrm((width,), 0.02),
            "wo": nrm((width, width), 0.1), "bo": nrm((width,), 0.02),
            "ln2_g": jnp.ones((width,), jnp.float32),
            "ln2_b": jnp.zeros((width,), jnp.float32),
            "wm1": nrm((width, 4 * width), 0.1), "bm1": nrm((4 * width,), 0.02),
            "wm2": nrm((4 * width, width), 0.1), "bm2": nrm((width,), 0.02),
        })
    return params


# -----------------------------------------------------------------------------
# Common helpers
# -----------------------------------------------------------------------------

def _cparams():
    # 1-D grid over batch blocks -> "parallel"; raise scoped VMEM (v5e default is 16 MiB).
    return pltpu.CompilerParams(
        dimension_semantics=("parallel",),
        vmem_limit_bytes=32 * 1024 * 1024,
    )


def _pick_batch_tile(batch, per_batch_bytes, target_bytes=4 << 20, min_bytes=1 << 20):
    """Largest batch tile whose block is ~<= 4 MiB (amortise the ~0.35us/step overhead),
    but keep >=2 grid steps for v7x megacore when that doesn't drop blocks below ~1 MiB."""
    tb = max(1, min(batch, target_bytes // max(per_batch_bytes, 1)))
    if tb == batch and batch > 1 and (batch // 2) * per_batch_bytes >= min_bytes:
        tb = batch // 2
    while batch % tb:          # keep tiles exact (no padded partial blocks)
        tb -= 1
    return tb


def _b3(bias):
    return bias.reshape(1, 1, bias.shape[-1])


# -----------------------------------------------------------------------------
# Fused linear:  out = act( x @ w + add [+ residual] )
#   x: (B,S,K), w: (K,N), add: (1,1,N) bias or (1,S,N) per-position table
# -----------------------------------------------------------------------------

def _linear_kernel(x_ref, w_ref, add_ref, o_ref, *, activation):
    tb, s, k = x_ref.shape
    n = w_ref.shape[-1]
    x = x_ref[...].astype(jnp.float32).reshape(tb * s, k)
    w = w_ref[...].astype(jnp.float32)
    y = jnp.dot(x, w, preferred_element_type=jnp.float32).reshape(tb, s, n)
    y = y + add_ref[...].astype(jnp.float32)
    if activation == "gelu":
        # TODO(synk): PyTorch nn.GELU defaults to the exact erf form; using the tanh
        # approximation (|delta| ~1e-3) to stay on well-supported Mosaic elementwise lowering.
        y = jax.nn.gelu(y, approximate=True)
    o_ref[...] = y.astype(o_ref.dtype)


def _linear_residual_kernel(x_ref, w_ref, add_ref, r_ref, o_ref):
    tb, s, k = x_ref.shape
    n = w_ref.shape[-1]
    x = x_ref[...].astype(jnp.float32).reshape(tb * s, k)
    w = w_ref[...].astype(jnp.float32)
    y = jnp.dot(x, w, preferred_element_type=jnp.float32).reshape(tb, s, n)
    y = y + add_ref[...].astype(jnp.float32) + r_ref[...].astype(jnp.float32)
    o_ref[...] = y.astype(o_ref.dtype)


def fused_linear(x, w, add, *, residual=None, activation=None):
    B, S, K = x.shape
    N = w.shape[-1]
    itemsize = x.dtype.itemsize
    TB = _pick_batch_tile(B, S * max(K, N) * itemsize)
    grid = (B // TB,)

    x_spec = pl.BlockSpec((TB, S, K), lambda b: (b, 0, 0))
    w_spec = pl.BlockSpec((K, N), lambda b: (0, 0))            # resident (constant index)
    add_spec = pl.BlockSpec(add.shape, lambda b: (0, 0, 0))    # resident (constant index)
    out_spec = pl.BlockSpec((TB, S, N), lambda b: (b, 0, 0))
    out_shape = jax.ShapeDtypeStruct((B, S, N), x.dtype)

    if residual is None:
        return pl.pallas_call(
            functools.partial(_linear_kernel, activation=activation),
            out_shape=out_shape,
            grid=grid,
            in_specs=[x_spec, w_spec, add_spec],
            out_specs=out_spec,
            compiler_params=_cparams(),
        )(x, w, add)

    r_spec = pl.BlockSpec((TB, S, N), lambda b: (b, 0, 0))
    return pl.pallas_call(
        _linear_residual_kernel,
        out_shape=out_shape,
        grid=grid,
        in_specs=[x_spec, w_spec, add_spec, r_spec],
        out_specs=out_spec,
        # residual buffer is dead after this call -> alias it to the output (perf feedback)
        input_output_aliases={3: 0},
        compiler_params=_cparams(),
    )(x, w, add, residual)


# -----------------------------------------------------------------------------
# LayerNorm
# -----------------------------------------------------------------------------

def _ln_kernel(x_ref, g_ref, b_ref, o_ref):
    x = x_ref[...].astype(jnp.float32)
    mu = jnp.mean(x, axis=-1, keepdims=True)
    d = x - mu
    var = jnp.mean(d * d, axis=-1, keepdims=True)
    y = d * jax.lax.rsqrt(var + 1e-5)
    y = y * g_ref[...].astype(jnp.float32) + b_ref[...].astype(jnp.float32)
    o_ref[...] = y.astype(o_ref.dtype)


def layer_norm(x, gamma, beta):
    B, S, W = x.shape
    TB = _pick_batch_tile(B, S * W * x.dtype.itemsize)
    g = gamma.reshape(1, 1, W)
    b = beta.reshape(1, 1, W)
    return pl.pallas_call(
        _ln_kernel,
        out_shape=jax.ShapeDtypeStruct((B, S, W), x.dtype),
        grid=(B // TB,),
        in_specs=[pl.BlockSpec((TB, S, W), lambda i: (i, 0, 0)),
                  pl.BlockSpec((1, 1, W), lambda i: (0, 0, 0)),
                  pl.BlockSpec((1, 1, W), lambda i: (0, 0, 0))],
        out_specs=pl.BlockSpec((TB, S, W), lambda i: (i, 0, 0)),
        compiler_params=_cparams(),
    )(x, g, b)


# -----------------------------------------------------------------------------
# Multi-head attention core: softmax(Q_h K_h^T / sqrt(hs)) V_h, heads concatenated
# -----------------------------------------------------------------------------

def _mha_kernel(q_ref, k_ref, v_ref, o_ref, *, n_heads, head_size):
    q = q_ref[...].astype(jnp.float32)
    k = k_ref[...].astype(jnp.float32)
    v = v_ref[...].astype(jnp.float32)
    scale = 1.0 / math.sqrt(head_size)
    outs = []
    for h in range(n_heads):            # static Python loop, traced once
        lo = h * head_size
        qh = q[:, :, lo:lo + head_size]
        kh = k[:, :, lo:lo + head_size]
        vh = v[:, :, lo:lo + head_size]
        s = jnp.einsum("bqd,bkd->bqk", qh, kh, preferred_element_type=jnp.float32) * scale
        s = s - jnp.max(s, axis=-1, keepdims=True)
        p = jnp.exp(s)
        p = p / jnp.sum(p, axis=-1, keepdims=True)
        outs.append(jnp.einsum("bqk,bkd->bqd", p, vh, preferred_element_type=jnp.float32))
    o_ref[...] = jnp.concatenate(outs, axis=-1).astype(o_ref.dtype)


def multi_head_attention(q, k, v, n_heads):
    B, S, W = q.shape
    hs = W // n_heads
    TB = _pick_batch_tile(B, (4 * S * W + S * S) * 4)
    spec = lambda: pl.BlockSpec((TB, S, W), lambda i: (i, 0, 0))
    return pl.pallas_call(
        functools.partial(_mha_kernel, n_heads=n_heads, head_size=hs),
        out_shape=jax.ShapeDtypeStruct((B, S, W), q.dtype),
        grid=(B // TB,),
        in_specs=[spec(), spec(), spec()],
        out_specs=spec(),
        compiler_params=_cparams(),
    )(q, k, v)


# -----------------------------------------------------------------------------
# Final head: CLS projection with fused L2 normalisation
# -----------------------------------------------------------------------------

def _proj_norm_kernel(x_ref, p_ref, o_ref):
    x = x_ref[...].astype(jnp.float32)
    p = p_ref[...].astype(jnp.float32)
    y = jnp.dot(x, p, preferred_element_type=jnp.float32)
    nrm = jnp.sqrt(jnp.sum(y * y, axis=-1, keepdims=True))
    o_ref[...] = (y / nrm).astype(o_ref.dtype)


def project_and_normalize(x_cls, proj):
    B, W = x_cls.shape
    E = proj.shape[-1]
    return pl.pallas_call(
        _proj_norm_kernel,
        out_shape=jax.ShapeDtypeStruct((B, E), x_cls.dtype),
        grid=(1,),
        in_specs=[pl.BlockSpec((B, W), lambda i: (0, 0)),
                  pl.BlockSpec((W, E), lambda i: (0, 0))],
        out_specs=pl.BlockSpec((B, E), lambda i: (0, 0)),
        compiler_params=_cparams(),
    )(x_cls, proj)


# -----------------------------------------------------------------------------
# Wrapper-side layout plumbing + full forward
# -----------------------------------------------------------------------------

def extract_patches(x, patch_size):
    """(B,C,H,W) -> (B, n_patches, C*ph*pw); matches Conv2d(k=stride=patch)+flatten(2).T."""
    B, C, H, W = x.shape
    ph, pw = patch_size
    Hp, Wp = H // ph, W // pw
    x = x.reshape(B, C, Hp, ph, Wp, pw)
    x = x.transpose(0, 2, 4, 1, 3, 5)          # (B, Hp, Wp, C, ph, pw)
    return x.reshape(B, Hp * Wp, C * ph * pw)


def encoder_layer(x, lp, n_heads):
    h = layer_norm(x, lp["ln1_g"], lp["ln1_b"])
    q = fused_linear(h, lp["wq"], _b3(lp["bq"]))
    k = fused_linear(h, lp["wk"], _b3(lp["bk"]))
    v = fused_linear(h, lp["wv"], _b3(lp["bv"]))
    a = multi_head_attention(q, k, v, n_heads)
    x = fused_linear(a, lp["wo"], _b3(lp["bo"]), residual=x)          # x + W_o(attn)
    h2 = layer_norm(x, lp["ln2_g"], lp["ln2_b"])
    m = fused_linear(h2, lp["wm1"], _b3(lp["bm1"]), activation="gelu")
    x = fused_linear(m, lp["wm2"], _b3(lp["bm2"]), residual=x)        # x + MLP(ln2(x))
    return x


def image_encoder_forward(x_img, params, config, dtype=jnp.float32):
    width = config["width"]
    n_heads = config["n_heads"]
    patch_size = config["patch_size"]

    # Cast once (perf feedback: bf16 halves HBM bytes; kernels still accumulate in f32).
    p = jax.tree_util.tree_map(lambda t: t.astype(dtype), params)
    x_img = x_img.astype(dtype)

    patches = extract_patches(x_img, patch_size)            # (B, P, K)
    B, P, K = patches.shape
    S = P + 1

    # Fused additive table: row 0 = cls + pe[0]; rows 1.. = conv bias + pe[1..]
    pe = p["pe"]                                            # (S, W)
    add_tab = jnp.concatenate(
        [p["cls_token"].reshape(1, width) + pe[:1],
         p["conv_b"].reshape(1, width) + pe[1:]], axis=0).reshape(1, S, width)
    # Row 0 of the matmul input is zero so that 0 @ W + (cls + pe[0]) reproduces the CLS row.
    xin = jnp.concatenate([jnp.zeros((B, 1, K), dtype), patches], axis=1)   # (B, S, K)
    wmat = p["conv_w"].reshape(width, K).T                  # (K, W)

    # Kernel 1: patch-embed matmul with cls/bias/PE fused into the epilogue.
    x = fused_linear(xin, wmat, add_tab)

    for lp in p["layers"]:
        x = encoder_layer(x, lp, n_heads)

    x_cls = x[:, 0, :]                                      # CLS token
    return project_and_normalize(x_cls, p["projection"])


# -----------------------------------------------------------------------------
# Pure-JAX reference (mirrors the PyTorch module, f32)
# -----------------------------------------------------------------------------

def _ref_ln(x, g, b, eps=1e-5):
    mu = jnp.mean(x, axis=-1, keepdims=True)
    var = jnp.mean((x - mu) ** 2, axis=-1, keepdims=True)
    return (x - mu) / jnp.sqrt(var + eps) * g + b


def reference_forward(x_img, params, config):
    width = config["width"]
    n_heads = config["n_heads"]
    hs = width // n_heads
    patches = extract_patches(x_img.astype(jnp.float32), config["patch_size"])
    B = patches.shape[0]
    wmat = params["conv_w"].reshape(width, -1).T
    x = patches @ wmat + params["conv_b"]
    cls = jnp.broadcast_to(params["cls_token"], (B, 1, width))
    x = jnp.concatenate([cls, x], axis=1)
    x = x + params["pe"][None]
    for lp in params["layers"]:
        h = _ref_ln(x, lp["ln1_g"], lp["ln1_b"])
        q = h @ lp["wq"] + lp["bq"]
        k = h @ lp["wk"] + lp["bk"]
        v = h @ lp["wv"] + lp["bv"]
        outs = []
        for hd in range(n_heads):
            sl = slice(hd * hs, (hd + 1) * hs)
            s = jnp.einsum("bqd,bkd->bqk", q[..., sl], k[..., sl]) / math.sqrt(hs)
            outs.append(jnp.einsum("bqk,bkd->bqd", jax.nn.softmax(s, axis=-1), v[..., sl]))
        a = jnp.concatenate(outs, axis=-1)
        x = x + (a @ lp["wo"] + lp["bo"])
        h2 = _ref_ln(x, lp["ln2_g"], lp["ln2_b"])
        m = jax.nn.gelu(h2 @ lp["wm1"] + lp["bm1"], approximate=True)
        x = x + (m @ lp["wm2"] + lp["bm2"])
    xc = x[:, 0, :]
    y = xc @ params["projection"]
    return y / jnp.linalg.norm(y, axis=-1, keepdims=True)


# -----------------------------------------------------------------------------
# Demo / correctness check
# -----------------------------------------------------------------------------

if __name__ == "__main__":
    config = dict(width=32, img_size=(16, 16), patch_size=(4, 4), n_channels=4,
                  n_layers=2, n_heads=2, emb_dim=32)

    key = jax.random.PRNGKey(0)
    pkey, xkey = jax.random.split(key)
    params = init_params(pkey, config)

    batch = 2
    x_img = jax.random.normal(xkey, (batch, config["n_channels"], *config["img_size"]),
                              jnp.float32)

    fwd_f32 = jax.jit(lambda xi, p: image_encoder_forward(xi, p, config, jnp.float32))
    fwd_bf16 = jax.jit(lambda xi, p: image_encoder_forward(xi, p, config, jnp.bfloat16))

    out = jax.block_until_ready(fwd_f32(x_img, params))
    ref = jax.block_until_ready(reference_forward(x_img, params, config))
    np.testing.assert_allclose(np.asarray(out), np.asarray(ref), rtol=1e-4, atol=1e-4)

    # bf16 I/O path (perf feedback): same kernels, f32 compute, half the HBM bytes.
    out_bf16 = jax.block_until_ready(fwd_bf16(x_img, params))
    out_bf16_f32 = np.asarray(out_bf16).astype(np.float32)
    assert np.all(np.isfinite(out_bf16_f32)), "bf16 path produced non-finite values"
    np.testing.assert_allclose(out_bf16_f32, np.asarray(ref), rtol=0.1, atol=0.1)

    print("KERNEL_OK")
</pallas_src>

<mosaic_0001>
module attributes {stable_mosaic.version = 11 : i64} {
  func.func @_linear_kernel(%arg0: i32, %arg1: memref<2x17x64xf32, #tpu.memory_space<vmem>>, %arg2: memref<64x32xf32, #tpu.memory_space<vmem>>, %arg3: memref<1x17x32xf32, #tpu.memory_space<vmem>>, %arg4: memref<2x17x32xf32, #tpu.memory_space<vmem>>) attributes {dimension_semantics = [#tpu.dimension_semantics<parallel>], iteration_bounds = array<i64: 1>, scalar_prefetch = 0 : i64, scratch_operands = 0 : i64, tpu.core_type = #tpu.core_type<tc>, window_params = [{transform_indices = @transform_0, window_bounds = array<i64: 2, 17, 64>}, {pipeline_mode = #tpu.pipeline_mode<synchronous>, transform_indices = @transform_1, window_bounds = array<i64: 64, 32>}, {pipeline_mode = #tpu.pipeline_mode<synchronous>, transform_indices = @transform_2, window_bounds = array<i64: 1, 17, 32>}, {transform_indices = @transform_3, window_bounds = array<i64: 2, 17, 32>}]} {
    %c0 = arith.constant 0 : index
    %c0_0 = arith.constant 0 : index
    %c0_1 = arith.constant 0 : index
    %0 = vector.load %arg1[%c0, %c0_0, %c0_1] : memref<2x17x64xf32, #tpu.memory_space<vmem>>, vector<2x17x64xf32>
    %1 = vector.shape_cast %0 : vector<2x17x64xf32> to vector<34x64xf32>
    %c0_2 = arith.constant 0 : index
    %c0_3 = arith.constant 0 : index
    %2 = vector.load %arg2[%c0_2, %c0_3] : memref<64x32xf32, #tpu.memory_space<vmem>>, vector<64x32xf32>
    %cst = arith.constant dense<0.000000e+00> : vector<34x32xf32>
    %3 = tpu.matmul %1, %2, %cst {dimension_numbers = #tpu.dot_dimension_numbers<[1], [0], [0], [1], [0, 0, 1, 1], [], []>} : vector<34x64xf32>, vector<64x32xf32>, vector<34x32xf32> -> vector<34x32xf32>
    %4 = vector.shape_cast %3 : vector<34x32xf32> to vector<2x17x32xf32>
    %c0_4 = arith.constant 0 : index
    %c0_5 = arith.constant 0 : index
    %c0_6 = arith.constant 0 : index
    %5 = vector.load %arg3[%c0_4, %c0_5, %c0_6] : memref<1x17x32xf32, #tpu.memory_space<vmem>>, vector<1x17x32xf32>
    %6 = vector.broadcast %5 : vector<1x17x32xf32> to vector<2x17x32xf32>
    %7 = arith.addf %4, %6 : vector<2x17x32xf32>
    %c0_7 = arith.constant 0 : index
    %c0_8 = arith.constant 0 : index
    %c0_9 = arith.constant 0 : index
    %8 = vector.load %arg4[%c0_7, %c0_8, %c0_9] : memref<2x17x32xf32, #tpu.memory_space<vmem>>, vector<2x17x32xf32>
    tpu.vector_store %arg4[%c0_7, %c0_8, %c0_9], %7 {strides = array<i32>} : memref<2x17x32xf32, #tpu.memory_space<vmem>>, vector<2x17x32xf32>,
    return
  }
  func.func @transform_0(%arg0: i32) -> (i32, i32, i32) {
    %c0_i32 = arith.constant 0 : i32
    %c0_i32_0 = arith.constant 0 : i32
    %c0_i32_1 = arith.constant 0 : i32
    return %arg0, %c0_i32, %c0_i32_0 : i32, i32, i32
  }
  func.func @transform_1(%arg0: i32) -> (i32, i32) {
    %c0_i32 = arith.constant 0 : i32
    %c0_i32_0 = arith.constant 0 : i32
    %c0_i32_1 = arith.constant 0 : i32
    return %c0_i32, %c0_i32_0 : i32, i32
  }
  func.func @transform_2(%arg0: i32) -> (i32, i32, i32) {
    %c0_i32 = arith.constant 0 : i32
    %c0_i32_0 = arith.constant 0 : i32
    %c0_i32_1 = arith.constant 0 : i32
    %c0_i32_2 = arith.constant 0 : i32
    return %c0_i32, %c0_i32_0, %c0_i32_1 : i32, i32, i32
  }
  func.func @transform_3(%arg0: i32) -> (i32, i32, i32) {
    %c0_i32 = arith.constant 0 : i32
    %c0_i32_0 = arith.constant 0 : i32
    %c0_i32_1 = arith.constant 0 : i32
    return %arg0, %c0_i32, %c0_i32_0 : i32, i32, i32
  }
}

module attributes {stable_mosaic.version = 11 : i64} {
  func.func @_linear_kernel(%arg0: i32, %arg1: memref<2x17x32xf32, #tpu.memory_space<vmem>>, %arg2: memref<32x32xf32, #tpu.memory_space<vmem>>, %arg3: memref<1x1x32xf32, #tpu.memory_space<vmem>>, %arg4: memref<2x17x32xf32, #tpu.memory_space<vmem>>) attributes {dimension_semantics = [#tpu.dimension_semantics<parallel>], iteration_bounds = array<i64: 1>, scalar_prefetch = 0 : i64, scratch_operands = 0 : i64, tpu.core_type = #tpu.core_type<tc>, window_params = [{transform_indices = @transform_0, window_bounds = array<i64: 2, 17, 32>}, {pipeline_mode = #tpu.pipeline_mode<synchronous>, transform_indices = @transform_1, window_bounds = array<i64: 32, 32>}, {pipeline_mode = #tpu.pipeline_mode<synchronous>, transform_indices = @transform_2, window_bounds = array<i64: 1, 1, 32>}, {transform_indices = @transform_3, window_bounds = array<i64: 2, 17, 32>}]} {
    %c0 = arith.constant 0 : index
    %c0_0 = arith.constant 0 : index
    %c0_1 = arith.constant 0 : index
    %0 = vector.load %arg1[%c0, %c0_0, %c0_1] : memref<2x17x32xf32, #tpu.memory_space<vmem>>, vector<2x17x32xf32>
    %1 = vector.shape_cast %0 : vector<2x17x32xf32> to vector<34x32xf32>
    %c0_2 = arith.constant 0 : index
    %c0_3 = arith.constant 0 : index
    %2 = vector.load %arg2[%c0_2, %c0_3] : memref<32x32xf32, #tpu.memory_space<vmem>>, vector<32x32xf32>
    %cst = arith.constant dense<0.000000e+00> : vector<34x32xf32>
    %3 = tpu.matmul %1, %2, %cst {dimension_numbers = #tpu.dot_dimension_numbers<[1], [0], [0], [1], [0, 0, 1, 1], [], []>} : vector<34x32xf32>, vector<32x32xf32>, vector<34x32xf32> -> vector<34x32xf32>
    %4 = vector.shape_cast %3 : vector<34x32xf32> to vector<2x17x32xf32>
    %c0_4 = arith.constant 0 : index
    %c0_5 = arith.constant 0 : index
    %c0_6 = arith.constant 0 : index
    %5 = vector.load %arg3[%c0_4, %c0_5, %c0_6] : memref<1x1x32xf32, #tpu.memory_space<vmem>>, vector<1x1x32xf32>
    %6 = vector.broadcast %5 : vector<1x1x32xf32> to vector<2x17x32xf32>
    %7 = arith.addf %4, %6 : vector<2x17x32xf32>
    %c0_7 = arith.constant 0 : index
    %c0_8 = arith.constant 0 : index
    %c0_9 = arith.constant 0 : index
    %8 = vector.load %arg4[%c0_7, %c0_8, %c0_9] : memref<2x17x32xf32, #tpu.memory_space<vmem>>, vector<2x17x32xf32>
    tpu.vector_store %arg4[%c0_7, %c0_8, %c0_9], %7 {strides = array<i32>} : memref<2x17x32xf32, #tpu.memory_space<vmem>>, vector<2x17x32xf32>,
    return
  }
  func.func @transform_0(%arg0: i32) -> (i32, i32, i32) {
    %c0_i32 = arith.constant 0 : i32
    %c0_i32_0 = arith.constant 0 : i32
    %c0_i32_1 = arith.constant 0 : i32
    return %arg0, %c0_i32, %c0_i32_0 : i32, i32, i32
  }
  func.func @transform_1(%arg0: i32) -> (i32, i32) {
    %c0_i32 = arith.constant 0 : i32
    %c0_i32_0 = arith.constant 0 : i32
    %c0_i32_1 = arith.constant 0 : i32
    return %c0_i32, %c0_i32_0 : i32, i32
  }
  func.func @transform_2(%arg0: i32) -> (i32, i32, i32) {
    %c0_i32 = arith.constant 0 : i32
    %c0_i32_0 = arith.constant 0 : i32
    %c0_i32_1 = arith.constant 0 : i32
    %c0_i32_2 = arith.constant 0 : i32
    return %c0_i32, %c0_i32_0, %c0_i32_1 : i32, i32, i32
  }
  func.func @transform_3(%arg0: i32) -> (i32, i32, i32) {
    %c0_i32 = arith.constant 0 : i32
    %c0_i32_0 = arith.constant 0 : i32
    %c0_i32_1 = arith.constant 0 : i32
    return %arg0, %c0_i32, %c0_i32_0 : i32, i32, i32
  }
}

module attributes {stable_mosaic.version = 11 : i64} {
  func.func @_ln_kernel(%arg0: i32, %arg1: memref<2x17x32xf32, #tpu.memory_space<vmem>>, %arg2: memref<1x1x32xf32, #tpu.memory_space<vmem>>, %arg3: memref<1x1x32xf32, #tpu.memory_space<vmem>>, %arg4: memref<2x17x32xf32, #tpu.memory_space<vmem>>) attributes {dimension_semantics = [#tpu.dimension_semantics<parallel>], iteration_bounds = array<i64: 1>, scalar_prefetch = 0 : i64, scratch_operands = 0 : i64, tpu.core_type = #tpu.core_type<tc>, window_params = [{transform_indices = @transform_0, window_bounds = array<i64: 2, 17, 32>}, {pipeline_mode = #tpu.pipeline_mode<synchronous>, transform_indices = @transform_1, window_bounds = array<i64: 1, 1, 32>}, {pipeline_mode = #tpu.pipeline_mode<synchronous>, transform_indices = @transform_2, window_bounds = array<i64: 1, 1, 32>}, {transform_indices = @transform_3, window_bounds = array<i64: 2, 17, 32>}]} {
    %c0 = arith.constant 0 : index
    %c0_0 = arith.constant 0 : index
    %c0_1 = arith.constant 0 : index
    %0 = vector.load %arg1[%c0, %c0_0, %c0_1] : memref<2x17x32xf32, #tpu.memory_space<vmem>>, vector<2x17x32xf32>
    %cst = arith.constant dense<0.000000e+00> : vector<2x17xf32>
    %1 = vector.multi_reduction <add>, %0, %cst [2] : vector<2x17x32xf32> to vector<2x17xf32>
    %2 = vector.shape_cast %1 : vector<2x17xf32> to vector<2x17x1xf32>
    %cst_2 = arith.constant 3.200000e+01 : f32
    %3 = vector.broadcast %cst_2 : f32 to vector<2x17x1xf32>
    %4 = arith.divf %2, %3 : vector<2x17x1xf32>
    %5 = vector.broadcast %4 : vector<2x17x1xf32> to vector<2x17x32xf32>
    %6 = arith.subf %0, %5 : vector<2x17x32xf32>
    %7 = arith.mulf %6, %6 : vector<2x17x32xf32>
    %cst_3 = arith.constant dense<0.000000e+00> : vector<2x17xf32>
    %8 = vector.multi_reduction <add>, %7, %cst_3 [2] : vector<2x17x32xf32> to vector<2x17xf32>
    %9 = vector.shape_cast %8 : vector<2x17xf32> to vector<2x17x1xf32>
    %cst_4 = arith.constant 3.200000e+01 : f32
    %10 = vector.broadcast %cst_4 : f32 to vector<2x17x1xf32>
    %11 = arith.divf %9, %10 : vector<2x17x1xf32>
    %cst_5 = arith.constant 9.99999974E-6 : f32
    %12 = vector.broadcast %cst_5 : f32 to vector<2x17x1xf32>
    %13 = arith.addf %11, %12 : vector<2x17x1xf32>
    %14 = math.rsqrt %13 : vector<2x17x1xf32>
    %15 = vector.broadcast %14 : vector<2x17x1xf32> to vector<2x17x32xf32>
    %16 = arith.mulf %6, %15 : vector<2x17x32xf32>
    %c0_6 = arith.constant 0 : index
    %c0_7 = arith.constant 0 : index
    %c0_8 = arith.constant 0 : index
    %17 = vector.load %arg2[%c0_6, %c0_7, %c0_8] : memref<1x1x32xf32, #tpu.memory_space<vmem>>, vector<1x1x32xf32>
    %18 = vector.broadcast %17 : vector<1x1x32xf32> to vector<2x17x32xf32>
    %19 = arith.mulf %16, %18 : vector<2x17x32xf32>
    %c0_9 = arith.constant 0 : index
    %c0_10 = arith.constant 0 : index
    %c0_11 = arith.constant 0 : index
    %20 = vector.load %arg3[%c0_9, %c0_10, %c0_11] : memref<1x1x32xf32, #tpu.memory_space<vmem>>, vector<1x1x32xf32>
    %21 = vector.broadcast %20 : vector<1x1x32xf32> to vector<2x17x32xf32>
    %22 = arith.addf %19, %21 : vector<2x17x32xf32>
    %c0_12 = arith.constant 0 : index
    %c0_13 = arith.constant 0 : index
    %c0_14 = arith.constant 0 : index
    %23 = vector.load %arg4[%c0_12, %c0_13, %c0_14] : memref<2x17x32xf32, #tpu.memory_space<vmem>>, vector<2x17x32xf32>
    tpu.vector_store %arg4[%c0_12, %c0_13, %c0_14], %22 {strides = array<i32>} : memref<2x17x32xf32, #tpu.memory_space<vmem>>, vector<2x17x32xf32>,
    return
  }
  func.func @transform_0(%arg0: i32) -> (i32, i32, i32) {
    %c0_i32 = arith.constant 0 : i32
    %c0_i32_0 = arith.constant 0 : i32
    %c0_i32_1 = arith.constant 0 : i32
    return %arg0, %c0_i32, %c0_i32_0 : i32, i32, i32
  }
  func.func @transform_1(%arg0: i32) -> (i32, i32, i32) {
    %c0_i32 = arith.constant 0 : i32
    %c0_i32_0 = arith.constant 0 : i32
    %c0_i32_1 = arith.constant 0 : i32
    %c0_i32_2 = arith.constant 0 : i32
    return %c0_i32, %c0_i32_0, %c0_i32_1 : i32, i32, i32
  }
  func.func @transform_2(%arg0: i32) -> (i32, i32, i32) {
    %c0_i32 = arith.constant 0 : i32
    %c0_i32_0 = arith.constant 0 : i32
    %c0_i32_1 = arith.constant 0 : i32
    %c0_i32_2 = arith.constant 0 : i32
    return %c0_i32, %c0_i32_0, %c0_i32_1 : i32, i32, i32
  }
  func.func @transform_3(%arg0: i32) -> (i32, i32, i32) {
    %c0_i32 = arith.constant 0 : i32
    %c0_i32_0 = arith.constant 0 : i32
    %c0_i32_1 = arith.constant 0 : i32
    return %arg0, %c0_i32, %c0_i32_0 : i32, i32, i32
  }
}

module attributes {stable_mosaic.version = 11 : i64} {
  func.func @_mha_kernel(%arg0: i32, %arg1: memref<2x17x32xf32, #tpu.memory_space<vmem>>, %arg2: memref<2x17x32xf32, #tpu.memory_space<vmem>>, %arg3: memref<2x17x32xf32, #tpu.memory_space<vmem>>, %arg4: memref<2x17x32xf32, #tpu.memory_space<vmem>>) attributes {dimension_semantics = [#tpu.dimension_semantics<parallel>], iteration_bounds = array<i64: 1>, scalar_prefetch = 0 : i64, scratch_operands = 0 : i64, tpu.core_type = #tpu.core_type<tc>, window_params = [{transform_indices = @transform_0, window_bounds = array<i64: 2, 17, 32>}, {transform_indices = @transform_1, window_bounds = array<i64: 2, 17, 32>}, {transform_indices = @transform_2, window_bounds = array<i64: 2, 17, 32>}, {transform_indices = @transform_3, window_bounds = array<i64: 2, 17, 32>}]} {
    %c0 = arith.constant 0 : index
    %c0_0 = arith.constant 0 : index
    %c0_1 = arith.constant 0 : index
    %0 = vector.load %arg1[%c0, %c0_0, %c0_1] : memref<2x17x32xf32, #tpu.memory_space<vmem>>, vector<2x17x32xf32>
    %c0_2 = arith.constant 0 : index
    %c0_3 = arith.constant 0 : index
    %c0_4 = arith.constant 0 : index
    %1 = vector.load %arg2[%c0_2, %c0_3, %c0_4] : memref<2x17x32xf32, #tpu.memory_space<vmem>>, vector<2x17x32xf32>
    %c0_5 = arith.constant 0 : index
    %c0_6 = arith.constant 0 : index
    %c0_7 = arith.constant 0 : index
    %2 = vector.load %arg3[%c0_5, %c0_6, %c0_7] : memref<2x17x32xf32, #tpu.memory_space<vmem>>, vector<2x17x32xf32>
    %3 = vector.extract_strided_slice %0 {offsets = [0, 0, 0], sizes = [2, 17, 16], strides = [1, 1, 1]} : vector<2x17x32xf32> to vector<2x17x16xf32>
    %4 = vector.extract_strided_slice %1 {offsets = [0, 0, 0], sizes = [2, 17, 16], strides = [1, 1, 1]} : vector<2x17x32xf32> to vector<2x17x16xf32>
    %5 = vector.extract_strided_slice %2 {offsets = [0, 0, 0], sizes = [2, 17, 16], strides = [1, 1, 1]} : vector<2x17x32xf32> to vector<2x17x16xf32>
    "tpu.trace_start"() <{level = 10 : i32, message = "bqd,bkd->bqk"}> : () -> ()
    %cst = arith.constant dense<0.000000e+00> : vector<2x17x17xf32>
    %6 = tpu.matmul %3, %4, %cst {dimension_numbers = #tpu.dot_dimension_numbers<[2], [2], [1], [1], [0, 0, 0, 1, 1, 1], [0], [0]>} : vector<2x17x16xf32>, vector<2x17x16xf32>, vector<2x17x17xf32> -> vector<2x17x17xf32>
    "tpu.trace_stop"() : () -> ()
    %cst_8 = arith.constant 2.500000e-01 : f32
    %7 = vector.broadcast %cst_8 : f32 to vector<2x17x17xf32>
    %8 = arith.mulf %6, %7 : vector<2x17x17xf32>
    %cst_9 = arith.constant dense<0xFF800000> : vector<2x17xf32>
    %9 = vector.multi_reduction <maximumf>, %8, %cst_9 [2] : vector<2x17x17xf32> to vector<2x17xf32>
    %10 = vector.shape_cast %9 : vector<2x17xf32> to vector<2x17x1xf32>
    %11 = vector.broadcast %10 : vector<2x17x1xf32> to vector<2x17x17xf32>
    %12 = arith.subf %8, %11 : vector<2x17x17xf32>
    %13 = math.exp %12 : vector<2x17x17xf32>
    %cst_10 = arith.constant dense<0.000000e+00> : vector<2x17xf32>
    %14 = vector.multi_reduction <add>, %13, %cst_10 [2] : vector<2x17x17xf32> to vector<2x17xf32>
    %15 = vector.shape_cast %14 : vector<2x17xf32> to vector<2x17x1xf32>
    %16 = vector.broadcast %15 : vector<2x17x1xf32> to vector<2x17x17xf32>
    %17 = arith.divf %13, %16 : vector<2x17x17xf32>
    "tpu.trace_start"() <{level = 10 : i32, message = "bqk,bkd->bqd"}> : () -> ()
    %cst_11 = arith.constant dense<0.000000e+00> : vector<2x17x16xf32>
    %18 = tpu.matmul %17, %5, %cst_11 {dimension_numbers = #tpu.dot_dimension_numbers<[2], [1], [1], [2], [0, 0, 0, 1, 1, 2], [0], [0]>} : vector<2x17x17xf32>, vector<2x17x16xf32>, vector<2x17x16xf32> -> vector<2x17x16xf32>
    "tpu.trace_stop"() : () -> ()
    %19 = vector.extract_strided_slice %0 {offsets = [0, 0, 16], sizes = [2, 17, 16], strides = [1, 1, 1]} : vector<2x17x32xf32> to vector<2x17x16xf32>
    %20 = vector.extract_strided_slice %1 {offsets = [0, 0, 16], sizes = [2, 17, 16], strides = [1, 1, 1]} : vector<2x17x32xf32> to vector<2x17x16xf32>
    %21 = vector.extract_strided_slice %2 {offsets = [0, 0, 16], sizes = [2, 17, 16], strides = [1, 1, 1]} : vector<2x17x32xf32> to vector<2x17x16xf32>
    "tpu.trace_start"() <{level = 10 : i32, message = "bqd,bkd->bqk"}> : () -> ()
    %cst_12 = arith.constant dense<0.000000e+00> : vector<2x17x17xf32>
    %22 = tpu.matmul %19, %20, %cst_12 {dimension_numbers = #tpu.dot_dimension_numbers<[2], [2], [1], [1], [0, 0, 0, 1, 1, 1], [0], [0]>} : vector<2x17x16xf32>, vector<2x17x16xf32>, vector<2x17x17xf32> -> vector<2x17x17xf32>
    "tpu.trace_stop"() : () -> ()
    %cst_13 = arith.constant 2.500000e-01 : f32
    %23 = vector.broadcast %cst_13 : f32 to vector<2x17x17xf32>
    %24 = arith.mulf %22, %23 : vector<2x17x17xf32>
    %cst_14 = arith.constant dense<0xFF800000> : vector<2x17xf32>
    %25 = vector.multi_reduction <maximumf>, %24, %cst_14 [2] : vector<2x17x17xf32> to vector<2x17xf32>
    %26 = vector.shape_cast %25 : vector<2x17xf32> to vector<2x17x1xf32>
    %27 = vector.broadcast %26 : vector<2x17x1xf32> to vector<2x17x17xf32>
    %28 = arith.subf %24, %27 : vector<2x17x17xf32>
    %29 = math.exp %28 : vector<2x17x17xf32>
    %cst_15 = arith.constant dense<0.000000e+00> : vector<2x17xf32>
    %30 = vector.multi_reduction <add>, %29, %cst_15 [2] : vector<2x17x17xf32> to vector<2x17xf32>
    %31 = vector.shape_cast %30 : vector<2x17xf32> to vector<2x17x1xf32>
    %32 = vector.broadcast %31 : vector<2x17x1xf32> to vector<2x17x17xf32>
    %33 = arith.divf %29, %32 : vector<2x17x17xf32>
    "tpu.trace_start"() <{level = 10 : i32, message = "bqk,bkd->bqd"}> : () -> ()
    %cst_16 = arith.constant dense<0.000000e+00> : vector<2x17x16xf32>
    %34 = tpu.matmul %33, %21, %cst_16 {dimension_numbers = #tpu.dot_dimension_numbers<[2], [1], [1], [2], [0, 0, 0, 1, 1, 2], [0], [0]>} : vector<2x17x17xf32>, vector<2x17x16xf32>, vector<2x17x16xf32> -> vector<2x17x16xf32>
    "tpu.trace_stop"() : () -> ()
    %35 = tpu.concatenate %18, %34 in 2 : vector<2x17x16xf32>, vector<2x17x16xf32> -> vector<2x17x32xf32>
    %c0_17 = arith.constant 0 : index
    %c0_18 = arith.constant 0 : index
    %c0_19 = arith.constant 0 : index
    %36 = vector.load %arg4[%c0_17, %c0_18, %c0_19] : memref<2x17x32xf32, #tpu.memory_space<vmem>>, vector<2x17x32xf32>
    tpu.vector_store %arg4[%c0_17, %c0_18, %c0_19], %35 {strides = array<i32>} : memref<2x17x32xf32, #tpu.memory_space<vmem>>, vector<2x17x32xf32>,
    return
  }
  func.func @transform_0(%arg0: i32) -> (i32, i32, i32) {
    %c0_i32 = arith.constant 0 : i32
    %c0_i32_0 = arith.constant 0 : i32
    %c0_i32_1 = arith.constant 0 : i32
    return %arg0, %c0_i32, %c0_i32_0 : i32, i32, i32
  }
  func.func @transform_1(%arg0: i32) -> (i32, i32, i32) {
    %c0_i32 = arith.constant 0 : i32
    %c0_i32_0 = arith.constant 0 : i32
    %c0_i32_1 = arith.constant 0 : i32
    return %arg0, %c0_i32, %c0_i32_0 : i32, i32, i32
  }
  func.func @transform_2(%arg0: i32) -> (i32, i32, i32) {
    %c0_i32 = arith.constant 0 : i32
    %c0_i32_0 = arith.constant 0 : i32
    %c0_i32_1 = arith.constant 0 : i32
    return %arg0, %c0_i32, %c0_i32_0 : i32, i32, i32
  }
  func.func @transform_3(%arg0: i32) -> (i32, i32, i32) {
    %c0_i32 = arith.constant 0 : i32
    %c0_i32_0 = arith.constant 0 : i32
    %c0_i32_1 = arith.constant 0 : i32
    return %arg0, %c0_i32, %c0_i32_0 : i32, i32, i32
  }
}

module attributes {stable_mosaic.version = 11 : i64} {
  func.func @_linear_residual_kernel(%arg0: i32, %arg1: memref<2x17x32xf32, #tpu.memory_space<vmem>>, %arg2: memref<32x32xf32, #tpu.memory_space<vmem>>, %arg3: memref<1x1x32xf32, #tpu.memory_space<vmem>>, %arg4: memref<2x17x32xf32, #tpu.memory_space<vmem>>, %arg5: memref<2x17x32xf32, #tpu.memory_space<vmem>>) attributes {dimension_semantics = [#tpu.dimension_semantics<parallel>], iteration_bounds = array<i64: 1>, scalar_prefetch = 0 : i64, scratch_operands = 0 : i64, tpu.core_type = #tpu.core_type<tc>, window_params = [{transform_indices = @transform_0, window_bounds = array<i64: 2, 17, 32>}, {pipeline_mode = #tpu.pipeline_mode<synchronous>, transform_indices = @transform_1, window_bounds = array<i64: 32, 32>}, {pipeline_mode = #tpu.pipeline_mode<synchronous>, transform_indices = @transform_2, window_bounds = array<i64: 1, 1, 32>}, {transform_indices = @transform_3, window_bounds = array<i64: 2, 17, 32>}, {transform_indices = @transform_4, window_bounds = array<i64: 2, 17, 32>}]} {
    %c0 = arith.constant 0 : index
    %c0_0 = arith.constant 0 : index
    %c0_1 = arith.constant 0 : index
    %0 = vector.load %arg1[%c0, %c0_0, %c0_1] : memref<2x17x32xf32, #tpu.memory_space<vmem>>, vector<2x17x32xf32>
    %1 = vector.shape_cast %0 : vector<2x17x32xf32> to vector<34x32xf32>
    %c0_2 = arith.constant 0 : index
    %c0_3 = arith.constant 0 : index
    %2 = vector.load %arg2[%c0_2, %c0_3] : memref<32x32xf32, #tpu.memory_space<vmem>>, vector<32x32xf32>
    %cst = arith.constant dense<0.000000e+00> : vector<34x32xf32>
    %3 = tpu.matmul %1, %2, %cst {dimension_numbers = #tpu.dot_dimension_numbers<[1], [0], [0], [1], [0, 0, 1, 1], [], []>} : vector<34x32xf32>, vector<32x32xf32>, vector<34x32xf32> -> vector<34x32xf32>
    %4 = vector.shape_cast %3 : vector<34x32xf32> to vector<2x17x32xf32>
    %c0_4 = arith.constant 0 : index
    %c0_5 = arith.constant 0 : index
    %c0_6 = arith.constant 0 : index
    %5 = vector.load %arg3[%c0_4, %c0_5, %c0_6] : memref<1x1x32xf32, #tpu.memory_space<vmem>>, vector<1x1x32xf32>
    %6 = vector.broadcast %5 : vector<1x1x32xf32> to vector<2x17x32xf32>
    %7 = arith.addf %4, %6 : vector<2x17x32xf32>
    %c0_7 = arith.constant 0 : index
    %c0_8 = arith.constant 0 : index
    %c0_9 = arith.constant 0 : index
    %8 = vector.load %arg4[%c0_7, %c0_8, %c0_9] : memref<2x17x32xf32, #tpu.memory_space<vmem>>, vector<2x17x32xf32>
    %9 = arith.addf %7, %8 : vector<2x17x32xf32>
    %c0_10 = arith.constant 0 : index
    %c0_11 = arith.constant 0 : index
    %c0_12 = arith.constant 0 : index
    %10 = vector.load %arg5[%c0_10, %c0_11, %c0_12] : memref<2x17x32xf32, #tpu.memory_space<vmem>>, vector<2x17x32xf32>
    tpu.vector_store %arg5[%c0_10, %c0_11, %c0_12], %9 {strides = array<i32>} : memref<2x17x32xf32, #tpu.memory_space<vmem>>, vector<2x17x32xf32>,
    return
  }
  func.func @transform_0(%arg0: i32) -> (i32, i32, i32) {
    %c0_i32 = arith.constant 0 : i32
    %c0_i32_0 = arith.constant 0 : i32
    %c0_i32_1 = arith.constant 0 : i32
    return %arg0, %c0_i32, %c0_i32_0 : i32, i32, i32
  }
  func.func @transform_1(%arg0: i32) -> (i32, i32) {
    %c0_i32 = arith.constant 0 : i32
    %c0_i32_0 = arith.constant 0 : i32
    %c0_i32_1 = arith.constant 0 : i32
    return %c0_i32, %c0_i32_0 : i32, i32
  }
  func.func @transform_2(%arg0: i32) -> (i32, i32, i32) {
    %c0_i32 = arith.constant 0 : i32
    %c0_i32_0 = arith.constant 0 : i32
    %c0_i32_1 = arith.constant 0 : i32
    %c0_i32_2 = arith.constant 0 : i32
    return %c0_i32, %c0_i32_0, %c0_i32_1 : i32, i32, i32
  }
  func.func @transform_3(%arg0: i32) -> (i32, i32, i32) {
    %c0_i32 = arith.constant 0 : i32
    %c0_i32_0 = arith.constant 0 : i32
    %c0_i32_1 = arith.constant 0 : i32
    return %arg0, %c0_i32, %c0_i32_0 : i32, i32, i32
  }
  func.func @transform_4(%arg0: i32) -> (i32, i32, i32) {
    %c0_i32 = arith.constant 0 : i32
    %c0_i32_0 = arith.constant 0 : i32
    %c0_i32_1 = arith.constant 0 : i32
    return %arg0, %c0_i32, %c0_i32_0 : i32, i32, i32
  }
}

module attributes {stable_mosaic.version = 11 : i64} {
  func.func @_linear_kernel(%arg0: i32, %arg1: memref<2x17x32xf32, #tpu.memory_space<vmem>>, %arg2: memref<32x128xf32, #tpu.memory_space<vmem>>, %arg3: memref<1x1x128xf32, #tpu.memory_space<vmem>>, %arg4: memref<2x17x128xf32, #tpu.memory_space<vmem>>) attributes {dimension_semantics = [#tpu.dimension_semantics<parallel>], iteration_bounds = array<i64: 1>, scalar_prefetch = 0 : i64, scratch_operands = 0 : i64, tpu.core_type = #tpu.core_type<tc>, window_params = [{transform_indices = @transform_0, window_bounds = array<i64: 2, 17, 32>}, {pipeline_mode = #tpu.pipeline_mode<synchronous>, transform_indices = @transform_1, window_bounds = array<i64: 32, 128>}, {pipeline_mode = #tpu.pipeline_mode<synchronous>, transform_indices = @transform_2, window_bounds = array<i64: 1, 1, 128>}, {transform_indices = @transform_3, window_bounds = array<i64: 2, 17, 128>}]} {
    %c0 = arith.constant 0 : index
    %c0_0 = arith.constant 0 : index
    %c0_1 = arith.constant 0 : index
    %0 = vector.load %arg1[%c0, %c0_0, %c0_1] : memref<2x17x32xf32, #tpu.memory_space<vmem>>, vector<2x17x32xf32>
    %1 = vector.shape_cast %0 : vector<2x17x32xf32> to vector<34x32xf32>
    %c0_2 = arith.constant 0 : index
    %c0_3 = arith.constant 0 : index
    %2 = vector.load %arg2[%c0_2, %c0_3] : memref<32x128xf32, #tpu.memory_space<vmem>>, vector<32x128xf32>
    %cst = arith.constant dense<0.000000e+00> : vector<34x128xf32>
    %3 = tpu.matmul %1, %2, %cst {dimension_numbers = #tpu.dot_dimension_numbers<[1], [0], [0], [1], [0, 0, 1, 1], [], []>} : vector<34x32xf32>, vector<32x128xf32>, vector<34x128xf32> -> vector<34x128xf32>
    %4 = vector.shape_cast %3 : vector<34x128xf32> to vector<2x17x128xf32>
    %c0_4 = arith.constant 0 : index
    %c0_5 = arith.constant 0 : index
    %c0_6 = arith.constant 0 : index
    %5 = vector.load %arg3[%c0_4, %c0_5, %c0_6] : memref<1x1x128xf32, #tpu.memory_space<vmem>>, vector<1x1x128xf32>
    %6 = vector.broadcast %5 : vector<1x1x128xf32> to vector<2x17x128xf32>
    %7 = arith.addf %4, %6 : vector<2x17x128xf32>
    %8 = arith.mulf %7, %7 : vector<2x17x128xf32>
    %9 = arith.mulf %7, %8 : vector<2x17x128xf32>
    %cst_7 = arith.constant 4.471500e-02 : f32
    %10 = vector.broadcast %cst_7 : f32 to vector<2x17x128xf32>
    %11 = arith.mulf %10, %9 : vector<2x17x128xf32>
    %12 = arith.addf %7, %11 : vector<2x17x128xf32>
    %cst_8 = arith.constant 0.797884583 : f32
    %13 = vector.broadcast %cst_8 : f32 to vector<2x17x128xf32>
    %14 = arith.mulf %13, %12 : vector<2x17x128xf32>
    %15 = math.tanh %14 : vector<2x17x128xf32>
    %cst_9 = arith.constant 1.000000e+00 : f32
    %16 = vector.broadcast %cst_9 : f32 to vector<2x17x128xf32>
    %17 = arith.addf %16, %15 : vector<2x17x128xf32>
    %cst_10 = arith.constant 5.000000e-01 : f32
    %18 = vector.broadcast %cst_10 : f32 to vector<2x17x128xf32>
    %19 = arith.mulf %18, %17 : vector<2x17x128xf32>
    %20 = arith.mulf %7, %19 : vector<2x17x128xf32>
    %c0_11 = arith.constant 0 : index
    %c0_12 = arith.constant 0 : index
    %c0_13 = arith.constant 0 : index
    %21 = vector.load %arg4[%c0_11, %c0_12, %c0_13] : memref<2x17x128xf32, #tpu.memory_space<vmem>>, vector<2x17x128xf32>
    tpu.vector_store %arg4[%c0_11, %c0_12, %c0_13], %20 {strides = array<i32>} : memref<2x17x128xf32, #tpu.memory_space<vmem>>, vector<2x17x128xf32>,
    return
  }
  func.func @transform_0(%arg0: i32) -> (i32, i32, i32) {
    %c0_i32 = arith.constant 0 : i32
    %c0_i32_0 = arith.constant 0 : i32
    %c0_i32_1 = arith.constant 0 : i32
    return %arg0, %c0_i32, %c0_i32_0 : i32, i32, i32
  }
  func.func @transform_1(%arg0: i32) -> (i32, i32) {
    %c0_i32 = arith.constant 0 : i32
    %c0_i32_0 = arith.constant 0 : i32
    %c0_i32_1 = arith.constant 0 : i32
    return %c0_i32, %c0_i32_0 : i32, i32
  }
  func.func @transform_2(%arg0: i32) -> (i32, i32, i32) {
    %c0_i32 = arith.constant 0 : i32
    %c0_i32_0 = arith.constant 0 : i32
    %c0_i32_1 = arith.constant 0 : i32
    %c0_i32_2 = arith.constant 0 : i32
    return %c0_i32, %c0_i32_0, %c0_i32_1 : i32, i32, i32
  }
  func.func @transform_3(%arg0: i32) -> (i32, i32, i32) {
    %c0_i32 = arith.constant 0 : i32
    %c0_i32_0 = arith.constant 0 : i32
    %c0_i32_1 = arith.constant 0 : i32
    return %arg0, %c0_i32, %c0_i32_0 : i32, i32, i32
  }
}

module attributes {stable_mosaic.version = 11 : i64} {
  func.func @_linear_residual_kernel(%arg0: i32, %arg1: memref<2x17x128xf32, #tpu.memory_space<vmem>>, %arg2: memref<128x32xf32, #tpu.memory_space<vmem>>, %arg3: memref<1x1x32xf32, #tpu.memory_space<vmem>>, %arg4: memref<2x17x32xf32, #tpu.memory_space<vmem>>, %arg5: memref<2x17x32xf32, #tpu.memory_space<vmem>>) attributes {dimension_semantics = [#tpu.dimension_semantics<parallel>], iteration_bounds = array<i64: 1>, scalar_prefetch = 0 : i64, scratch_operands = 0 : i64, tpu.core_type = #tpu.core_type<tc>, window_params = [{transform_indices = @transform_0, window_bounds = array<i64: 2, 17, 128>}, {pipeline_mode = #tpu.pipeline_mode<synchronous>, transform_indices = @transform_1, window_bounds = array<i64: 128, 32>}, {pipeline_mode = #tpu.pipeline_mode<synchronous>, transform_indices = @transform_2, window_bounds = array<i64: 1, 1, 32>}, {transform_indices = @transform_3, window_bounds = array<i64: 2, 17, 32>}, {transform_indices = @transform_4, window_bounds = array<i64: 2, 17, 32>}]} {
    %c0 = arith.constant 0 : index
    %c0_0 = arith.constant 0 : index
    %c0_1 = arith.constant 0 : index
    %0 = vector.load %arg1[%c0, %c0_0, %c0_1] : memref<2x17x128xf32, #tpu.memory_space<vmem>>, vector<2x17x128xf32>
    %1 = vector.shape_cast %0 : vector<2x17x128xf32> to vector<34x128xf32>
    %c0_2 = arith.constant 0 : index
    %c0_3 = arith.constant 0 : index
    %2 = vector.load %arg2[%c0_2, %c0_3] : memref<128x32xf32, #tpu.memory_space<vmem>>, vector<128x32xf32>
    %cst = arith.constant dense<0.000000e+00> : vector<34x32xf32>
    %3 = tpu.matmul %1, %2, %cst {dimension_numbers = #tpu.dot_dimension_numbers<[1], [0], [0], [1], [0, 0, 1, 1], [], []>} : vector<34x128xf32>, vector<128x32xf32>, vector<34x32xf32> -> vector<34x32xf32>
    %4 = vector.shape_cast %3 : vector<34x32xf32> to vector<2x17x32xf32>
    %c0_4 = arith.constant 0 : index
    %c0_5 = arith.constant 0 : index
    %c0_6 = arith.constant 0 : index
    %5 = vector.load %arg3[%c0_4, %c0_5, %c0_6] : memref<1x1x32xf32, #tpu.memory_space<vmem>>, vector<1x1x32xf32>
    %6 = vector.broadcast %5 : vector<1x1x32xf32> to vector<2x17x32xf32>
    %7 = arith.addf %4, %6 : vector<2x17x32xf32>
    %c0_7 = arith.constant 0 : index
    %c0_8 = arith.constant 0 : index
    %c0_9 = arith.constant 0 : index
    %8 = vector.load %arg4[%c0_7, %c0_8, %c0_9] : memref<2x17x32xf32, #tpu.memory_space<vmem>>, vector<2x17x32xf32>
    %9 = arith.addf %7, %8 : vector<2x17x32xf32>
    %c0_10 = arith.constant 0 : index
    %c0_11 = arith.constant 0 : index
    %c0_12 = arith.constant 0 : index
    %10 = vector.load %arg5[%c0_10, %c0_11, %c0_12] : memref<2x17x32xf32, #tpu.memory_space<vmem>>, vector<2x17x32xf32>
    tpu.vector_store %arg5[%c0_10, %c0_11, %c0_12], %9 {strides = array<i32>} : memref<2x17x32xf32, #tpu.memory_space<vmem>>, vector<2x17x32xf32>,
    return
  }
  func.func @transform_0(%arg0: i32) -> (i32, i32, i32) {
    %c0_i32 = arith.constant 0 : i32
    %c0_i32_0 = arith.constant 0 : i32
    %c0_i32_1 = arith.constant 0 : i32
    return %arg0, %c0_i32, %c0_i32_0 : i32, i32, i32
  }
  func.func @transform_1(%arg0: i32) -> (i32, i32) {
    %c0_i32 = arith.constant 0 : i32
    %c0_i32_0 = arith.constant 0 : i32
    %c0_i32_1 = arith.constant 0 : i32
    return %c0_i32, %c0_i32_0 : i32, i32
  }
  func.func @transform_2(%arg0: i32) -> (i32, i32, i32) {
    %c0_i32 = arith.constant 0 : i32
    %c0_i32_0 = arith.constant 0 : i32
    %c0_i32_1 = arith.constant 0 : i32
    %c0_i32_2 = arith.constant 0 : i32
    return %c0_i32, %c0_i32_0, %c0_i32_1 : i32, i32, i32
  }
  func.func @transform_3(%arg0: i32) -> (i32, i32, i32) {
    %c0_i32 = arith.constant 0 : i32
    %c0_i32_0 = arith.constant 0 : i32
    %c0_i32_1 = arith.constant 0 : i32
    return %arg0, %c0_i32, %c0_i32_0 : i32, i32, i32
  }
  func.func @transform_4(%arg0: i32) -> (i32, i32, i32) {
    %c0_i32 = arith.constant 0 : i32
    %c0_i32_0 = arith.constant 0 : i32
    %c0_i32_1 = arith.constant 0 : i32
    return %arg0, %c0_i32, %c0_i32_0 : i32, i32, i32
  }
}

module attributes {stable_mosaic.version = 11 : i64} {
  func.func @_proj_norm_kernel(%arg0: i32, %arg1: memref<2x32xf32, #tpu.memory_space<vmem>>, %arg2: memref<32x32xf32, #tpu.memory_space<vmem>>, %arg3: memref<2x32xf32, #tpu.memory_space<vmem>>) attributes {dimension_semantics = [#tpu.dimension_semantics<parallel>], iteration_bounds = array<i64: 1>, scalar_prefetch = 0 : i64, scratch_operands = 0 : i64, tpu.core_type = #tpu.core_type<tc>, window_params = [{pipeline_mode = #tpu.pipeline_mode<synchronous>, transform_indices = @transform_0, window_bounds = array<i64: 2, 32>}, {pipeline_mode = #tpu.pipeline_mode<synchronous>, transform_indices = @transform_1, window_bounds = array<i64: 32, 32>}, {pipeline_mode = #tpu.pipeline_mode<synchronous>, transform_indices = @transform_2, window_bounds = array<i64: 2, 32>}]} {
    %c0 = arith.constant 0 : index
    %c0_0 = arith.constant 0 : index
    %0 = vector.load %arg1[%c0, %c0_0] : memref<2x32xf32, #tpu.memory_space<vmem>>, vector<2x32xf32>
    %c0_1 = arith.constant 0 : index
    %c0_2 = arith.constant 0 : index
    %1 = vector.load %arg2[%c0_1, %c0_2] : memref<32x32xf32, #tpu.memory_space<vmem>>, vector<32x32xf32>
    %cst = arith.constant dense<0.000000e+00> : vector<2x32xf32>
    %2 = tpu.matmul %0, %1, %cst {dimension_numbers = #tpu.dot_dimension_numbers<[1], [0], [0], [1], [0, 0, 1, 1], [], []>} : vector<2x32xf32>, vector<32x32xf32>, vector<2x32xf32> -> vector<2x32xf32>
    %3 = arith.mulf %2, %2 : vector<2x32xf32>
    %cst_3 = arith.constant dense<0.000000e+00> : vector<2xf32>
    %4 = vector.multi_reduction <add>, %3, %cst_3 [1] : vector<2x32xf32> to vector<2xf32>
    %5 = vector.shape_cast %4 : vector<2xf32> to vector<2x1xf32>
    %6 = math.sqrt %5 : vector<2x1xf32>
    %7 = vector.broadcast %6 : vector<2x1xf32> to vector<2x32xf32>
    %8 = arith.divf %2, %7 : vector<2x32xf32>
    %c0_4 = arith.constant 0 : index
    %c0_5 = arith.constant 0 : index
    %9 = vector.load %arg3[%c0_4, %c0_5] : memref<2x32xf32, #tpu.memory_space<vmem>>, vector<2x32xf32>
    tpu.vector_store %arg3[%c0_4, %c0_5], %8 {strides = array<i32>} : memref<2x32xf32, #tpu.memory_space<vmem>>, vector<2x32xf32>,
    return
  }
  func.func @transform_0(%arg0: i32) -> (i32, i32) {
    %c0_i32 = arith.constant 0 : i32
    %c0_i32_0 = arith.constant 0 : i32
    %c0_i32_1 = arith.constant 0 : i32
    return %c0_i32, %c0_i32_0 : i32, i32
  }
  func.func @transform_1(%arg0: i32) -> (i32, i32) {
    %c0_i32 = arith.constant 0 : i32
    %c0_i32_0 = arith.constant 0 : i32
    %c0_i32_1 = arith.constant 0 : i32
    return %c0_i32, %c0_i32_0 : i32, i32
  }
  func.func @transform_2(%arg0: i32) -> (i32, i32) {
    %c0_i32 = arith.constant 0 : i32
    %c0_i32_0 = arith.constant 0 : i32
    %c0_i32_1 = arith.constant 0 : i32
    return %c0_i32, %c0_i32_0 : i32, i32
  }
}

</mosaic_0001>

<bundles_post_ra>
// kernel: _lambda_.21
= control target key start
LH: loop header
LB: loop body
LE: loop exit
PB: predicated region body
PF: predicated region fallthrough
CT: control target
= control target key end

     0   :  { %vm20_vm0 = vcmask 261120   ;;  %vm27_vm1 = vcmask 253952   ;;  %s246_s0 = inlined_call_operand.vmem [shape: f32[2,17,32], index: 0, kind: input, shape index: {}]   ;;  %s247_s1 = inlined_call_operand.vmem [shape: f32[1,1,32], index: 1, kind: input, shape index: {}]   ;;  %s248_s2 = inlined_call_operand.vmem [shape: f32[1,1,32], index: 2, kind: input, shape index: {}]   ;;  %s249_s3 = inlined_call_operand.vmem [shape: f32[2,17,32], index: 3, kind: output, shape index: {}]  }
   0x1   :  { %v14_v0 = vld [vmem:[%s246_s0] sm:$0xff]  ;;  %v16_v1 = vld [vmem:[%s246_s0 + $0x10] sm:$0x1]  ;;  %v15_v2 = vld [vmem:[%s246_s0 + $0x8] sm:$0xff] }
   0x2   :  { %v21_v3 = vsel %vm20_vm0, %v14_v0, 0.0  ;;  %v28_v4 = vsel %vm27_vm1, %v16_v1, 0.0  ;;  %v17_v5 = vld [vmem:[%s246_s0 + $0x18] sm:$0xff]  ;;  %v24_v6 = vsel %vm20_vm0, %v15_v2, 0.0  ;;  %v18_v8 = vld [vmem:[%s246_s0 + $0x20] sm:$0xff] }
   0x3   :  { %22 = vadd.xlane.f32.xlu0 %v21_v3  ;;  %29 = vadd.xlane.f32.xlu1 %v28_v4  ;;  %v31_v7 = vsel %vm20_vm0, %v17_v5, 0.0  ;;  %v19_v9 = vld [vmem:[%s246_s0 + $0x28] sm:$0x1]  ;;  %v34_v10 = vsel %vm20_vm0, %v18_v8, 0.0  ;;  %v137_v61 = vld [vmem:[%s247_s1] ss:$0 sm:$0xff] }
   0x4   :  { %v37_v11 = vsel %vm27_vm1, %v19_v9, 0.0  ;;  %v138_v63 = vld [vmem:[%s248_s2] ss:$0 sm:$0xff] }
   0x7   :  { %25 = vadd.xlane.f32.xlu0 %v24_v6  ;;  %32 = vadd.xlane.f32.xlu1 %v31_v7 }
   0xb   :  { %35 = vadd.xlane.f32.xlu0 %v34_v10  ;;  %38 = vadd.xlane.f32.xlu1 %v37_v11 }
  0x8c   :  { %v23_v12 = vpop.xlane.xlu0 %22  ;;  %v30_v13 = vpop.xlane.xlu1 %29 }
  0x8d   :  { %v41_v14 = vmul.f32 0.03125, %v23_v12  ;;  %v43_v15 = vmul.f32 0.03125, %v30_v13 }
  0x8f   :  { %v47_v16 = vsub.f32 %v14_v0, %v41_v14  ;;  %v195_v17 = vsub.f32 %v16_v1, %v43_v15 }
  0x90   :  { %v26_v18 = vpop.xlane.xlu0 %25  ;;  %v33_v19 = vpop.xlane.xlu1 %32 }
  0x91   :  { %v42_v20 = vmul.f32 0.03125, %v26_v18  ;;  %v44_v21 = vmul.f32 0.03125, %v33_v19  ;;  %v53_v22 = vmul.f32 %v47_v16, %v47_v16  ;;  %v55_v23 = vmul.f32 %v195_v17, %v195_v17 }
  0x93   :  { %v48_v24 = vsub.f32 %v15_v2, %v42_v20  ;;  %v199_v25 = vsub.f32 %v17_v5, %v44_v21  ;;  %v59_v26 = vsel %vm20_vm0, %v53_v22, 0.0  ;;  %v65_v29 = vsel %vm27_vm1, %v55_v23, 0.0 }
  0x94   :  { %60 = vadd.xlane.f32.xlu0 %v59_v26  ;;  %v36_v27 = vpop.xlane.xlu0 %35  ;;  %v39_v28 = vpop.xlane.xlu1 %38 }
  0x95   :  { %v45_v30 = vmul.f32 0.03125, %v36_v27  ;;  %v46_v31 = vmul.f32 0.03125, %v39_v28  ;;  %v54_v32 = vmul.f32 %v48_v24, %v48_v24  ;;  %v56_v33 = vmul.f32 %v199_v25, %v199_v25 }
  0x97   :  { %v51_v34 = vsub.f32 %v18_v8, %v45_v30  ;;  %v205_v35 = vsub.f32 %v19_v9, %v46_v31  ;;  %v62_v36 = vsel %vm20_vm0, %v54_v32, 0.0  ;;  %v68_v37 = vsel %vm20_vm0, %v56_v33, 0.0 }
  0x98   :  { %66 = vadd.xlane.f32.xlu0 %v65_v29  ;;  %63 = vadd.xlane.f32.xlu1 %v62_v36 }
  0x99   :  { %v57_v38 = vmul.f32 %v51_v34, %v51_v34  ;;  %v58_v39 = vmul.f32 %v205_v35, %v205_v35 }
  0x9b   :  { %v71_v40 = vsel %vm20_vm0, %v57_v38, 0.0  ;;  %v74_v41 = vsel %vm27_vm1, %v58_v39, 0.0 }
  0x9c   :  { %69 = vadd.xlane.f32.xlu1 %v68_v37  ;;  %72 = vadd.xlane.f32.xlu0 %v71_v40 }
  0xa0   :  { %75 = vadd.xlane.f32.xlu1 %v74_v41 }
 0x11d   :  { %v61_v42 = vpop.xlane.xlu0 %60 }
 0x11e   :  { %v77_v43 = vmul.f32 0.03125, %v61_v42 }
 0x120   :  { %v83_v44 = vadd.f32 1e-05, %v77_v43 }
 0x121   :  { %v64_v45 = vpop.xlane.xlu1 %63  ;;  %v67_v46 = vpop.xlane.xlu0 %66 }
 0x122   :  { %139 = vrsqrt.f32 %v83_v44  ;;  %v78_v47 = vmul.f32 0.03125, %v64_v45  ;;  %v79_v48 = vmul.f32 0.03125, %v67_v46 }
 0x124   :  { %v84_v49 = vadd.f32 1e-05, %v78_v47  ;;  %v85_v50 = vadd.f32 1e-05, %v79_v48 }
 0x125   :  { %v70_v51 = vpop.xlane.xlu1 %69  ;;  %v73_v52 = vpop.xlane.xlu0 %72 }
 0x126   :  { %141 = vrsqrt.f32 %v84_v49  ;;  %v80_v53 = vmul.f32 0.03125, %v70_v51  ;;  %v81_v54 = vmul.f32 0.03125, %v73_v52 }
 0x127   :  { %143 = vrsqrt.f32 %v85_v50 }
 0x128   :  { %v86_v55 = vadd.f32 1e-05, %v80_v53  ;;  %v87_v56 = vadd.f32 1e-05, %v81_v54 }
 0x129   :  { %v76_v57 = vpop.xlane.xlu1 %75 }
 0x12a   :  { %145 = vrsqrt.f32 %v86_v55  ;;  %v82_v58 = vmul.f32 0.03125, %v76_v57 }
 0x12b   :  { %147 = vrsqrt.f32 %v87_v56 }
 0x12c   :  { %v88_v59 = vadd.f32 1e-05, %v82_v58 }
 0x12e   :  { %149 = vrsqrt.f32 %v88_v59 }
 0x12f   :  { %v140_v60 = vpop.eup %139 }
 0x130   :  { %v95_v62 = vmul.f32 %v140_v60, %v47_v16 }
 0x132   :  { %v108_v0 = vmul.f32 %v137_v61, %v95_v62 }
 0x133   :  { %v142_v1 = vpop.eup %141 }
 0x134   :  { %v144_v2 = vpop.eup %143  ;;  %v121_v3 = vadd.f32 %v138_v63, %v108_v0  ;;  %v96_v4 = vmul.f32 %v142_v1, %v48_v24 }
 0x135   :  { %v97_v5 = vmul.f32 %v144_v2, %v195_v17 }
 0x136   :  { %127 = vst.msk [vmem:[%s249_s3] sm:$0xff] %vm20_vm0, %v121_v3  ;;  %v109_v6 = vmul.f32 %v137_v61, %v96_v4 }
 0x137   :  { %v146_v7 = vpop.eup %145  ;;  %v110_v8 = vmul.f32 %v137_v61, %v97_v5 }
 0x138   :  { %v148_v9 = vpop.eup %147  ;;  %v122_v10 = vadd.f32 %v138_v63, %v109_v6  ;;  %v98_v11 = vmul.f32 %v146_v7, %v199_v25 }
 0x139   :  { %v123_v12 = vadd.f32 %v138_v63, %v110_v8  ;;  %v99_v13 = vmul.f32 %v148_v9, %v51_v34 }
 0x13a   :  { %128 = vst.msk [vmem:[%s249_s3 + $0x8] sm:$0xff] %vm20_vm0, %v122_v10  ;;  %v111_v14 = vmul.f32 %v137_v61, %v98_v11 }
 0x13b   :  { %v150_v15 = vpop.eup %149  ;;  %129 = vst.msk [vmem:[%s249_s3 + $0x10] sm:$0x1] %vm27_vm1, %v123_v12  ;;  %v112_v16 = vmul.f32 %v137_v61, %v99_v13 }
 0x13c   :  { %v124_v17 = vadd.f32 %v138_v63, %v111_v14  ;;  %v100_v18 = vmul.f32 %v150_v15, %v205_v35 }
 0x13d   :  { %v125_v19 = vadd.f32 %v138_v63, %v112_v16 }
 0x13e   :  { %130 = vst.msk [vmem:[%s249_s3 + $0x18] sm:$0xff] %vm20_vm0, %v124_v17  ;;  %v113_v20 = vmul.f32 %v137_v61, %v100_v18 }
 0x13f   :  { %131 = vst.msk [vmem:[%s249_s3 + $0x20] sm:$0xff] %vm20_vm0, %v125_v19 }
 0x140   :  { %v126_v21 = vadd.f32 %v138_v63, %v113_v20 }
 0x142   :  { %132 = vst.msk [vmem:[%s249_s3 + $0x28] sm:$0x1] %vm27_vm1, %v126_v21 }

// kernel: _lambda_.22
= control target key start
LH: loop header
LB: loop body
LE: loop exit
PB: predicated region body
PF: predicated region fallthrough
CT: control target
= control target key end

     0   :  { %v30_v0 = vlaneseq  ;;  %v1254_v1 = vmov 0.0   ;;  %v1255_v4 = vmov 1966171168   ;;  %vm1256_vm0 = vmmov 0   ;;  %s1540_s1 = inlined_call_operand.vmem [shape: f32[32,32], index: 1, kind: input, shape index: {}]   ;;  %s1541_s0 = inlined_call_operand.vmem [shape: f32[2,17,32], index: 0, kind: input, shape index: {}]   ;;  %s1542_s2 = inlined_call_operand.vmem [shape: f32[1,1,32], index: 2, kind: input, shape index: {}]   ;;  %s1543_s3 = inlined_call_operand.vmem [shape: f32[2,17,32], index: 3, kind: output, shape index: {}]  }
   0x1   :  { %1216 = vmatprep.subr.mxu0 %v1254_v1  ;;  %v253_v2 = vld [vmem:[%s1540_s1 + $0x18] sm:$0xff]  ;;  %v252_v3 = vld [vmem:[%s1540_s1 + $0x10] sm:$0xff]  ;;  %1239 = vmatprep.subr.mxu1 %v1254_v1  ;;  %v28_v5 = vunpack.c.l.s4 %v1255_v4  ;;  %v14_v6 = vld [vmem:[%s1541_s0] sm:$0xff]  ;;  %vm465_vm1 = vcmask 261120   ;;  %vm1186_vm2 = vcmask 253952  }
   0x2   :  { %1217 = vmatpush3.msra.mxu0 %v253_v2  ;;  %1243 = vmatpush3.msra.mxu1 %v253_v2  ;;  %v31_v7 = vshrl.u32 %v30_v0, 7  ;;  %v15_v8 = vld [vmem:[%s1541_s0 + $0x8] sm:$0xff]  ;;  %v26_v10 = vcombine.high %v14_v6, %v14_v6  ;;  %v1299_v12 = vld [vmem:[%s1541_s0 + $0x18] sm:$0xff]  ;;  %v18_v13 = vld [vmem:[%s1541_s0 + $0x20] sm:$0xff] }
   0x3   :  { %1218 = vmatprep.subr.mxu0 %v1254_v1  ;;  %v251_v9 = vld [vmem:[%s1540_s1 + $0x8] sm:$0xff]  ;;  %1240 = vmatprep.subr.mxu1 %v1254_v1  ;;  %v29_v11 = vunpack.c.0.s8 %v28_v5  ;;  %v75_v14 = vcombine.high %v15_v8, %v15_v8  ;;  %v138_v15 = vcombine.high %v1299_v12, %v1299_v12  ;;  %v250_v16 = vld [vmem:[%s1540_s1] sm:$0xff]  ;;  %v187_v18 = vcombine.high %v18_v13, %v18_v13  ;;  %v1195_v2 = vld.sshfl [vmem:[%s1541_s0 + $0x10] sm:$0x1 pattern:$0x75316420] }
   0x4   :  { %1219 = vmatpush3.msra.mxu0 %v252_v3  ;;  %1244 = vmatpush3.msra.mxu1 %v252_v3 }
   0x5   :  { %1220 = vmatprep.subr.mxu0 %v1254_v1  ;;  %1224 = vmatprep.mubr.msk.f32.mxu0 %vm1256_vm0, %v1254_v1  ;;  %v1312_v17 = vsub.s32 %v29_v11, %v31_v7 }
   0x6   :  { %1221 = vmatpush3.msra.mxu0 %v251_v9  ;;  %1241 = vmatprep.subr.mxu1 %v1254_v1 }
   0x7   :  { %1222 = vmatprep.subr.mxu0 %v1254_v1  ;;  %v33_v19 = vrot.slane %v14_v6, %v1312_v17  ;;  %v40_v20 = vrot.slane %v26_v10, %v1312_v17  ;;  %1245 = vmatpush3.msra.mxu1 %v251_v9  ;;  %v82_v21 = vrot.slane %v15_v8, %v1312_v17 }
   0x8   :  { %1223 = vmatpush3.msra.mxu0 %v250_v16  ;;  %1242 = vmatprep.subr.mxu1 %v1254_v1  ;;  %v89_v22 = vrot.slane %v75_v14, %v1312_v17  ;;  %v1322_v23 = vrot.slane %v138_v15, %v1312_v17  ;;  %v194_v24 = vrot.slane %v18_v13, %v1312_v17 }
   0x9   :  { %v41_v25 = vcombine.high %v33_v19, %v33_v19  ;;  %v42_v26 = vcombine.high %v40_v20, %v40_v20  ;;  %v49_v27 = vrot.slane %v33_v19, %v1312_v17  ;;  %v56_v28 = vrot.slane %v40_v20, %v1312_v17  ;;  %1246 = vmatpush3.msra.mxu1 %v250_v16 }
   0xa   :  { %1233 = vmatprep.mubr.msk.f32.mxu1 %vm1256_vm0, %v1254_v1  ;;  %v90_v29 = vcombine.high %v82_v21, %v82_v21  ;;  %v91_v30 = vcombine.high %v89_v22, %v89_v22  ;;  %v98_v31 = vrot.slane %v82_v21, %v1312_v17  ;;  %v105_v32 = vrot.slane %v89_v22, %v1312_v17  ;;  %v1196_v21 = vld.sshfl [vmem:[%s1541_s0 + $0x28] sm:$0x1 pattern:$0x75316420] }
   0xb   :  { %v63_v33 = vrot.slane %v41_v25, %v1312_v17  ;;  %v70_v34 = vrot.slane %v42_v26, %v1312_v17  ;;  %v154_v35 = vcombine.high %v1322_v23, %v1322_v23  ;;  %v201_v36 = vrot.slane %v187_v18, %v1312_v17 }
   0xc   :  { %v112_v37 = vrot.slane %v90_v29, %v1312_v17  ;;  %v119_v38 = vrot.slane %v91_v30, %v1312_v17  ;;  %v202_v39 = vcombine.high %v194_v24, %v194_v24  ;;  %v210_v40 = vrot.slane %v194_v24, %v1312_v17 }
   0xd   :  { %v254_v41 = vcombine.low %v49_v27, %v63_v33  ;;  %v1197_v42 = vcombine.high %v49_v27, %v63_v33  ;;  %v256_v43 = vcombine.low %v56_v28, %v70_v34  ;;  %v1198_v44 = vcombine.high %v56_v28, %v70_v34 }
   0xe   :  { %v303_v45 = vcombine.low %v98_v31, %v112_v37  ;;  %v1199_v46 = vcombine.high %v98_v31, %v112_v37  ;;  %v305_v47 = vcombine.low %v105_v32, %v119_v38  ;;  %v1200_v48 = vcombine.high %v105_v32, %v119_v38 }
   0xf   :  { %v264_v49 = vrot.slane %v254_v41, %v1312_v17  ;;  %v271_v50 = vrot.slane %v1197_v42, %v1312_v17  ;;  %v278_v51 = vrot.slane %v256_v43, %v1312_v17  ;;  %v285_v52 = vrot.slane %v1198_v44, %v1312_v17 }
  0x10   :  { %v313_v53 = vrot.slane %v303_v45, %v1312_v17  ;;  %v320_v54 = vrot.slane %v1199_v46, %v1312_v17  ;;  %v327_v55 = vrot.slane %v305_v47, %v1312_v17  ;;  %v334_v56 = vrot.slane %v1200_v48, %v1312_v17 }
  0x11   :  { %v286_v57 = vcombine.low %v264_v49, %v271_v50  ;;  %v287_v58 = vcombine.low %v278_v51, %v285_v52  ;;  %v182_v59 = vrot.slane %v154_v35, %v1312_v17  ;;  %v203_v60 = vcombine.high %v201_v36, %v201_v36 }
  0x12   :  { %v335_v61 = vcombine.low %v313_v53, %v320_v54  ;;  %v336_v62 = vcombine.low %v327_v55, %v334_v56  ;;  %v217_v63 = vrot.slane %v201_v36, %v1312_v17  ;;  %v224_v0 = vrot.slane %v202_v39, %v1312_v17  ;;  %v1206_v56 = vld [vmem:[%s1542_s2] ss:$0 sm:$0xff] }
  0x13   :  { %v294_v3 = vrot.slane %v286_v57, %v1312_v17  ;;  %v301_v4 = vrot.slane %v287_v58, %v1312_v17  ;;  %v186_v5 = vcombine.high %v182_v59, %v182_v59  ;;  %v231_v6 = vrot.slane %v203_v60, %v1312_v17 }
  0x14   :  { %v343_v7 = vrot.slane %v335_v61, %v1312_v17  ;;  %v350_v8 = vrot.slane %v336_v62, %v1312_v17  ;;  %v232_v9 = vcombine.high %v210_v40, %v210_v40  ;;  %v233_v10 = vcombine.high %v217_v63, %v217_v63 }
  0x15   :  { %v302_v11 = vcombine.low %v294_v3, %v301_v4  ;;  %v234_v13 = vcombine.high %v224_v0, %v224_v0  ;;  %v401_v14 = vcombine.low %v186_v5, %v210_v40  ;;  %v137_v15 = vrot.slane %v1195_v2, %v1312_v17 }
  0x16   :  { %v351_v16 = vcombine.low %v343_v7, %v350_v8  ;;  %v402_v18 = vcombine.low %v224_v0, %v232_v9  ;;  %v404_v19 = vcombine.low %v231_v6, %v233_v10  ;;  %v145_v20 = vrot.slane %v1299_v12, %v1312_v17 }
  0x17   :  { %1225 = vmatmul.mubr.msk.f32.vlgmr.msra.gmra.mxu0 %vm465_vm1, %v302_v11  ;;  %v403_v22 = vcombine.low %v234_v13, %v217_v63  ;;  %v411_v24 = vrot.slane %v401_v14, %v1312_v17  ;;  %v168_v25 = vrot.slane %v1322_v23, %v1312_v17  ;;  %v235_v26 = vcombine.high %v231_v6, %v231_v6 }
  0x18   :  { %1227 = vmatprep.mubr.msk.f32.mxu0 %vm1256_vm0, %v1254_v1  ;;  %v418_v27 = vrot.slane %v402_v18, %v1312_v17  ;;  %v432_v12 = vrot.slane %v404_v19, %v1312_v17  ;;  %v153_v28 = vcombine.high %v145_v20, %v145_v20  ;;  %v161_v29 = vrot.slane %v145_v20, %v1312_v17 }
  0x19   :  { %v425_v30 = vrot.slane %v403_v22, %v1312_v17  ;;  %v184_v31 = vcombine.high %v168_v25, %v168_v25  ;;  %v249_v32 = vrot.slane %v1196_v21, %v1312_v17  ;;  %v829_v57 = vcombine.high %v1206_v56, %v1206_v56 }
  0x1a   :  { %v433_v33 = vcombine.low %v411_v24, %v418_v27  ;;  %v175_v34 = vrot.slane %v153_v28, %v1312_v17  ;;  %v183_v23 = vcombine.high %v161_v29, %v161_v29  ;;  %v352_v35 = vcombine.low %v137_v15, %v161_v29 }
  0x1b   :  { %1228 = vmatmul.mubr.msk.f32.gmra.mxu0 %vm465_vm1, %v351_v16  ;;  %v434_v36 = vcombine.low %v425_v30, %v432_v12  ;;  %v355_v37 = vcombine.low %v182_v59, %v184_v31  ;;  %v450_v38 = vcombine.low %v235_v26, %v249_v32  ;;  %v836_v58 = vrot.slane %v1206_v56, %v1312_v17 }
  0x1c   :  { %v441_v39 = vrot.slane %v433_v33, %v1312_v17  ;;  %1230 = vmatprep.mubr.msk.f32.mxu0 %vm1256_vm0, %v1254_v1  ;;  %v185_v40 = vcombine.high %v175_v34, %v175_v34  ;;  %v353_v41 = vcombine.low %v175_v34, %v183_v23  ;;  %v362_v42 = vrot.slane %v352_v35, %v1312_v17 }
  0x1d   :  { %v448_v43 = vrot.slane %v434_v36, %v1312_v17  ;;  %v457_v44 = vrot.slane %v450_v38, %v1312_v17  ;;  %v383_v47 = vrot.slane %v355_v37, %v1312_v17  ;;  %v843_v59 = vrot.slane %v829_v57, %v1312_v17 }
  0x1e   :  { %v354_v45 = vcombine.low %v185_v40, %v168_v25  ;;  %v369_v46 = vrot.slane %v353_v41, %v1312_v17  ;;  %v844_v60 = vcombine.high %v836_v58, %v836_v58 }
  0x1f   :  { %v449_v48 = vcombine.low %v441_v39, %v448_v43  ;;  %v464_v51 = vrot.slane %v457_v44, %v1312_v17  ;;  %v845_v61 = vcombine.high %v843_v59, %v843_v59  ;;  %v1403_v63 = vrot.slane %v843_v59, %v1312_v17 }
  0x20   :  { %v376_v49 = vrot.slane %v354_v45, %v1312_v17  ;;  %v384_v50 = vcombine.low %v362_v42, %v369_v46  ;;  %v1406_v0 = vrot.slane %v844_v60, %v1312_v17 }
  0x21   :  { %1234 = vmatmul.mubr.msk.f32.vlgmr.msra.gmra.mxu1 %vm465_vm1, %v449_v48  ;;  %v1410_v4 = vrot.slane %v845_v61, %v1312_v17  ;;  %v1420_v10 = vcombine.high %v1403_v63, %v1403_v63 }
  0x22   :  { %v385_v52 = vcombine.low %v376_v49, %v383_v47  ;;  %v392_v53 = vrot.slane %v384_v50, %v1312_v17  ;;  %1236 = vmatprep.mubr.msk.f32.mxu1 %vm1256_vm0, %v1254_v1  ;;  %v1400_v1 = vrot.slane %v836_v58, %v1312_v17  ;;  %v1424_v11 = vcombine.high %v1406_v0, %v1406_v0 }
  0x23   :  { %v1430_v19 = vcombine.high %v1410_v4, %v1410_v4 }
  0x24   :  { %v399_v54 = vrot.slane %v385_v52, %v1312_v17  ;;  %v1416_v9 = vcombine.high %v1400_v1, %v1400_v1 }
  0x25   :  { %1237 = vmatmul.mubr.msk.f32.gmra.mxu1 %vm465_vm1, %v464_v51 }
  0x26   :  { %v400_v55 = vcombine.low %v392_v53, %v399_v54 }
  0x28   :  { %1231 = vmatmul.mubr.msk.f32.gmra.mxu0 %vm465_vm1, %v400_v55 }
  0xd7   :  { %v542_v62 = vpop.f32.mrf.mxu0 }
  0xd8   :  { %v571_v2 = vcombine.high %v542_v62, %v542_v62  ;;  %v578_v3 = vrot.slane %v542_v62, %v1312_v17 }
  0xd9   :  { %v1226_v5 = vpop.f32.mrf.mxu0 }
  0xda   :  { %v585_v6 = vrot.slane %v571_v2, %v1312_v17  ;;  %v586_v7 = vcombine.high %v578_v3, %v578_v3  ;;  %v594_v8 = vrot.slane %v578_v3, %v1312_v17 }
  0xdb   :  { %v547_v13 = vpop.f32.mrf.mxu0 }
  0xdc   :  { %v587_v14 = vcombine.high %v585_v6, %v585_v6  ;;  %v601_v15 = vrot.slane %v585_v6, %v1312_v17  ;;  %v608_v16 = vrot.slane %v586_v7, %v1312_v17  ;;  %v616_v18 = vcombine.high %v594_v8, %v594_v8 }
  0xdd   :  { %v886_v20 = vadd.f32 %v1400_v1, %v594_v8  ;;  %v620_v21 = vcombine.high %v547_v13, %v547_v13  ;;  %v627_v22 = vrot.slane %v547_v13, %v1312_v17  ;;  %v1229_v24 = vpop.f32.mrf.mxu0 }
  0xde   :  { %v615_v25 = vrot.slane %v587_v14, %v1312_v17  ;;  %v617_v26 = vcombine.high %v601_v15, %v601_v15  ;;  %v618_v27 = vcombine.high %v608_v16, %v608_v16  ;;  %v887_v12 = vadd.f32 %v1406_v0, %v608_v16 }
  0xdf   :  { %v888_v28 = vadd.f32 %v1416_v9, %v616_v18  ;;  %v890_v29 = vadd.f32 %v1403_v63, %v601_v15  ;;  %v634_v30 = vrot.slane %v620_v21, %v1312_v17  ;;  %v635_v31 = vcombine.high %v627_v22, %v627_v22 }
  0xe0   :  { %v619_v32 = vcombine.high %v615_v25, %v615_v25  ;;  %v889_v33 = vadd.f32 %v1424_v11, %v618_v27  ;;  %v891_v34 = vadd.f32 %v1410_v4, %v615_v25  ;;  %v892_v23 = vadd.f32 %v1420_v10, %v617_v26 }
  0xe1   :  { %v954_v35 = vcombine.low %v886_v20, %v887_v12  ;;  %v636_v36 = vcombine.high %v634_v30, %v634_v30  ;;  %v643_v37 = vrot.slane %v627_v22, %v1312_v17  ;;  %v650_v38 = vrot.slane %v634_v30, %v1312_v17  ;;  %v557_v39 = vpop.f32.mrf.mxu1 }
  0xe2   :  { %v893_v40 = vadd.f32 %v1430_v19, %v619_v32  ;;  %v955_v41 = vcombine.low %v888_v28, %v889_v33  ;;  %v956_v42 = vcombine.low %v890_v29, %v891_v34  ;;  %v657_v43 = vrot.slane %v635_v31, %v1312_v17 }
  0xe3   :  { %v964_v44 = vrot.slane %v954_v35, %v1312_v17  ;;  %v664_v45 = vrot.slane %v636_v36, %v1312_v17  ;;  %v665_v46 = vcombine.high %v643_v37, %v643_v37  ;;  %v666_v47 = vcombine.high %v650_v38, %v650_v38  ;;  %v1235_v48 = vpop.f32.mrf.mxu1 }
  0xe4   :  { %v957_v49 = vcombine.low %v892_v23, %v893_v40  ;;  %v971_v50 = vrot.slane %v955_v41, %v1312_v17  ;;  %v978_v51 = vrot.slane %v956_v42, %v1312_v17  ;;  %v667_v52 = vcombine.high %v657_v43, %v657_v43 }
  0xe5   :  { %v668_v53 = vcombine.high %v664_v45, %v664_v45  ;;  %v894_v54 = vadd.f32 %v1400_v1, %v643_v37  ;;  %v895_v55 = vadd.f32 %v1406_v0, %v657_v43  ;;  %v896_v56 = vadd.f32 %v1416_v9, %v665_v46  ;;  %v562_v57 = vpop.f32.mrf.mxu1 }
  0xe6   :  { %v985_v58 = vrot.slane %v957_v49, %v1312_v17  ;;  %v986_v59 = vcombine.low %v964_v44, %v971_v50  ;;  %v897_v60 = vadd.f32 %v1424_v11, %v667_v52  ;;  %v898_v61 = vadd.f32 %v1403_v63, %v650_v38 }
  0xe7   :  { %v899_v62 = vadd.f32 %v1410_v4, %v664_v45  ;;  %v900_v2 = vadd.f32 %v1420_v10, %v666_v47  ;;  %v901_v3 = vadd.f32 %v1430_v19, %v668_v53  ;;  %v1003_v5 = vcombine.low %v894_v54, %v895_v55  ;;  %v1238_v6 = vpop.f32.mrf.mxu1 }
  0xe8   :  { %v987_v7 = vcombine.low %v978_v51, %v985_v58  ;;  %v1004_v8 = vcombine.low %v896_v56, %v897_v60  ;;  %v718_v13 = vcombine.high %v557_v39, %v557_v39  ;;  %v552_v14 = vpop.f32.mrf.mxu0  ;;  %v994_v15 = vrot.slane %v986_v59, %v1312_v17 }
  0xe9   :  { %v1005_v16 = vcombine.low %v898_v61, %v899_v62  ;;  %v1006_v18 = vcombine.low %v900_v2, %v901_v3  ;;  %v725_v20 = vrot.slane %v557_v39, %v1312_v17  ;;  %v1013_v22 = vrot.slane %v1003_v5, %v1312_v17 }
  0xea   :  { %v1001_v21 = vrot.slane %v987_v7, %v1312_v17  ;;  %v1020_v24 = vrot.slane %v1004_v8, %v1312_v17  ;;  %v732_v25 = vrot.slane %v718_v13, %v1312_v17  ;;  %v1232_v26 = vpop.f32.mrf.mxu0  ;;  %v669_v36 = vcombine.high %v552_v14, %v552_v14 }
  0xeb   :  { %v1027_v27 = vrot.slane %v1005_v16, %v1312_v17  ;;  %v1034_v12 = vrot.slane %v1006_v18, %v1312_v17  ;;  %v733_v28 = vcombine.high %v725_v20, %v725_v20  ;;  %v741_v29 = vrot.slane %v725_v20, %v1312_v17 }
  0xec   :  { %v1002_v30 = vcombine.low %v994_v15, %v1001_v21  ;;  %v1035_v31 = vcombine.low %v1013_v22, %v1020_v24  ;;  %v734_v32 = vcombine.high %v732_v25, %v732_v25  ;;  %v748_v33 = vrot.slane %v732_v25, %v1312_v17 }
  0xed   :  { %v1036_v34 = vcombine.low %v1027_v27, %v1034_v12  ;;  %v755_v23 = vrot.slane %v733_v28, %v1312_v17  ;;  %v763_v35 = vcombine.high %v741_v29, %v741_v29  ;;  %v676_v47 = vrot.slane %v552_v14, %v1312_v17 }
  0xee   :  { %1184 = vst.msk [vmem:[%s1543_s3] sm:$0xff] %vm465_vm1, %v1002_v30  ;;  %v1043_v37 = vrot.slane %v1035_v31, %v1312_v17  ;;  %v762_v38 = vrot.slane %v734_v32, %v1312_v17  ;;  %v764_v39 = vcombine.high %v748_v33, %v748_v33  ;;  %v914_v40 = vadd.f32 %v1424_v11, %v748_v33 }
  0xef   :  { %v1050_v41 = vrot.slane %v1036_v34, %v1312_v17  ;;  %v765_v42 = vcombine.high %v755_v23, %v755_v23  ;;  %v911_v43 = vadd.f32 %v1400_v1, %v755_v23  ;;  %v912_v44 = vadd.f32 %v1406_v0, %v763_v35 }
  0xf0   :  { %v915_v45 = vadd.f32 %v1403_v63, %v762_v38  ;;  %v916_v46 = vadd.f32 %v1410_v4, %v764_v39  ;;  %v683_v51 = vrot.slane %v669_v36, %v1312_v17  ;;  %v766_v52 = vcombine.high %v762_v38, %v762_v38 }
  0xf1   :  { %v1051_v48 = vcombine.low %v1043_v37, %v1050_v41  ;;  %v913_v49 = vadd.f32 %v1416_v9, %v765_v42  ;;  %v1115_v50 = vcombine.low %v911_v43, %v912_v44  ;;  %v684_v54 = vcombine.high %v676_v47, %v676_v47 }
  0xf2   :  { %v1117_v53 = vcombine.low %v915_v45, %v916_v46  ;;  %v692_v55 = vrot.slane %v676_v47, %v1312_v17  ;;  %v685_v58 = vcombine.high %v683_v51, %v683_v51  ;;  %v699_v59 = vrot.slane %v683_v51, %v1312_v17 }
  0xf3   :  { %1185 = vst.msk [vmem:[%s1543_s3 + $0x8] sm:$0xff] %vm465_vm1, %v1051_v48  ;;  %v1116_v56 = vcombine.low %v913_v49, %v914_v40  ;;  %v773_v60 = vrot.slane %v562_v57, %v1312_v17  ;;  %v1125_v61 = vrot.slane %v1115_v50, %v1312_v17  ;;  %v706_v62 = vrot.slane %v684_v54, %v1312_v17 }
  0xf4   :  { %v714_v2 = vcombine.high %v692_v55, %v692_v55  ;;  %v902_v3 = vadd.f32 %v1400_v1, %v692_v55  ;;  %v713_v6 = vrot.slane %v685_v58, %v1312_v17  ;;  %v715_v7 = vcombine.high %v699_v59, %v699_v59 }
  0xf5   :  { %v1132_v5 = vrot.slane %v1116_v56, %v1312_v17  ;;  %v774_v8 = vcombine.high %v773_v60, %v773_v60  ;;  %v716_v13 = vcombine.high %v706_v62, %v706_v62  ;;  %v903_v14 = vadd.f32 %v1400_v1, %v706_v62 }
  0xf6   :  { %v904_v15 = vadd.f32 %v1406_v0, %v714_v2  ;;  %v1058_v57 = vrot.slane %v902_v3, %v1312_v17  ;;  %v717_v16 = vcombine.high %v713_v6, %v713_v6  ;;  %v906_v18 = vadd.f32 %v1424_v11, %v699_v59 }
  0xf7   :  { %v907_v20 = vadd.f32 %v1403_v63, %v713_v6  ;;  %v908_v21 = vadd.f32 %v1410_v4, %v715_v7  ;;  %v905_v22 = vadd.f32 %v1416_v9, %v716_v13  ;;  %v781_v26 = vrot.slane %v773_v60, %v1312_v17 }
  0xf8   :  { %v1065_v24 = vrot.slane %v1058_v57, %v1312_v17  ;;  %v1066_v25 = vcombine.low %v903_v14, %v904_v15  ;;  %v910_v27 = vadd.f32 %v1430_v19, %v741_v29  ;;  %v909_v0 = vadd.f32 %v1420_v10, %v717_v16 }
  0xf9   :  { %v1068_v12 = vcombine.low %v907_v20, %v908_v21  ;;  %v788_v28 = vrot.slane %v774_v8, %v1312_v17  ;;  %v1067_v30 = vcombine.low %v905_v22, %v906_v18  ;;  %v917_v63 = vadd.f32 %v1420_v10, %v766_v52 }
  0xfa   :  { %1187 = vst.msk [vmem:[%s1543_s3 + $0x10] sm:$0x1] %vm1186_vm2, %v1065_v24  ;;  %v918_v4 = vadd.f32 %v1430_v19, %v781_v26  ;;  %v1147_v9 = vcombine.low %v1125_v61, %v1132_v5  ;;  %v1069_v11 = vcombine.low %v909_v0, %v910_v27  ;;  %v1076_v29 = vrot.slane %v1066_v25, %v1312_v17 }
  0xfb   :  { %v919_v31 = vadd.f32 %v1400_v1, %v788_v28  ;;  %v1083_v32 = vrot.slane %v1067_v30, %v1312_v17  ;;  %v1139_v34 = vrot.slane %v1117_v53, %v1312_v17  ;;  %v1090_v23 = vrot.slane %v1068_v12, %v1312_v17 }
  0xfc   :  { %v1118_v33 = vcombine.low %v917_v63, %v918_v4  ;;  %v1097_v35 = vrot.slane %v1069_v11, %v1312_v17  ;;  %v1155_v1 = vrot.slane %v1147_v9, %v1312_v17 }
  0xfd   :  { %v1170_v36 = vrot.slane %v919_v31, %v1312_v17  ;;  %v1098_v10 = vcombine.low %v1076_v29, %v1083_v32 }
  0xfe   :  { %v1146_v19 = vrot.slane %v1118_v33, %v1312_v17  ;;  %v1099_v37 = vcombine.low %v1090_v23, %v1097_v35 }
  0xff   :  { %v1177_v38 = vrot.slane %v1170_v36, %v1312_v17  ;;  %v1106_v40 = vrot.slane %v1098_v10, %v1312_v17 }
 0x100   :  { %v1148_v39 = vcombine.low %v1139_v34, %v1146_v19  ;;  %v1113_v41 = vrot.slane %v1099_v37, %v1312_v17 }
 0x101   :  { %1190 = vst.msk [vmem:[%s1543_s3 + $0x28] sm:$0x1] %vm1186_vm2, %v1177_v38 }
 0x102   :  { %v1162_v42 = vrot.slane %v1148_v39, %v1312_v17  ;;  %v1114_v43 = vcombine.low %v1106_v40, %v1113_v41 }
 0x104   :  { %v1163_v44 = vcombine.low %v1155_v1, %v1162_v42  ;;  %1188 = vst.msk [vmem:[%s1543_s3 + $0x18] sm:$0xff] %vm465_vm1, %v1114_v43 }
 0x106   :  { %1189 = vst.msk [vmem:[%s1543_s3 + $0x20] sm:$0xff] %vm465_vm1, %v1163_v44 }

// kernel: _lambda_.20
= control target key start
LH: loop header
LB: loop body
LE: loop exit
PB: predicated region body
PF: predicated region fallthrough
CT: control target
= control target key end

     0   :  { %v30_v0 = vlaneseq  ;;  %v1353_v1 = vmov 0.0   ;;  %v1354_v4 = vmov 1966171168   ;;  %vm1355_vm0 = vmmov 0   ;;  %s1732_s1 = inlined_call_operand.vmem [shape: f32[64,32], index: 1, kind: input, shape index: {}]   ;;  %s1733_s0 = inlined_call_operand.vmem [shape: f32[2,17,64], index: 0, kind: input, shape index: {}]   ;;  %s1734_s2 = inlined_call_operand.vmem [shape: f32[1,17,32], index: 2, kind: input, shape index: {}]   ;;  %s1735_s3 = inlined_call_operand.vmem [shape: f32[2,17,32], index: 3, kind: output, shape index: {}]  }
   0x1   :  { %1297 = vmatprep.subr.mxu0 %v1353_v1  ;;  %v257_v2 = vld [vmem:[%s1732_s1 + $0x38] sm:$0xff]  ;;  %v256_v3 = vld [vmem:[%s1732_s1 + $0x30] sm:$0xff]  ;;  %1328 = vmatprep.subr.mxu1 %v1353_v1  ;;  %v28_v5 = vunpack.c.l.s4 %v1354_v4  ;;  %v255_v7 = vld [vmem:[%s1732_s1 + $0x28] sm:$0xff]  ;;  %vm469_vm1 = vcmask 523264   ;;  %vm1260_vm2 = vcmask 261120   ;;  %vm1263_vm3 = vcmask 253952  }
   0x2   :  { %1298 = vmatpush3.msra.mxu0 %v257_v2  ;;  %1336 = vmatpush3.msra.mxu1 %v257_v2  ;;  %v31_v6 = vshrl.u32 %v30_v0, 7  ;;  %v14_v8 = vld [vmem:[%s1733_s0] sm:$0xff]  ;;  %v15_v11 = vld [vmem:[%s1733_s0 + $0x8] sm:$0xff]  ;;  %v1398_v12 = vld [vmem:[%s1733_s0 + $0x18] sm:$0xff] }
   0x3   :  { %1299 = vmatprep.subr.mxu0 %v1353_v1  ;;  %1329 = vmatprep.subr.mxu1 %v1353_v1  ;;  %v29_v9 = vunpack.c.0.s8 %v28_v5  ;;  %v26_v10 = vcombine.high %v14_v8, %v14_v8  ;;  %v1403_v13 = vld [vmem:[%s1733_s0 + $0x20] sm:$0xff]  ;;  %v75_v16 = vcombine.high %v15_v11, %v15_v11  ;;  %v138_v17 = vcombine.high %v1398_v12, %v1398_v12  ;;  %v253_v19 = vld [vmem:[%s1732_s1 + $0x18] sm:$0xff]  ;;  %v252_v26 = vld [vmem:[%s1732_s1 + $0x10] sm:$0xff] }
   0x4   :  { %1300 = vmatpush3.msra.mxu0 %v256_v3  ;;  %1337 = vmatpush3.msra.mxu1 %v256_v3  ;;  %v254_v14 = vld [vmem:[%s1732_s1 + $0x20] sm:$0xff]  ;;  %v187_v18 = vcombine.high %v1403_v13, %v1403_v13  ;;  %v251_v33 = vld [vmem:[%s1732_s1 + $0x8] sm:$0xff]  ;;  %v1272_v5 = vld.sshfl [vmem:[%s1733_s0 + $0x10] sm:$0x1 pattern:$0x75316420] }
   0x5   :  { %1301 = vmatprep.subr.mxu0 %v1353_v1  ;;  %1330 = vmatprep.subr.mxu1 %v1353_v1  ;;  %v1410_v15 = vsub.s32 %v29_v9, %v31_v6  ;;  %v250_v40 = vld [vmem:[%s1732_s1] sm:$0xff] }
   0x6   :  { %1302 = vmatpush3.msra.mxu0 %v255_v7  ;;  %1338 = vmatpush3.msra.mxu1 %v255_v7 }
   0x7   :  { %1303 = vmatprep.subr.mxu0 %v1353_v1  ;;  %1331 = vmatprep.subr.mxu1 %v1353_v1  ;;  %v33_v20 = vrot.slane %v14_v8, %v1410_v15  ;;  %v40_v21 = vrot.slane %v26_v10, %v1410_v15  ;;  %v82_v22 = vrot.slane %v15_v11, %v1410_v15 }
   0x8   :  { %1304 = vmatpush3.msra.mxu0 %v254_v14  ;;  %1339 = vmatpush3.msra.mxu1 %v254_v14  ;;  %v89_v23 = vrot.slane %v75_v16, %v1410_v15  ;;  %v1426_v24 = vrot.slane %v138_v17, %v1410_v15  ;;  %v1430_v25 = vrot.slane %v1403_v13, %v1410_v15 }
   0x9   :  { %1305 = vmatprep.subr.mxu0 %v1353_v1  ;;  %1332 = vmatprep.subr.mxu1 %v1353_v1  ;;  %v41_v27 = vcombine.high %v33_v20, %v33_v20  ;;  %v42_v28 = vcombine.high %v40_v21, %v40_v21  ;;  %v49_v29 = vrot.slane %v33_v20, %v1410_v15 }
   0xa   :  { %1306 = vmatpush3.msra.mxu0 %v253_v19  ;;  %1340 = vmatpush3.msra.mxu1 %v253_v19  ;;  %v56_v30 = vrot.slane %v40_v21, %v1410_v15  ;;  %v90_v31 = vcombine.high %v82_v22, %v82_v22  ;;  %v91_v32 = vcombine.high %v89_v23, %v89_v23 }
   0xb   :  { %1307 = vmatprep.subr.mxu0 %v1353_v1  ;;  %1333 = vmatprep.subr.mxu1 %v1353_v1  ;;  %v63_v34 = vrot.slane %v41_v27, %v1410_v15  ;;  %v70_v35 = vrot.slane %v42_v28, %v1410_v15  ;;  %v98_v36 = vrot.slane %v82_v22, %v1410_v15 }
   0xc   :  { %1308 = vmatpush3.msra.mxu0 %v252_v26  ;;  %1341 = vmatpush3.msra.mxu1 %v252_v26  ;;  %v105_v37 = vrot.slane %v89_v23, %v1410_v15  ;;  %v112_v38 = vrot.slane %v90_v31, %v1410_v15  ;;  %v119_v39 = vrot.slane %v91_v32, %v1410_v15 }
   0xd   :  { %1309 = vmatprep.subr.mxu0 %v1353_v1  ;;  %1313 = vmatprep.mubr.msk.f32.mxu0 %vm1355_vm0, %v1353_v1  ;;  %v258_v41 = vcombine.low %v49_v29, %v63_v34  ;;  %v1274_v42 = vcombine.high %v49_v29, %v63_v34  ;;  %v260_v43 = vcombine.low %v56_v30, %v70_v35 }
   0xe   :  { %1310 = vmatpush3.msra.mxu0 %v251_v33  ;;  %1334 = vmatprep.subr.mxu1 %v1353_v1  ;;  %v1275_v44 = vcombine.high %v56_v30, %v70_v35  ;;  %v307_v45 = vcombine.low %v98_v36, %v112_v38  ;;  %v1276_v46 = vcombine.high %v98_v36, %v112_v38 }
   0xf   :  { %1311 = vmatprep.subr.mxu0 %v1353_v1  ;;  %v268_v47 = vrot.slane %v258_v41, %v1410_v15  ;;  %v275_v48 = vrot.slane %v1274_v42, %v1410_v15  ;;  %v282_v49 = vrot.slane %v260_v43, %v1410_v15  ;;  %1342 = vmatpush3.msra.mxu1 %v251_v33 }
  0x10   :  { %1312 = vmatpush3.msra.mxu0 %v250_v40  ;;  %v289_v50 = vrot.slane %v1275_v44, %v1410_v15  ;;  %1335 = vmatprep.subr.mxu1 %v1353_v1  ;;  %v309_v51 = vcombine.low %v105_v37, %v119_v39  ;;  %v1277_v52 = vcombine.high %v105_v37, %v119_v39 }
  0x11   :  { %v290_v53 = vcombine.low %v268_v47, %v275_v48  ;;  %1343 = vmatpush3.msra.mxu1 %v250_v40  ;;  %1322 = vmatprep.mubr.msk.f32.mxu1 %vm1355_vm0, %v1353_v1  ;;  %v317_v54 = vrot.slane %v307_v45, %v1410_v15  ;;  %v324_v55 = vrot.slane %v1276_v46, %v1410_v15 }
  0x12   :  { %v291_v56 = vcombine.low %v282_v49, %v289_v50  ;;  %v331_v57 = vrot.slane %v309_v51, %v1410_v15  ;;  %v338_v58 = vrot.slane %v1277_v52, %v1410_v15  ;;  %v154_v59 = vcombine.high %v1426_v24, %v1426_v24 }
  0x13   :  { %v298_v60 = vrot.slane %v290_v53, %v1410_v15  ;;  %v339_v61 = vcombine.low %v317_v54, %v324_v55  ;;  %v201_v62 = vrot.slane %v187_v18, %v1410_v15  ;;  %v202_v63 = vcombine.high %v1430_v25, %v1430_v25 }
  0x14   :  { %v305_v0 = vrot.slane %v291_v56, %v1410_v15  ;;  %v340_v2 = vcombine.low %v331_v57, %v338_v58  ;;  %v182_v3 = vrot.slane %v154_v59, %v1410_v15  ;;  %v210_v4 = vrot.slane %v1430_v25, %v1410_v15  ;;  %v1273_v25 = vld.sshfl [vmem:[%s1733_s0 + $0x28] sm:$0x1 pattern:$0x75316420] }
  0x15   :  { %v347_v6 = vrot.slane %v339_v61, %v1410_v15  ;;  %v203_v7 = vcombine.high %v201_v62, %v201_v62  ;;  %v217_v8 = vrot.slane %v201_v62, %v1410_v15  ;;  %v224_v9 = vrot.slane %v202_v63, %v1410_v15  ;;  %v828_v62 = vld [vmem:[%s1734_s2 + $0x8] sm:$0xff] }
  0x16   :  { %v306_v10 = vcombine.low %v298_v60, %v305_v0  ;;  %v354_v11 = vrot.slane %v340_v2, %v1410_v15  ;;  %v186_v13 = vcombine.high %v182_v3, %v182_v3  ;;  %v232_v14 = vcombine.high %v210_v4, %v210_v4  ;;  %v827_v60 = vld [vmem:[%s1734_s2] sm:$0xff] }
  0x17   :  { %v231_v16 = vrot.slane %v203_v7, %v1410_v15  ;;  %v233_v17 = vcombine.high %v217_v8, %v217_v8  ;;  %v234_v18 = vcombine.high %v224_v9, %v224_v9  ;;  %v137_v19 = vrot.slane %v1272_v5, %v1410_v15 }
  0x18   :  { %1314 = vmatmul.mubr.msk.f32.vlgmr.msra.gmra.mxu0 %vm469_vm1, %v306_v10  ;;  %v355_v20 = vcombine.low %v347_v6, %v354_v11  ;;  %v405_v21 = vcombine.low %v186_v13, %v210_v4  ;;  %v406_v22 = vcombine.low %v224_v9, %v232_v14  ;;  %v145_v23 = vrot.slane %v1398_v12, %v1410_v15 }
  0x19   :  { %1316 = vmatprep.mubr.msk.f32.mxu0 %vm1355_vm0, %v1353_v1  ;;  %v407_v26 = vcombine.low %v234_v18, %v217_v8  ;;  %v408_v27 = vcombine.low %v231_v16, %v233_v17  ;;  %v168_v28 = vrot.slane %v1426_v24, %v1410_v15  ;;  %v235_v29 = vcombine.high %v231_v16, %v231_v16 }
  0x1a   :  { %v415_v30 = vrot.slane %v405_v21, %v1410_v15  ;;  %v422_v31 = vrot.slane %v406_v22, %v1410_v15  ;;  %v153_v32 = vcombine.high %v145_v23, %v145_v23  ;;  %v161_v12 = vrot.slane %v145_v23, %v1410_v15 }
  0x1b   :  { %v429_v33 = vrot.slane %v407_v26, %v1410_v15  ;;  %v436_v34 = vrot.slane %v408_v27, %v1410_v15  ;;  %v184_v35 = vcombine.high %v168_v28, %v168_v28  ;;  %v249_v36 = vrot.slane %v1273_v25, %v1410_v15 }
  0x1c   :  { %1317 = vmatmul.mubr.msk.f32.gmra.mxu0 %vm469_vm1, %v355_v20  ;;  %v437_v37 = vcombine.low %v415_v30, %v422_v31  ;;  %v175_v24 = vrot.slane %v153_v32, %v1410_v15  ;;  %v183_v38 = vcombine.high %v161_v12, %v161_v12  ;;  %v356_v39 = vcombine.low %v137_v19, %v161_v12 }
  0x1d   :  { %v438_v40 = vcombine.low %v429_v33, %v436_v34  ;;  %1319 = vmatprep.mubr.msk.f32.mxu0 %vm1355_vm0, %v1353_v1  ;;  %v359_v41 = vcombine.low %v182_v3, %v184_v35  ;;  %v454_v42 = vcombine.low %v235_v29, %v249_v36  ;;  %v833_v61 = vcombine.high %v827_v60, %v827_v60 }
  0x1e   :  { %v445_v43 = vrot.slane %v437_v37, %v1410_v15  ;;  %v185_v44 = vcombine.high %v175_v24, %v175_v24  ;;  %v357_v45 = vcombine.low %v175_v24, %v183_v38  ;;  %v366_v46 = vrot.slane %v356_v39, %v1410_v15 }
  0x1f   :  { %v452_v47 = vrot.slane %v438_v40, %v1410_v15  ;;  %v461_v48 = vrot.slane %v454_v42, %v1410_v15  ;;  %v387_v51 = vrot.slane %v359_v41, %v1410_v15  ;;  %v840_v63 = vrot.slane %v827_v60, %v1410_v15 }
  0x20   :  { %v358_v49 = vcombine.low %v185_v44, %v168_v28  ;;  %v373_v50 = vrot.slane %v357_v45, %v1410_v15  ;;  %v882_v0 = vcombine.high %v828_v62, %v828_v62  ;;  %v889_v4 = vrot.slane %v828_v62, %v1410_v15 }
  0x21   :  { %v453_v52 = vcombine.low %v445_v43, %v452_v47  ;;  %v468_v55 = vrot.slane %v461_v48, %v1410_v15  ;;  %v848_v2 = vcombine.high %v840_v63, %v840_v63  ;;  %v1536_v5 = vrot.slane %v840_v63, %v1410_v15 }
  0x22   :  { %v380_v53 = vrot.slane %v358_v49, %v1410_v15  ;;  %v388_v54 = vcombine.low %v366_v46, %v373_v50  ;;  %v896_v6 = vrot.slane %v882_v0, %v1410_v15  ;;  %v897_v11 = vcombine.high %v889_v4, %v889_v4  ;;  %v1283_v50 = vld.sshfl [vmem:[%s1734_s2 + $0x10] sm:$0x1 pattern:$0x75316420] }
  0x23   :  { %1323 = vmatmul.mubr.msk.f32.vlgmr.msra.gmra.mxu1 %vm469_vm1, %v453_v52  ;;  %v1543_v9 = vrot.slane %v848_v2, %v1410_v15  ;;  %v1549_v13 = vrot.slane %v889_v4, %v1410_v15  ;;  %v1554_v17 = vcombine.high %v1536_v5, %v1536_v5  ;;  %v1612_v63 = vrot.slane %v1283_v50, %v1410_v15 }
  0x24   :  { %v389_v56 = vcombine.low %v380_v53, %v387_v51  ;;  %v396_v57 = vrot.slane %v388_v54, %v1410_v15  ;;  %1325 = vmatprep.mubr.msk.f32.mxu1 %vm1355_vm0, %v1353_v1  ;;  %v847_v1 = vrot.slane %v833_v61, %v1410_v15  ;;  %v898_v19 = vcombine.high %v896_v6, %v896_v6 }
  0x25   :  { %v1557_v20 = vrot.slane %v896_v6, %v1410_v15  ;;  %v1567_v26 = vcombine.high %v1543_v9, %v1543_v9  ;;  %v1570_v28 = vrot.slane %v897_v11, %v1410_v15  ;;  %v1574_v29 = vcombine.high %v1549_v13, %v1549_v13 }
  0x26   :  { %v403_v58 = vrot.slane %v389_v56, %v1410_v15  ;;  %v849_v3 = vcombine.high %v847_v1, %v847_v1  ;;  %v1540_v7 = vrot.slane %v847_v1, %v1410_v15  ;;  %v1584_v36 = vrot.slane %v898_v19, %v1410_v15 }
  0x27   :  { %1326 = vmatmul.mubr.msk.f32.gmra.mxu1 %vm469_vm1, %v468_v55  ;;  %v1588_v37 = vcombine.high %v1557_v20, %v1557_v20 }
  0x28   :  { %v404_v59 = vcombine.low %v396_v57, %v403_v58  ;;  %v1546_v10 = vrot.slane %v849_v3, %v1410_v15  ;;  %v1563_v25 = vcombine.high %v1540_v7, %v1540_v7  ;;  %v929_v58 = vcombine.high %v1570_v28, %v1570_v28 }
  0x2a   :  { %1320 = vmatmul.mubr.msk.f32.gmra.mxu0 %vm469_vm1, %v404_v59  ;;  %v1578_v30 = vcombine.high %v1546_v10, %v1546_v10 }
  0xd8   :  { %v546_v8 = vpop.f32.mrf.mxu0 }
  0xd9   :  { %v575_v14 = vcombine.high %v546_v8, %v546_v8  ;;  %v582_v16 = vrot.slane %v546_v8, %v1410_v15 }
  0xda   :  { %v1315_v18 = vpop.f32.mrf.mxu0 }
  0xdb   :  { %v589_v21 = vrot.slane %v575_v14, %v1410_v15  ;;  %v590_v22 = vcombine.high %v582_v16, %v582_v16  ;;  %v598_v23 = vrot.slane %v582_v16, %v1410_v15  ;;  %v1620_v14 = vcombine.high %v1584_v36, %v1584_v36 }
  0xdc   :  { %v551_v27 = vpop.f32.mrf.mxu0 }
  0xdd   :  { %v591_v31 = vcombine.high %v589_v21, %v589_v21  ;;  %v605_v32 = vrot.slane %v589_v21, %v1410_v15  ;;  %v612_v12 = vrot.slane %v590_v22, %v1410_v15  ;;  %v620_v33 = vcombine.high %v598_v23, %v598_v23 }
  0xde   :  { %v624_v34 = vcombine.high %v551_v27, %v551_v27  ;;  %v631_v35 = vrot.slane %v551_v27, %v1410_v15  ;;  %v1318_v24 = vpop.f32.mrf.mxu0  ;;  %v962_v40 = vadd.f32 %v1536_v5, %v598_v23 }
  0xdf   :  { %v619_v38 = vrot.slane %v591_v31, %v1410_v15  ;;  %v622_v39 = vcombine.high %v612_v12, %v612_v12  ;;  %v963_v41 = vadd.f32 %v1543_v9, %v612_v12  ;;  %v621_v42 = vcombine.high %v605_v32, %v605_v32 }
  0xe0   :  { %v964_v43 = vadd.f32 %v1554_v17, %v620_v33  ;;  %v638_v44 = vrot.slane %v624_v34, %v1410_v15  ;;  %v639_v45 = vcombine.high %v631_v35, %v631_v35  ;;  %v966_v48 = vadd.f32 %v1540_v7, %v605_v32 }
  0xe1   :  { %v623_v46 = vcombine.high %v619_v38, %v619_v38  ;;  %v965_v47 = vadd.f32 %v1567_v26, %v622_v39  ;;  %v967_v49 = vadd.f32 %v1546_v10, %v619_v38  ;;  %v1030_v51 = vcombine.low %v962_v40, %v963_v41 }
  0xe2   :  { %v640_v52 = vcombine.high %v638_v44, %v638_v44  ;;  %v647_v53 = vrot.slane %v631_v35, %v1410_v15  ;;  %v654_v54 = vrot.slane %v638_v44, %v1410_v15  ;;  %v661_v57 = vrot.slane %v639_v45, %v1410_v15 }
  0xe3   :  { %v1031_v55 = vcombine.low %v964_v43, %v965_v47  ;;  %v1032_v56 = vcombine.low %v966_v48, %v967_v49  ;;  %v561_v59 = vpop.f32.mrf.mxu1  ;;  %v1040_v60 = vrot.slane %v1030_v51, %v1410_v15  ;;  %v969_v62 = vadd.f32 %v1578_v30, %v623_v46 }
  0xe4   :  { %v1608_v61 = vrot.slane %v640_v52, %v1410_v15  ;;  %v669_v0 = vcombine.high %v647_v53, %v647_v53  ;;  %v670_v2 = vcombine.high %v654_v54, %v654_v54  ;;  %v671_v3 = vcombine.high %v661_v57, %v661_v57 }
  0xe5   :  { %v1047_v1 = vrot.slane %v1031_v55, %v1410_v15  ;;  %v1324_v4 = vpop.f32.mrf.mxu1  ;;  %v968_v6 = vadd.f32 %v1563_v25, %v621_v42  ;;  %v1054_v8 = vrot.slane %v1032_v56, %v1410_v15  ;;  %v971_v11 = vadd.f32 %v1570_v28, %v661_v57 }
  0xe6   :  { %v970_v18 = vadd.f32 %v1549_v13, %v647_v53  ;;  %v973_v19 = vadd.f32 %v929_v58, %v671_v3  ;;  %v975_v21 = vadd.f32 %v1584_v36, %v1608_v61  ;;  %v672_v23 = vcombine.high %v1608_v61, %v1608_v61 }
  0xe7   :  { %v1062_v16 = vcombine.low %v1040_v60, %v1047_v1  ;;  %v566_v22 = vpop.f32.mrf.mxu1  ;;  %v722_v27 = vcombine.high %v561_v59, %v561_v59  ;;  %v729_v31 = vrot.slane %v561_v59, %v1410_v15  ;;  %v1033_v32 = vcombine.low %v968_v6, %v969_v62 }
  0xe8   :  { %v972_v12 = vadd.f32 %v1574_v29, %v669_v0  ;;  %v974_v33 = vadd.f32 %v1557_v20, %v654_v54  ;;  %v1631_v34 = vadd.f32 %v1588_v37, %v670_v2  ;;  %v1079_v35 = vcombine.low %v970_v18, %v971_v11 }
  0xe9   :  { %v1327_v24 = vpop.f32.mrf.mxu1  ;;  %v1070_v38 = vrot.slane %v1062_v16, %v1410_v15  ;;  %v736_v39 = vrot.slane %v722_v27, %v1410_v15  ;;  %v737_v40 = vcombine.high %v729_v31, %v729_v31  ;;  %v745_v41 = vrot.slane %v729_v31, %v1410_v15 }
  0xea   :  { %v556_v42 = vpop.f32.mrf.mxu0  ;;  %v1080_v43 = vcombine.low %v972_v12, %v973_v19  ;;  %v1081_v44 = vcombine.low %v974_v33, %v975_v21  ;;  %v1061_v45 = vrot.slane %v1033_v32, %v1410_v15  ;;  %v1638_v46 = vrot.slane %v566_v22, %v1410_v15 }
  0xeb   :  { %v738_v47 = vcombine.high %v736_v39, %v736_v39  ;;  %v752_v48 = vrot.slane %v736_v39, %v1410_v15  ;;  %v759_v49 = vrot.slane %v737_v40, %v1410_v15  ;;  %v767_v50 = vcombine.high %v745_v41, %v745_v41 }
  0xec   :  { %v1321_v51 = vpop.f32.mrf.mxu0  ;;  %v1643_v52 = vrot.slane %v1079_v35, %v1410_v15  ;;  %v1063_v53 = vcombine.low %v1054_v8, %v1061_v45  ;;  %v673_v54 = vcombine.high %v556_v42, %v556_v42  ;;  %v680_v55 = vrot.slane %v556_v42, %v1410_v15 }
  0xed   :  { %v766_v56 = vrot.slane %v738_v47, %v1410_v15  ;;  %v768_v57 = vcombine.high %v752_v48, %v752_v48  ;;  %v769_v59 = vcombine.high %v759_v49, %v759_v49  ;;  %v987_v60 = vadd.f32 %v1549_v13, %v759_v49 }
  0xee   :  { %v1649_v62 = vrot.slane %v1080_v43, %v1410_v15  ;;  %v988_v1 = vadd.f32 %v1570_v28, %v767_v50  ;;  %v990_v0 = vadd.f32 %v929_v58, %v752_v48  ;;  %v1077_v2 = vrot.slane %v1063_v53, %v1410_v15 }
  0xef   :  { %v1654_v3 = vrot.slane %v1081_v44, %v1410_v15  ;;  %v989_v4 = vadd.f32 %v1574_v29, %v769_v59  ;;  %v991_v6 = vadd.f32 %v1557_v20, %v766_v56  ;;  %v992_v8 = vadd.f32 %v1584_v36, %v768_v57 }
  0xf0   :  { %v1078_v11 = vcombine.low %v1070_v38, %v1077_v2  ;;  %v1191_v13 = vcombine.low %v987_v60, %v988_v1  ;;  %v687_v16 = vrot.slane %v673_v54, %v1410_v15  ;;  %v688_v18 = vcombine.high %v680_v55, %v680_v55 }
  0xf1   :  { %v770_v19 = vcombine.high %v766_v56, %v766_v56  ;;  %v986_v28 = vadd.f32 %v1578_v30, %v745_v41  ;;  %v1192_v58 = vcombine.low %v989_v4, %v990_v0  ;;  %v696_v21 = vrot.slane %v680_v55, %v1410_v15 }
  0xf2   :  { %v1193_v22 = vcombine.low %v991_v6, %v992_v8  ;;  %1261 = vst.msk [vmem:[%s1735_s3] sm:$0xff] %vm1260_vm2, %v1078_v11  ;;  %v689_v20 = vcombine.high %v687_v16, %v687_v16  ;;  %v703_v29 = vrot.slane %v687_v16, %v1410_v15  ;;  %v710_v36 = vrot.slane %v688_v18, %v1410_v15 }
  0xf3   :  { %v1201_v27 = vrot.slane %v1191_v13, %v1410_v15  ;;  %v718_v31 = vcombine.high %v696_v21, %v696_v21  ;;  %v978_v32 = vadd.f32 %v1612_v63, %v696_v21  ;;  %v778_v30 = vcombine.high %v1638_v46, %v1638_v46 }
  0xf4   :  { %v717_v12 = vrot.slane %v689_v20, %v1410_v15  ;;  %v719_v33 = vcombine.high %v703_v29, %v703_v29  ;;  %v720_v35 = vcombine.high %v710_v36, %v710_v36  ;;  %v979_v24 = vadd.f32 %v1536_v5, %v710_v36 }
  0xf5   :  { %v980_v38 = vadd.f32 %v1543_v9, %v718_v31  ;;  %v982_v39 = vadd.f32 %v1567_v26, %v703_v29  ;;  %v1134_v40 = vrot.slane %v978_v32, %v1410_v15  ;;  %v785_v41 = vrot.slane %v1638_v46, %v1410_v15 }
  0xf6   :  { %v721_v42 = vcombine.high %v717_v12, %v717_v12  ;;  %v981_v43 = vadd.f32 %v1554_v17, %v720_v35  ;;  %v983_v44 = vadd.f32 %v1540_v7, %v717_v12  ;;  %v984_v45 = vadd.f32 %v1546_v10, %v719_v33 }
  0xf7   :  { %v1208_v47 = vrot.slane %v1192_v58, %v1410_v15  ;;  %v1141_v5 = vrot.slane %v1134_v40, %v1410_v15  ;;  %v1142_v48 = vcombine.low %v979_v24, %v980_v38  ;;  %v792_v9 = vrot.slane %v778_v30, %v1410_v15 }
  0xf8   :  { %v985_v26 = vadd.f32 %v1563_v25, %v721_v42  ;;  %v1143_v49 = vcombine.low %v981_v43, %v982_v39  ;;  %v1144_v50 = vcombine.low %v983_v44, %v984_v45  ;;  %v977_v17 = vadd.f32 %v1620_v14, %v672_v23 }
  0xf9   :  { %v1111_v7 = vcombine.low %v1643_v52, %v1649_v62  ;;  %1264 = vst.msk [vmem:[%s1735_s3 + $0x10] sm:$0x1] %vm1263_vm3, %v1141_v5  ;;  %v993_v10 = vadd.f32 %v1588_v37, %v770_v19  ;;  %v994_v46 = vadd.f32 %v1620_v14, %v785_v41  ;;  %v995_v25 = vadd.f32 %v1612_v63, %v792_v9 }
  0xfa   :  { %v1145_v51 = vcombine.low %v985_v26, %v986_v28  ;;  %v1152_v53 = vrot.slane %v1142_v48, %v1410_v15  ;;  %v1159_v61 = vrot.slane %v1143_v49, %v1410_v15  ;;  %v1082_v23 = vcombine.low %v1631_v34, %v977_v17 }
  0xfb   :  { %v1223_v54 = vcombine.low %v1201_v27, %v1208_v47  ;;  %v1194_v52 = vcombine.low %v993_v10, %v994_v46  ;;  %v1215_v55 = vrot.slane %v1193_v22, %v1410_v15  ;;  %v1246_v56 = vrot.slane %v995_v25, %v1410_v15 }
  0xfc   :  { %v1166_v57 = vrot.slane %v1144_v50, %v1410_v15  ;;  %v1173_v37 = vrot.slane %v1145_v51, %v1410_v15  ;;  %v1174_v14 = vcombine.low %v1152_v53, %v1159_v61  ;;  %v1110_v63 = vrot.slane %v1082_v23, %v1410_v15 }
  0xfd   :  { %v1222_v59 = vrot.slane %v1194_v52, %v1410_v15  ;;  %v1253_v60 = vrot.slane %v1246_v56, %v1410_v15  ;;  %v1231_v1 = vrot.slane %v1223_v54, %v1410_v15  ;;  %v1119_v2 = vrot.slane %v1111_v7, %v1410_v15 }
  0xfe   :  { %v1175_v62 = vcombine.low %v1166_v57, %v1173_v37  ;;  %v1112_v34 = vcombine.low %v1654_v3, %v1110_v63  ;;  %v1182_v4 = vrot.slane %v1174_v14, %v1410_v15 }
  0xff   :  { %v1224_v0 = vcombine.low %v1215_v55, %v1222_v59  ;;  %1267 = vst.msk [vmem:[%s1735_s3 + $0x28] sm:$0x1] %vm1263_vm3, %v1253_v60 }
 0x100   :  { %v1189_v6 = vrot.slane %v1175_v62, %v1410_v15  ;;  %v1126_v8 = vrot.slane %v1112_v34, %v1410_v15 }
 0x101   :  { %v1238_v11 = vrot.slane %v1224_v0, %v1410_v15 }
 0x102   :  { %v1190_v13 = vcombine.low %v1182_v4, %v1189_v6  ;;  %v1127_v3 = vcombine.low %v1119_v2, %v1126_v8 }
 0x103   :  { %v1239_v16 = vcombine.low %v1231_v1, %v1238_v11 }
 0x104   :  { %1265 = vst.msk [vmem:[%s1735_s3 + $0x18] sm:$0xff] %vm1260_vm2, %v1190_v13  ;;  %1262 = vst.msk [vmem:[%s1735_s3 + $0x8] sm:$0xff] %vm1260_vm2, %v1127_v3 }
 0x105   :  { %1266 = vst.msk [vmem:[%s1735_s3 + $0x20] sm:$0xff] %vm1260_vm2, %v1239_v16 }

// kernel: _lambda_.25
= control target key start
LH: loop header
LB: loop body
LE: loop exit
PB: predicated region body
PF: predicated region fallthrough
CT: control target
= control target key end

     0   :  { %vm32_vm0 = vcmask 130048   ;;  %v1272_v0 = vmov 0.0   ;;  %vm1273_vm1 = vmmov 0   ;;  %vm235_vm2 = vcmask 138240   ;;  %s1658_s1 = inlined_call_operand.vmem [shape: f32[2,17,32], index: 1, kind: input, shape index: {}]   ;;  %s1659_s0 = inlined_call_operand.vmem [shape: f32[2,17,32], index: 0, kind: input, shape index: {}]   ;;  %s1660_s2 = inlined_call_operand.vmem [shape: f32[2,17,32], index: 2, kind: input, shape index: {}]   ;;  %s1661_s3 = inlined_call_operand.vmem [shape: f32[2,17,32], index: 3, kind: output, shape index: {}]  }
   0x1   :  { %1100 = vmatprep.subr.mxu0 %v1272_v0  ;;  %v1300_v1 = vld [vmem:[%s1658_s1 + $0x10] sm:$0x1]  ;;  %1115 = vmatprep.subr.mxu1 %v1272_v0  ;;  %v1306_v2 = vld [vmem:[%s1658_s1 + $0x28] sm:$0x1]  ;;  %v1322_v4 = vld [vmem:[%s1658_s1 + $0x20] sm:$0xff]  ;;  %vm242_vm3 = vcmask 131072  }
   0x2   :  { %1101 = vmatpush3.xpose.msk.msra.mxu0 %vm32_vm0, %v1300_v1  ;;  %1116 = vmatpush3.xpose.msk.msra.mxu1 %vm32_vm0, %v1306_v2  ;;  %v1316_v3 = vld [vmem:[%s1658_s1 + $0x8] sm:$0xff]  ;;  %v1336_v5 = vld [vmem:[%s1658_s1] sm:$0xff]  ;;  %v1342_v6 = vld [vmem:[%s1658_s1 + $0x18] sm:$0xff]  ;;  %vm312_vm4 = vcmask 1040384   ;;  %vm1000_vm5 = vcmask 261120   ;;  %vm1003_vm6 = vcmask 253952  }
   0x3   :  { %1102 = vmatprep.subr.mxu0 %v1272_v0  ;;  %1117 = vmatprep.subr.mxu1 %v1272_v0  ;;  %v1351_v7 = vld [vmem:[%s1659_s0] sm:$0xff]  ;;  %v1356_v8 = vld [vmem:[%s1659_s0 + $0x18] sm:$0xff]  ;;  %v1369_v9 = vld [vmem:[%s1659_s0 + $0x8] sm:$0xff] }
   0x4   :  { %1106 = vmatprep.mubr.msk.f32.mxu0 %vm1273_vm1, %v1272_v0  ;;  %1121 = vmatprep.mubr.msk.f32.mxu1 %vm1273_vm1, %v1272_v0  ;;  %v1376_v10 = vld [vmem:[%s1659_s0 + $0x20] sm:$0xff]  ;;  %v1387_v11 = vld [vmem:[%s1659_s0 + $0x10] sm:$0x1]  ;;  %v1394_v12 = vld [vmem:[%s1659_s0 + $0x28] sm:$0x1]  ;;  %s1274_s0 = smov 112  }
   0x5   :  { %v1444_v62 = vld [vmem:[%s1660_s2 + $0x10] sm:$0x1]  ;;  %v1452_v63 = vld [vmem:[%s1660_s2 + $0x8] sm:$0xff] }
   0x6   :  { %1103 = vmatpush3.xpose.msk.msra.mxu0 %vm32_vm0, %v1316_v3  ;;  %1118 = vmatpush3.xpose.msk.msra.mxu1 %vm32_vm0, %v1322_v4 }
   0x7   :  { %1104 = vmatprep.subr.mxu0 %v1272_v0  ;;  %1119 = vmatprep.subr.mxu1 %v1272_v0 }
   0xa   :  { %1105 = vmatpush3.xpose.msk.msra.mxu0 %vm32_vm0, %v1336_v5  ;;  %1120 = vmatpush3.xpose.msk.msra.mxu1 %vm32_vm0, %v1342_v6 }
   0xb   :  { %1130 = vmatprep.subr.mxu0 %v1272_v0  ;;  %1145 = vmatprep.subr.mxu1 %v1272_v0 }
   0xd   :  { %1107 = vmatmul.mubr.msk.f32.vlgmr.msra.gmra.mxu0 %vm32_vm0, %v1351_v7  ;;  %1122 = vmatmul.mubr.msk.f32.vlgmr.msra.gmra.mxu1 %vm32_vm0, %v1356_v8 }
   0xe   :  { %1109 = vmatprep.mubr.msk.f32.mxu0 %vm1273_vm1, %v1272_v0  ;;  %1124 = vmatprep.mubr.msk.f32.mxu1 %vm1273_vm1, %v1272_v0 }
   0xf   :  { %1131 = vmatpush3.msk.msra.mxu0 %vm312_vm4, %v1444_v62 }
  0x10   :  { %1132 = vmatprep.subr.mxu0 %v1272_v0 }
  0x11   :  { %1110 = vmatmul.mubr.msk.f32.gmra.mxu0 %vm32_vm0, %v1369_v9  ;;  %1125 = vmatmul.mubr.msk.f32.gmra.mxu1 %vm32_vm0, %v1376_v10 }
  0x12   :  { %1112 = vmatprep.mubr.msk.f32.mxu0 %vm1273_vm1, %v1272_v0  ;;  %1127 = vmatprep.mubr.msk.f32.mxu1 %vm1273_vm1, %v1272_v0 }
  0x13   :  { %1133 = vmatpush3.msra.mxu0 %v1452_v63 }
  0x14   :  { %1134 = vmatprep.subr.mxu0 %v1272_v0 }
  0x15   :  { %1113 = vmatmul.mubr.msk.f32.gmra.mxu0 %vm32_vm0, %v1387_v11  ;;  %1128 = vmatmul.mubr.msk.f32.gmra.mxu1 %vm32_vm0, %v1394_v12 }
  0x16   :  { %1136 = vmatprep.mubr.msk.f32.mxu0 %vm1273_vm1, %v1272_v0  ;;  %1151 = vmatprep.mubr.msk.f32.mxu1 %vm1273_vm1, %v1272_v0 }
  0xcd   :  { %v117_v13 = vpop.f32.mrf.mxu0  ;;  %v215_v14 = vpop.f32.mrf.mxu1 }
  0xce   :  { %v229_v15 = vmul.f32 0.25, %v117_v13  ;;  %v232_v16 = vmul.f32 0.25, %v215_v14 }
  0xcf   :  { %v1108_v17 = vpop.f32.mrf.mxu0  ;;  %v1123_v18 = vpop.f32.mrf.mxu1 }
  0xd0   :  { %v236_v19 = vsel %vm235_vm2, %v229_v15, -inf  ;;  %v246_v24 = vsel %vm235_vm2, %v232_v16, -inf }
  0xd1   :  { %237 = vmax.xlane.f32.xlu0 %v236_v19  ;;  %v122_v20 = vpop.f32.mrf.mxu0  ;;  %v220_v21 = vpop.f32.mrf.mxu1 }
  0xd2   :  { %v230_v22 = vmul.f32 0.25, %v122_v20  ;;  %v233_v23 = vmul.f32 0.25, %v220_v21 }
  0xd3   :  { %v1111_v25 = vpop.f32.mrf.mxu0  ;;  %v1126_v26 = vpop.f32.mrf.mxu1 }
  0xd4   :  { %v239_v27 = vsel %vm235_vm2, %v230_v22, -inf  ;;  %v249_v31 = vsel %vm235_vm2, %v233_v23, -inf }
  0xd5   :  { %247 = vmax.xlane.f32.xlu0 %v246_v24  ;;  %240 = vmax.xlane.f32.xlu1 %v239_v27  ;;  %v127_v28 = vpop.f32.mrf.mxu0  ;;  %v225_v29 = vpop.f32.mrf.mxu1 }
  0xd6   :  { %v231_v30 = vmul.f32 0.25, %v127_v28  ;;  %v1415_v35 = vmul.f32 0.25, %v225_v29 }
  0xd7   :  { %v1114_v32 = vpop.f32.mrf.mxu0  ;;  %v1129_v33 = vpop.f32.mrf.mxu1 }
  0xd8   :  { %v243_v34 = vsel %vm242_vm3, %v231_v30, -inf  ;;  %v252_v36 = vsel %vm242_vm3, %v1415_v35, -inf }
  0xd9   :  { %250 = vmax.xlane.f32.xlu1 %v249_v31  ;;  %244 = vmax.xlane.f32.xlu0 %v243_v34 }
  0xea   :  { %602 = vrot.lane.b32.xlu1 %v1306_v2, %s1274_s0  ;;  %v1464_v2 = vld [vmem:[%s1660_s2 + $0x28] sm:$0x1] }
  0xeb   :  { %1146 = vmatpush3.msk.msra.mxu1 %vm312_vm4, %v1464_v2 }
  0xec   :  { %1147 = vmatprep.subr.mxu1 %v1272_v0 }
  0xee   :  { %496 = vrot.lane.b32.xlu1 %v1316_v3, %s1274_s0  ;;  %v1475_v3 = vld [vmem:[%s1660_s2 + $0x20] sm:$0xff] }
  0xef   :  { %498 = vrot.lane.b32.xlu0 %v1300_v1, %s1274_s0  ;;  %v1459_v1 = vld [vmem:[%s1660_s2] sm:$0xff]  ;;  %1148 = vmatpush3.msra.mxu1 %v1475_v3 }
  0xf0   :  { %1135 = vmatpush3.msra.mxu0 %v1459_v1  ;;  %1149 = vmatprep.subr.mxu1 %v1272_v0 }
  0xf1   :  { %1160 = vmatprep.subr.mxu0 %v1272_v0 }
 0x112   :  { %253 = vmax.xlane.f32.xlu1 %v252_v36 }
 0x123   :  { %600 = vrot.lane.b32.xlu1 %v1322_v4, %s1274_s0  ;;  %v1482_v4 = vld [vmem:[%s1660_s2 + $0x18] sm:$0xff]  ;;  %s1275_s2 = smov 16  }
 0x124   :  { %1150 = vmatpush3.msra.mxu1 %v1482_v4 }
 0x125   :  { %1175 = vmatprep.subr.mxu1 %v1272_v0 }
 0x15a   :  { %v238_v37 = vpop.xlane.xlu0 %237 }
 0x15b   :  { %v255_v38 = vsub.f32 %v229_v15, %v238_v37 }
 0x15d   :  { %v261_v39 = vmul.f32 1.442695, %v255_v38 }
 0x15e   :  { %v248_v40 = vpop.xlane.xlu0 %247  ;;  %v241_v41 = vpop.xlane.xlu1 %240 }
 0x15f   :  { %1224 = vpow2.f32 %v261_v39  ;;  %v258_v42 = vsub.f32 %v232_v16, %v248_v40  ;;  %v256_v43 = vsub.f32 %v230_v22, %v241_v41 }
 0x161   :  { %v267_v44 = vmul.f32 1.442695, %v258_v42  ;;  %v263_v45 = vmul.f32 1.442695, %v256_v43 }
 0x162   :  { %v251_v46 = vpop.xlane.xlu1 %250  ;;  %v245_v47 = vpop.xlane.xlu0 %244 }
 0x163   :  { %1226 = vpow2.f32 %v267_v44  ;;  %v259_v48 = vsub.f32 %v233_v23, %v251_v46  ;;  %v257_v49 = vsub.f32 %v231_v30, %v245_v47 }
 0x164   :  { %1228 = vpow2.f32 %v263_v45 }
 0x165   :  { %v269_v50 = vmul.f32 1.442695, %v259_v48  ;;  %v265_v51 = vmul.f32 1.442695, %v257_v49 }
 0x167   :  { %1230 = vpow2.f32 %v269_v50 }
 0x168   :  { %1232 = vpow2.f32 %v265_v51 }
 0x16c   :  { %v1421_v52 = vpop.eup %1224 }
 0x16d   :  { %v273_v53 = vsel %vm235_vm2, %v1421_v52, 0.0 }
 0x16e   :  { %274 = vadd.xlane.f32.xlu0 %v273_v53 }
 0x170   :  { %v1425_v54 = vpop.eup %1226 }
 0x171   :  { %v1427_v55 = vpop.eup %1228  ;;  %v282_v56 = vsel %vm235_vm2, %v1425_v54, 0.0 }
 0x172   :  { %283 = vadd.xlane.f32.xlu1 %v282_v56  ;;  %v276_v57 = vsel %vm235_vm2, %v1427_v55, 0.0 }
 0x173   :  { %277 = vadd.xlane.f32.xlu0 %v276_v57 }
 0x174   :  { %v1433_v58 = vpop.eup %1230 }
 0x175   :  { %v1435_v59 = vpop.eup %1232  ;;  %v285_v60 = vsel %vm235_vm2, %v1433_v58, 0.0 }
 0x176   :  { %286 = vadd.xlane.f32.xlu1 %v285_v60  ;;  %v279_v61 = vsel %vm242_vm3, %v1435_v59, 0.0 }
 0x177   :  { %280 = vadd.xlane.f32.xlu0 %v279_v61 }
 0x187   :  { %598 = vrot.lane.b32.xlu1 %v1342_v6, %s1274_s0  ;;  %v603_v6 = vpop.permute.xlu1 %602 }
 0x18b   :  { %592 = vrot.lane.b32.xlu1 %v1356_v8, %s1274_s0  ;;  %v497_v13 = vpop.permute.xlu1 %496 }
 0x18d   :  { %494 = vrot.lane.b32.xlu0 %v1336_v5, %s1274_s0 }
 0x191   :  { %488 = vrot.lane.b32.xlu0 %v1351_v7, %s1274_s0  ;;  %v499_v7 = vpop.permute.xlu0 %498 }
 0x195   :  { %490 = vrot.lane.b32.xlu0 %v1369_v9, %s1274_s0 }
 0x199   :  { %492 = vrot.lane.b32.xlu0 %v1387_v11, %s1274_s0 }
 0x19b   :  { %v254_v8 = vpop.xlane.xlu1 %253 }
 0x19c   :  { %v260_v14 = vsub.f32 %v1415_v35, %v254_v8 }
 0x19e   :  { %v271_v15 = vmul.f32 1.442695, %v260_v14 }
 0x19f   :  { %v601_v9 = vpop.permute.xlu1 %600 }
 0x1a0   :  { %1234 = vpow2.f32 %v271_v15 }
 0x1ad   :  { %v1498_v16 = vpop.eup %1234 }
 0x1ae   :  { %v288_v5 = vsel %vm242_vm3, %v1498_v16, 0.0 }
 0x1af   :  { %289 = vadd.xlane.f32.xlu1 %v288_v5 }
 0x1c0   :  { %594 = vrot.lane.b32.xlu1 %v1376_v10, %s1274_s0 }
 0x1c4   :  { %596 = vrot.lane.b32.xlu1 %v1394_v12, %s1274_s0 }
 0x1f7   :  { %v275_v11 = vpop.xlane.xlu0 %274 }
 0x1f8   :  { %1236 = vrcp.f32 %v275_v11 }
 0x1fb   :  { %v284_v17 = vpop.xlane.xlu1 %283 }
 0x1fc   :  { %1238 = vrcp.f32 %v284_v17  ;;  %v278_v18 = vpop.xlane.xlu0 %277 }
 0x1fd   :  { %1240 = vrcp.f32 %v278_v18 }
 0x1ff   :  { %v287_v19 = vpop.xlane.xlu1 %286 }
 0x200   :  { %1242 = vrcp.f32 %v287_v19  ;;  %v281_v20 = vpop.xlane.xlu0 %280 }
 0x201   :  { %1244 = vrcp.f32 %v281_v20 }
 0x203   :  { %v599_v31 = vpop.permute.xlu1 %598 }
 0x204   :  { %v495_v24 = vpop.permute.xlu0 %494 }
 0x205   :  { %v1237_v21 = vpop.eup %1236 }
 0x206   :  { %v292_v22 = vmul.f32 %v1237_v21, %v1421_v52 }
 0x207   :  { %v593_v34 = vpop.permute.xlu1 %592 }
 0x208   :  { %1137 = vmatmul.mubr.msk.f32.vlgmr.msra.gmra.mxu0 %vm235_vm2, %v292_v22  ;;  %v489_v30 = vpop.permute.xlu0 %488 }
 0x209   :  { %v1239_v10 = vpop.eup %1238  ;;  %1161 = vmatpush3.xpose.msk.msra.mxu0 %vm32_vm0, %v499_v7  ;;  %1139 = vmatprep.mubr.msk.f32.mxu0 %vm1273_vm1, %v1272_v0 }
 0x20a   :  { %v1241_v12 = vpop.eup %1240  ;;  %v298_v23 = vmul.f32 %v1239_v10, %v1425_v54  ;;  %1162 = vmatprep.subr.mxu0 %v1272_v0 }
 0x20b   :  { %v294_v25 = vmul.f32 %v1241_v12, %v1427_v55 }
 0x20c   :  { %1152 = vmatmul.mubr.msk.f32.vlgmr.msra.gmra.mxu1 %vm235_vm2, %v298_v23  ;;  %v491_v32 = vpop.permute.xlu0 %490 }
 0x20d   :  { %v1243_v26 = vpop.eup %1242  ;;  %1140 = vmatmul.mubr.msk.f32.gmra.mxu0 %vm235_vm2, %v294_v25  ;;  %1176 = vmatpush3.xpose.msk.msra.mxu1 %vm32_vm0, %v603_v6 }
 0x20e   :  { %v1245_v27 = vpop.eup %1244  ;;  %1163 = vmatpush3.xpose.msk.msra.mxu0 %vm32_vm0, %v497_v13  ;;  %1142 = vmatprep.mubr.msk.f32.mxu0 %vm1273_vm1, %v1272_v0  ;;  %v300_v28 = vmul.f32 %v1243_v26, %v1433_v58 }
 0x20f   :  { %1154 = vmatprep.mubr.msk.f32.mxu1 %vm1273_vm1, %v1272_v0  ;;  %1177 = vmatprep.subr.mxu1 %v1272_v0  ;;  %v296_v29 = vmul.f32 %v1245_v27, %v1435_v59 }
 0x210   :  { %1155 = vmatmul.mubr.msk.f32.gmra.mxu1 %vm235_vm2, %v300_v28  ;;  %1164 = vmatprep.subr.mxu0 %v1272_v0  ;;  %v493_v33 = vpop.permute.xlu0 %492 }
 0x211   :  { %1143 = vmatmul.mubr.msk.f32.gmra.mxu0 %vm235_vm2, %v296_v29  ;;  %1178 = vmatpush3.xpose.msk.msra.mxu1 %vm32_vm0, %v601_v9 }
 0x212   :  { %1165 = vmatpush3.xpose.msk.msra.mxu0 %vm32_vm0, %v495_v24  ;;  %1166 = vmatprep.mubr.msk.f32.mxu0 %vm1273_vm1, %v1272_v0 }
 0x213   :  { %1179 = vmatprep.subr.mxu1 %v1272_v0  ;;  %1157 = vmatprep.mubr.msk.f32.mxu1 %vm1273_vm1, %v1272_v0 }
 0x214   :  { %1190 = vmatprep.subr.mxu0 %v1272_v0 }
 0x215   :  { %1167 = vmatmul.mubr.msk.f32.vlgmr.msra.gmra.mxu0 %vm32_vm0, %v489_v30  ;;  %1180 = vmatpush3.xpose.msk.msra.mxu1 %vm32_vm0, %v599_v31 }
 0x216   :  { %1169 = vmatprep.mubr.msk.f32.mxu0 %vm1273_vm1, %v1272_v0  ;;  %1205 = vmatprep.subr.mxu1 %v1272_v0 }
 0x219   :  { %1170 = vmatmul.mubr.msk.f32.gmra.mxu0 %vm32_vm0, %v491_v32 }
 0x21a   :  { %1172 = vmatprep.mubr.msk.f32.mxu0 %vm1273_vm1, %v1272_v0 }
 0x21d   :  { %1173 = vmatmul.mubr.msk.f32.gmra.mxu0 %vm32_vm0, %v493_v33 }
 0x21e   :  { %1196 = vmatprep.mubr.msk.f32.mxu0 %vm1273_vm1, %v1272_v0 }
 0x238   :  { %v290_v35 = vpop.xlane.xlu1 %289 }
 0x239   :  { %1246 = vrcp.f32 %v290_v35 }
 0x23c   :  { %v595_v38 = vpop.permute.xlu1 %594 }
 0x240   :  { %v597_v39 = vpop.permute.xlu1 %596 }
 0x246   :  { %v1247_v36 = vpop.eup %1246 }
 0x247   :  { %v302_v37 = vmul.f32 %v1247_v36, %v1498_v16 }
 0x249   :  { %1158 = vmatmul.mubr.msk.f32.gmra.mxu1 %vm235_vm2, %v302_v37 }
 0x24a   :  { %1181 = vmatprep.mubr.msk.f32.mxu1 %vm1273_vm1, %v1272_v0 }
 0x24d   :  { %1182 = vmatmul.mubr.msk.f32.vlgmr.msra.gmra.mxu1 %vm32_vm0, %v593_v34 }
 0x24e   :  { %1184 = vmatprep.mubr.msk.f32.mxu1 %vm1273_vm1, %v1272_v0 }
 0x251   :  { %1185 = vmatmul.mubr.msk.f32.gmra.mxu1 %vm32_vm0, %v595_v38 }
 0x252   :  { %1187 = vmatprep.mubr.msk.f32.mxu1 %vm1273_vm1, %v1272_v0 }
 0x255   :  { %1188 = vmatmul.mubr.msk.f32.gmra.mxu1 %vm32_vm0, %v597_v39 }
 0x256   :  { %1211 = vmatprep.mubr.msk.f32.mxu1 %vm1273_vm1, %v1272_v0 }
 0x2c8   :  { %v1560_v40 = vpop.f32.mrf.mxu0 }
 0x2ca   :  { %v1138_v41 = vpop.f32.mrf.mxu0 }
 0x2cc   :  { %v1562_v42 = vpop.f32.mrf.mxu1 }
 0x2cd   :  { %v1564_v43 = vpop.f32.mrf.mxu0 }
 0x2ce   :  { %v1153_v44 = vpop.f32.mrf.mxu1 }
 0x2cf   :  { %v1141_v45 = vpop.f32.mrf.mxu0 }
 0x2d0   :  { %v1566_v46 = vpop.f32.mrf.mxu1 }
 0x2d1   :  { %v1568_v47 = vpop.f32.mrf.mxu0 }
 0x2d2   :  { %v1156_v48 = vpop.f32.mrf.mxu1 }
 0x2d3   :  { %v1144_v49 = vpop.f32.mrf.mxu0 }
 0x2d5   :  { %v578_v50 = vpop.f32.mrf.mxu0 }
 0x2d6   :  { %v696_v51 = vmul.f32 0.25, %v578_v50 }
 0x2d7   :  { %v1168_v52 = vpop.f32.mrf.mxu0 }
 0x2d8   :  { %v702_v53 = vsel %vm235_vm2, %v696_v51, -inf }
 0x2d9   :  { %703 = vmax.xlane.f32.xlu0 %v702_v53  ;;  %v583_v54 = vpop.f32.mrf.mxu0 }
 0x2da   :  { %v697_v55 = vmul.f32 0.25, %v583_v54 }
 0x2db   :  { %v1171_v56 = vpop.f32.mrf.mxu0 }
 0x2dc   :  { %v705_v57 = vsel %vm235_vm2, %v697_v55, -inf }
 0x2dd   :  { %706 = vmax.xlane.f32.xlu0 %v705_v57  ;;  %v588_v58 = vpop.f32.mrf.mxu0 }
 0x2de   :  { %v698_v5 = vmul.f32 0.25, %v588_v58 }
 0x2df   :  { %v1174_v59 = vpop.f32.mrf.mxu0 }
 0x2e0   :  { %v708_v18 = vsel %vm242_vm3, %v698_v5, -inf }
 0x309   :  { %v1572_v60 = vpop.f32.mrf.mxu1 }
 0x30b   :  { %v1159_v61 = vpop.f32.mrf.mxu1 }
 0x30d   :  { %v682_v6 = vpop.f32.mrf.mxu1 }
 0x30e   :  { %v699_v13 = vmul.f32 0.25, %v682_v6 }
 0x30f   :  { %v1183_v8 = vpop.f32.mrf.mxu1 }
 0x310   :  { %v711_v14 = vsel %vm235_vm2, %v699_v13, -inf }
 0x311   :  { %712 = vmax.xlane.f32.xlu1 %v711_v14  ;;  %v687_v15 = vpop.f32.mrf.mxu1 }
 0x312   :  { %v700_v16 = vmul.f32 0.25, %v687_v15 }
 0x313   :  { %v1186_v7 = vpop.f32.mrf.mxu1 }
 0x314   :  { %v714_v9 = vsel %vm235_vm2, %v700_v16, -inf }
 0x315   :  { %v692_v11 = vpop.f32.mrf.mxu1  ;;  %715 = vmax.xlane.f32.xlu0 %v714_v9 }
 0x316   :  { %v701_v17 = vmul.f32 0.25, %v692_v11 }
 0x317   :  { %v1189_v19 = vpop.f32.mrf.mxu1 }
 0x318   :  { %v717_v20 = vsel %vm242_vm3, %v701_v17, -inf }
 0x319   :  { %718 = vmax.xlane.f32.xlu1 %v717_v20  ;;  %709 = vmax.xlane.f32.xlu0 %v708_v18 }
 0x32a   :  { %875 = vrot.lane.b32.xlu1 %v1464_v2, %s1274_s0 }
 0x32e   :  { %772 = vrot.lane.b32.xlu1 %v1452_v63, %s1274_s0 }
 0x32f   :  { %774 = vrot.lane.b32.xlu0 %v1444_v62, %s1274_s0 }
 0x332   :  { %873 = vrot.lane.b32.xlu1 %v1475_v3, %s1274_s0 }
 0x362   :  { %v704_v21 = vpop.xlane.xlu0 %703 }
 0x363   :  { %v720_v22 = vsub.f32 %v696_v51, %v704_v21 }
 0x365   :  { %v726_v10 = vmul.f32 1.442695, %v720_v22 }
 0x366   :  { %v707_v12 = vpop.xlane.xlu0 %706 }
 0x367   :  { %1248 = vpow2.f32 %v726_v10  ;;  %v721_v23 = vsub.f32 %v697_v55, %v707_v12 }
 0x369   :  { %v728_v24 = vmul.f32 1.442695, %v721_v23 }
 0x36b   :  { %1250 = vpow2.f32 %v728_v24 }
 0x374   :  { %v1586_v25 = vpop.eup %1248 }
 0x375   :  { %v738_v2 = vsel %vm235_vm2, %v1586_v25, 0.0 }
 0x376   :  { %739 = vadd.xlane.f32.xlu0 %v738_v2 }
 0x378   :  { %v1590_v63 = vpop.eup %1250 }
 0x379   :  { %v741_v62 = vsel %vm235_vm2, %v1590_v63, 0.0 }
 0x37a   :  { %742 = vadd.xlane.f32.xlu0 %v741_v62 }
 0x39a   :  { %v713_v3 = vpop.xlane.xlu1 %712 }
 0x39b   :  { %v723_v26 = vsub.f32 %v699_v13, %v713_v3 }
 0x39d   :  { %v732_v27 = vmul.f32 1.442695, %v723_v26 }
 0x39e   :  { %v716_v28 = vpop.xlane.xlu0 %715 }
 0x39f   :  { %1252 = vpow2.f32 %v732_v27  ;;  %v724_v29 = vsub.f32 %v700_v16, %v716_v28 }
 0x3a1   :  { %v734_v30 = vmul.f32 1.442695, %v724_v29 }
 0x3a2   :  { %v719_v31 = vpop.xlane.xlu1 %718  ;;  %v710_v32 = vpop.xlane.xlu0 %709 }
 0x3a3   :  { %1254 = vpow2.f32 %v734_v30  ;;  %v725_v33 = vsub.f32 %v701_v17, %v719_v31  ;;  %v722_v34 = vsub.f32 %v698_v5, %v710_v32 }
 0x3a5   :  { %v736_v35 = vmul.f32 1.442695, %v725_v33  ;;  %v730_v36 = vmul.f32 1.442695, %v722_v34 }
 0x3a6   :  { %v876_v37 = vpop.permute.xlu1 %875  ;;  %v775_v38 = vpop.permute.xlu0 %774 }
 0x3a7   :  { %1256 = vpow2.f32 %v736_v35  ;;  %1206 = vmatpush3.msk.msra.mxu1 %vm312_vm4, %v876_v37  ;;  %1191 = vmatpush3.msk.msra.mxu0 %vm312_vm4, %v775_v38 }
 0x3a8   :  { %1258 = vpow2.f32 %v730_v36  ;;  %1192 = vmatprep.subr.mxu0 %v1272_v0  ;;  %1207 = vmatprep.subr.mxu1 %v1272_v0 }
 0x3aa   :  { %v773_v39 = vpop.permute.xlu1 %772 }
 0x3ab   :  { %1193 = vmatpush3.msra.mxu0 %v773_v39 }
 0x3ac   :  { %v1253_v41 = vpop.eup %1252  ;;  %1194 = vmatprep.subr.mxu0 %v1272_v0 }
 0x3ad   :  { %v747_v44 = vsel %vm235_vm2, %v1253_v41, 0.0 }
 0x3ae   :  { %748 = vadd.xlane.f32.xlu1 %v747_v44  ;;  %v874_v45 = vpop.permute.xlu1 %873 }
 0x3af   :  { %1208 = vmatpush3.msra.mxu1 %v874_v45 }
 0x3b0   :  { %v1255_v48 = vpop.eup %1254  ;;  %1209 = vmatprep.subr.mxu1 %v1272_v0 }
 0x3b1   :  { %v750_v49 = vsel %vm235_vm2, %v1255_v48, 0.0 }
 0x3b2   :  { %751 = vadd.xlane.f32.xlu1 %v750_v49 }
 0x3b4   :  { %v1257_v50 = vpop.eup %1256 }
 0x3b5   :  { %v1259_v51 = vpop.eup %1258  ;;  %v753_v52 = vsel %vm242_vm3, %v1257_v50, 0.0 }
 0x3b6   :  { %754 = vadd.xlane.f32.xlu1 %v753_v52  ;;  %v744_v53 = vsel %vm242_vm3, %v1259_v51, 0.0 }
 0x3b7   :  { %745 = vadd.xlane.f32.xlu0 %v744_v53 }
 0x3c7   :  { %871 = vrot.lane.b32.xlu1 %v1482_v4, %s1274_s0 }
 0x3cd   :  { %770 = vrot.lane.b32.xlu0 %v1459_v1, %s1274_s0 }
 0x3ff   :  { %v740_v54 = vpop.xlane.xlu0 %739 }
 0x400   :  { %1260 = vrcp.f32 %v740_v54 }
 0x403   :  { %v743_v55 = vpop.xlane.xlu0 %742 }
 0x404   :  { %1262 = vrcp.f32 %v743_v55 }
 0x40d   :  { %v1261_v61 = vpop.eup %1260 }
 0x40e   :  { %v757_v4 = vmul.f32 %v1261_v61, %v1586_v25 }
 0x411   :  { %v1263_v13 = vpop.eup %1262 }
 0x412   :  { %v759_v15 = vmul.f32 %v1263_v13, %v1590_v63 }
 0x437   :  { %v749_v56 = vpop.xlane.xlu1 %748 }
 0x438   :  { %1264 = vrcp.f32 %v749_v56 }
 0x43b   :  { %v752_v57 = vpop.xlane.xlu1 %751 }
 0x43c   :  { %1266 = vrcp.f32 %v752_v57 }
 0x43f   :  { %v755_v58 = vpop.xlane.xlu1 %754 }
 0x440   :  { %1268 = vrcp.f32 %v755_v58  ;;  %v746_v59 = vpop.xlane.xlu0 %745 }
 0x441   :  { %1270 = vrcp.f32 %v746_v59 }
 0x443   :  { %v872_v6 = vpop.permute.xlu1 %871 }
 0x444   :  { %v771_v8 = vpop.permute.xlu0 %770  ;;  %1210 = vmatpush3.msra.mxu1 %v872_v6 }
 0x445   :  { %v1265_v1 = vpop.eup %1264  ;;  %1195 = vmatpush3.msra.mxu0 %v771_v8 }
 0x446   :  { %v763_v14 = vmul.f32 %v1265_v1, %v1253_v41  ;;  %1197 = vmatmul.mubr.msk.f32.vlgmr.msra.gmra.mxu0 %vm235_vm2, %v757_v4 }
 0x447   :  { %1199 = vmatprep.mubr.msk.f32.mxu0 %vm1273_vm1, %v1272_v0 }
 0x448   :  { %1212 = vmatmul.mubr.msk.f32.vlgmr.msra.gmra.mxu1 %vm235_vm2, %v763_v14 }
 0x449   :  { %v1267_v16 = vpop.eup %1266  ;;  %1214 = vmatprep.mubr.msk.f32.mxu1 %vm1273_vm1, %v1272_v0 }
 0x44a   :  { %1200 = vmatmul.mubr.msk.f32.gmra.mxu0 %vm235_vm2, %v759_v15  ;;  %v765_v5 = vmul.f32 %v1267_v16, %v1255_v48 }
 0x44b   :  { %1202 = vmatprep.mubr.msk.f32.mxu0 %vm1273_vm1, %v1272_v0 }
 0x44c   :  { %1215 = vmatmul.mubr.msk.f32.gmra.mxu1 %vm235_vm2, %v765_v5 }
 0x44d   :  { %v1269_v7 = vpop.eup %1268  ;;  %1217 = vmatprep.mubr.msk.f32.mxu1 %vm1273_vm1, %v1272_v0 }
 0x44e   :  { %v1271_v9 = vpop.eup %1270  ;;  %v767_v11 = vmul.f32 %v1269_v7, %v1257_v50 }
 0x44f   :  { %v761_v17 = vmul.f32 %v1271_v9, %v1259_v51 }
 0x450   :  { %1218 = vmatmul.mubr.msk.f32.gmra.mxu1 %vm235_vm2, %v767_v11 }
 0x451   :  { %1203 = vmatmul.mubr.msk.f32.gmra.mxu0 %vm235_vm2, %v761_v17 }
 0x506   :  { %v855_v18 = vpop.f32.mrf.mxu0 }
 0x507   :  { %976 = vrot.lane.b32.xlu0 %v855_v18, %s1275_s2 }
 0x508   :  { %v1198_v19 = vpop.f32.mrf.mxu0  ;;  %v956_v20 = vpop.f32.mrf.mxu1 }
 0x509   :  { %982 = vrot.lane.b32.xlu1 %v956_v20, %s1275_s2 }
 0x50a   :  { %v860_v21 = vpop.f32.mrf.mxu0  ;;  %v1213_v22 = vpop.f32.mrf.mxu1 }
 0x50c   :  { %v1201_v10 = vpop.f32.mrf.mxu0  ;;  %v961_v12 = vpop.f32.mrf.mxu1 }
 0x50d   :  { %978 = vrot.lane.b32.xlu1 %v860_v21, %s1275_s2 }
 0x50e   :  { %v1216_v23 = vpop.f32.mrf.mxu1 }
 0x510   :  { %v966_v0 = vpop.f32.mrf.mxu1 }
 0x511   :  { %v865_v24 = vpop.f32.mrf.mxu0  ;;  %986 = vrot.lane.b32.xlu1 %v966_v0, %s1275_s2 }
 0x512   :  { %980 = vrot.lane.b32.xlu0 %v865_v24, %s1275_s2  ;;  %v1219_v25 = vpop.f32.mrf.mxu1 }
 0x513   :  { %v1204_v2 = vpop.f32.mrf.mxu0 }
 0x516   :  { %984 = vrot.lane.b32.xlu0 %v961_v12, %s1275_s2 }
 0x579   :  { %v977_v63 = vpop.permute.xlu0 %976 }
 0x57a   :  { %v994_v62 = vsel %vm32_vm0, %v1560_v40, %v977_v63 }
 0x57b   :  { %1001 = vst.msk [vmem:[%s1661_s3] sm:$0xff] %vm1000_vm5, %v994_v62  ;;  %v983_v3 = vpop.permute.xlu1 %982 }
 0x57c   :  { %v997_v26 = vsel %vm32_vm0, %v1562_v42, %v983_v3 }
 0x57d   :  { %1005 = vst.msk [vmem:[%s1661_s3 + $0x18] sm:$0xff] %vm1000_vm5, %v997_v26 }
 0x57f   :  { %v979_v27 = vpop.permute.xlu1 %978 }
 0x580   :  { %v995_v28 = vsel %vm32_vm0, %v1564_v43, %v979_v27 }
 0x581   :  { %1002 = vst.msk [vmem:[%s1661_s3 + $0x8] sm:$0xff] %vm1000_vm5, %v995_v28 }
 0x583   :  { %v987_v40 = vpop.permute.xlu1 %986 }
 0x584   :  { %v999_v29 = vsel %vm32_vm0, %v1572_v60, %v987_v40  ;;  %v981_v42 = vpop.permute.xlu0 %980 }
 0x585   :  { %1007 = vst.msk [vmem:[%s1661_s3 + $0x28] sm:$0x1] %vm1003_vm6, %v999_v29  ;;  %v996_v30 = vsel %vm32_vm0, %v1568_v47, %v981_v42 }
 0x586   :  { %1004 = vst.msk [vmem:[%s1661_s3 + $0x10] sm:$0x1] %vm1003_vm6, %v996_v30 }
 0x588   :  { %v985_v43 = vpop.permute.xlu0 %984 }
 0x589   :  { %v998_v31 = vsel %vm32_vm0, %v1566_v46, %v985_v43 }
 0x58a   :  { %1006 = vst.msk [vmem:[%s1661_s3 + $0x20] sm:$0xff] %vm1000_vm5, %v998_v31 }

// kernel: _lambda_.26
= control target key start
LH: loop header
LB: loop body
LE: loop exit
PB: predicated region body
PF: predicated region fallthrough
CT: control target
= control target key end

     0   :  { %v33_v0 = vlaneseq  ;;  %v1567_v1 = vmov 0.0   ;;  %v1568_v4 = vmov 1966171168   ;;  %vm1569_vm0 = vmmov 0   ;;  %s2029_s1 = inlined_call_operand.vmem [shape: f32[32,32], index: 1, kind: input, shape index: {}]   ;;  %s2030_s0 = inlined_call_operand.vmem [shape: f32[2,17,32], index: 0, kind: input, shape index: {}]   ;;  %s2031_s2 = inlined_call_operand.vmem [shape: f32[1,1,32], index: 2, kind: input, shape index: {}]   ;;  %s2032_s3 = inlined_call_operand.vmem [shape: f32[2,17,32], index: 3, kind: input, shape index: {}, may-alias: {3,4}]   ;;  %s2033_s4 = inlined_call_operand.vmem [shape: f32[2,17,32], index: 4, kind: output, shape index: {}, may-alias: {3,4}]  }
   0x1   :  { %1525 = vmatprep.subr.mxu0 %v1567_v1  ;;  %v256_v2 = vld [vmem:[%s2029_s1 + $0x18] sm:$0xff]  ;;  %v255_v3 = vld [vmem:[%s2029_s1 + $0x10] sm:$0xff]  ;;  %1548 = vmatprep.subr.mxu1 %v1567_v1  ;;  %v31_v5 = vunpack.c.l.s4 %v1568_v4  ;;  %v17_v6 = vld [vmem:[%s2030_s0] sm:$0xff]  ;;  %vm468_vm1 = vcmask 261120   ;;  %vm1493_vm2 = vcmask 253952  }
   0x2   :  { %1526 = vmatpush3.msra.mxu0 %v256_v2  ;;  %1552 = vmatpush3.msra.mxu1 %v256_v2  ;;  %v34_v7 = vshrl.u32 %v33_v0, 7  ;;  %v18_v8 = vld [vmem:[%s2030_s0 + $0x8] sm:$0xff]  ;;  %v29_v10 = vcombine.high %v17_v6, %v17_v6  ;;  %v1617_v12 = vld [vmem:[%s2030_s0 + $0x18] sm:$0xff]  ;;  %v21_v13 = vld [vmem:[%s2030_s0 + $0x20] sm:$0xff] }
   0x3   :  { %1527 = vmatprep.subr.mxu0 %v1567_v1  ;;  %v254_v9 = vld [vmem:[%s2029_s1 + $0x8] sm:$0xff]  ;;  %1549 = vmatprep.subr.mxu1 %v1567_v1  ;;  %v32_v11 = vunpack.c.0.s8 %v31_v5  ;;  %v78_v14 = vcombine.high %v18_v8, %v18_v8  ;;  %v141_v15 = vcombine.high %v1617_v12, %v1617_v12  ;;  %v253_v16 = vld [vmem:[%s2029_s1] sm:$0xff]  ;;  %v190_v18 = vcombine.high %v21_v13, %v21_v13  ;;  %v1502_v2 = vld.sshfl [vmem:[%s2030_s0 + $0x10] sm:$0x1 pattern:$0x75316420] }
   0x4   :  { %1528 = vmatpush3.msra.mxu0 %v255_v3  ;;  %1553 = vmatpush3.msra.mxu1 %v255_v3 }
   0x5   :  { %1529 = vmatprep.subr.mxu0 %v1567_v1  ;;  %1533 = vmatprep.mubr.msk.f32.mxu0 %vm1569_vm0, %v1567_v1  ;;  %v1630_v17 = vsub.s32 %v32_v11, %v34_v7 }
   0x6   :  { %1530 = vmatpush3.msra.mxu0 %v254_v9  ;;  %1550 = vmatprep.subr.mxu1 %v1567_v1 }
   0x7   :  { %1531 = vmatprep.subr.mxu0 %v1567_v1  ;;  %v36_v19 = vrot.slane %v17_v6, %v1630_v17  ;;  %v43_v20 = vrot.slane %v29_v10, %v1630_v17  ;;  %1554 = vmatpush3.msra.mxu1 %v254_v9  ;;  %v85_v21 = vrot.slane %v18_v8, %v1630_v17 }
   0x8   :  { %1532 = vmatpush3.msra.mxu0 %v253_v16  ;;  %1551 = vmatprep.subr.mxu1 %v1567_v1  ;;  %v92_v22 = vrot.slane %v78_v14, %v1630_v17  ;;  %v1640_v23 = vrot.slane %v141_v15, %v1630_v17  ;;  %v197_v24 = vrot.slane %v21_v13, %v1630_v17 }
   0x9   :  { %v44_v25 = vcombine.high %v36_v19, %v36_v19  ;;  %v45_v26 = vcombine.high %v43_v20, %v43_v20  ;;  %v52_v27 = vrot.slane %v36_v19, %v1630_v17  ;;  %v59_v28 = vrot.slane %v43_v20, %v1630_v17  ;;  %1555 = vmatpush3.msra.mxu1 %v253_v16 }
   0xa   :  { %1542 = vmatprep.mubr.msk.f32.mxu1 %vm1569_vm0, %v1567_v1  ;;  %v93_v29 = vcombine.high %v85_v21, %v85_v21  ;;  %v94_v30 = vcombine.high %v92_v22, %v92_v22  ;;  %v101_v31 = vrot.slane %v85_v21, %v1630_v17  ;;  %v108_v32 = vrot.slane %v92_v22, %v1630_v17  ;;  %v1503_v21 = vld.sshfl [vmem:[%s2030_s0 + $0x28] sm:$0x1 pattern:$0x75316420] }
   0xb   :  { %v66_v33 = vrot.slane %v44_v25, %v1630_v17  ;;  %v73_v34 = vrot.slane %v45_v26, %v1630_v17  ;;  %v157_v35 = vcombine.high %v1640_v23, %v1640_v23  ;;  %v204_v36 = vrot.slane %v190_v18, %v1630_v17 }
   0xc   :  { %v115_v37 = vrot.slane %v93_v29, %v1630_v17  ;;  %v122_v38 = vrot.slane %v94_v30, %v1630_v17  ;;  %v205_v39 = vcombine.high %v197_v24, %v197_v24  ;;  %v213_v40 = vrot.slane %v197_v24, %v1630_v17 }
   0xd   :  { %v257_v41 = vcombine.low %v52_v27, %v66_v33  ;;  %v1504_v42 = vcombine.high %v52_v27, %v66_v33  ;;  %v259_v43 = vcombine.low %v59_v28, %v73_v34  ;;  %v1505_v44 = vcombine.high %v59_v28, %v73_v34 }
   0xe   :  { %v306_v45 = vcombine.low %v101_v31, %v115_v37  ;;  %v1506_v46 = vcombine.high %v101_v31, %v115_v37  ;;  %v308_v47 = vcombine.low %v108_v32, %v122_v38  ;;  %v1507_v48 = vcombine.high %v108_v32, %v122_v38 }
   0xf   :  { %v267_v49 = vrot.slane %v257_v41, %v1630_v17  ;;  %v274_v50 = vrot.slane %v1504_v42, %v1630_v17  ;;  %v281_v51 = vrot.slane %v259_v43, %v1630_v17  ;;  %v288_v52 = vrot.slane %v1505_v44, %v1630_v17 }
  0x10   :  { %v316_v53 = vrot.slane %v306_v45, %v1630_v17  ;;  %v323_v54 = vrot.slane %v1506_v46, %v1630_v17  ;;  %v330_v55 = vrot.slane %v308_v47, %v1630_v17  ;;  %v337_v56 = vrot.slane %v1507_v48, %v1630_v17 }
  0x11   :  { %v289_v57 = vcombine.low %v267_v49, %v274_v50  ;;  %v290_v58 = vcombine.low %v281_v51, %v288_v52  ;;  %v185_v59 = vrot.slane %v157_v35, %v1630_v17  ;;  %v206_v60 = vcombine.high %v204_v36, %v204_v36 }
  0x12   :  { %v338_v61 = vcombine.low %v316_v53, %v323_v54  ;;  %v339_v62 = vcombine.low %v330_v55, %v337_v56  ;;  %v220_v63 = vrot.slane %v204_v36, %v1630_v17  ;;  %v227_v0 = vrot.slane %v205_v39, %v1630_v17  ;;  %v1513_v56 = vld [vmem:[%s2031_s2] ss:$0 sm:$0xff] }
  0x13   :  { %v297_v3 = vrot.slane %v289_v57, %v1630_v17  ;;  %v304_v4 = vrot.slane %v290_v58, %v1630_v17  ;;  %v189_v5 = vcombine.high %v185_v59, %v185_v59  ;;  %v234_v6 = vrot.slane %v206_v60, %v1630_v17  ;;  %v923_v57 = vld [vmem:[%s2032_s3] sm:$0xff]  ;;  %v926_v60 = vld [vmem:[%s2032_s3 + $0x18] sm:$0xff] }
  0x14   :  { %v346_v7 = vrot.slane %v338_v61, %v1630_v17  ;;  %v353_v8 = vrot.slane %v339_v62, %v1630_v17  ;;  %v235_v9 = vcombine.high %v213_v40, %v213_v40  ;;  %v236_v10 = vcombine.high %v220_v63, %v220_v63 }
  0x15   :  { %v305_v11 = vcombine.low %v297_v3, %v304_v4  ;;  %v237_v13 = vcombine.high %v227_v0, %v227_v0  ;;  %v404_v14 = vcombine.low %v189_v5, %v213_v40  ;;  %v140_v15 = vrot.slane %v1502_v2, %v1630_v17 }
  0x16   :  { %v354_v16 = vcombine.low %v346_v7, %v353_v8  ;;  %v405_v18 = vcombine.low %v227_v0, %v235_v9  ;;  %v407_v19 = vcombine.low %v234_v6, %v236_v10  ;;  %v148_v20 = vrot.slane %v1617_v12, %v1630_v17  ;;  %v927_v9 = vld [vmem:[%s2032_s3 + $0x20] sm:$0xff] }
  0x17   :  { %1534 = vmatmul.mubr.msk.f32.vlgmr.msra.gmra.mxu0 %vm468_vm1, %v305_v11  ;;  %v406_v22 = vcombine.low %v237_v13, %v220_v63  ;;  %v414_v24 = vrot.slane %v404_v14, %v1630_v17  ;;  %v171_v25 = vrot.slane %v1640_v23, %v1630_v17  ;;  %v238_v26 = vcombine.high %v234_v6, %v234_v6 }
  0x18   :  { %1536 = vmatprep.mubr.msk.f32.mxu0 %vm1569_vm0, %v1567_v1  ;;  %v421_v27 = vrot.slane %v405_v18, %v1630_v17  ;;  %v435_v12 = vrot.slane %v407_v19, %v1630_v17  ;;  %v156_v28 = vcombine.high %v148_v20, %v148_v20  ;;  %v164_v29 = vrot.slane %v148_v20, %v1630_v17 }
  0x19   :  { %v428_v30 = vrot.slane %v406_v22, %v1630_v17  ;;  %v187_v31 = vcombine.high %v171_v25, %v171_v25  ;;  %v252_v32 = vrot.slane %v1503_v21, %v1630_v17  ;;  %v832_v58 = vcombine.high %v1513_v56, %v1513_v56 }
  0x1a   :  { %v436_v33 = vcombine.low %v414_v24, %v421_v27  ;;  %v178_v34 = vrot.slane %v156_v28, %v1630_v17  ;;  %v186_v23 = vcombine.high %v164_v29, %v164_v29  ;;  %v355_v35 = vcombine.low %v140_v15, %v164_v29 }
  0x1b   :  { %1537 = vmatmul.mubr.msk.f32.gmra.mxu0 %vm468_vm1, %v354_v16  ;;  %v437_v36 = vcombine.low %v428_v30, %v435_v12  ;;  %v358_v37 = vcombine.low %v185_v59, %v187_v31  ;;  %v453_v38 = vcombine.low %v238_v26, %v252_v32  ;;  %v935_v59 = vcombine.high %v923_v57, %v923_v57 }
  0x1c   :  { %v444_v39 = vrot.slane %v436_v33, %v1630_v17  ;;  %1539 = vmatprep.mubr.msk.f32.mxu0 %vm1569_vm0, %v1567_v1  ;;  %v188_v40 = vcombine.high %v178_v34, %v178_v34  ;;  %v356_v41 = vcombine.low %v178_v34, %v186_v23  ;;  %v365_v42 = vrot.slane %v355_v35, %v1630_v17 }
  0x1d   :  { %v451_v43 = vrot.slane %v437_v36, %v1630_v17  ;;  %v460_v44 = vrot.slane %v453_v38, %v1630_v17  ;;  %v386_v47 = vrot.slane %v358_v37, %v1630_v17  ;;  %v839_v61 = vrot.slane %v1513_v56, %v1630_v17 }
  0x1e   :  { %v357_v45 = vcombine.low %v188_v40, %v171_v25  ;;  %v372_v46 = vrot.slane %v356_v41, %v1630_v17  ;;  %v846_v62 = vrot.slane %v832_v58, %v1630_v17  ;;  %v1047_v0 = vcombine.high %v926_v60, %v926_v60 }
  0x1f   :  { %v452_v48 = vcombine.low %v444_v39, %v451_v43  ;;  %v467_v51 = vrot.slane %v460_v44, %v1630_v17  ;;  %v942_v2 = vrot.slane %v923_v57, %v1630_v17  ;;  %v949_v3 = vrot.slane %v935_v59, %v1630_v17 }
  0x20   :  { %v379_v49 = vrot.slane %v357_v45, %v1630_v17  ;;  %v387_v50 = vcombine.low %v365_v42, %v372_v46  ;;  %v847_v4 = vcombine.high %v839_v61, %v839_v61  ;;  %v848_v5 = vcombine.high %v846_v62, %v846_v62 }
  0x21   :  { %1543 = vmatmul.mubr.msk.f32.vlgmr.msra.gmra.mxu1 %vm468_vm1, %v452_v48  ;;  %v1731_v8 = vrot.slane %v839_v61, %v1630_v17  ;;  %v1061_v10 = vrot.slane %v1047_v0, %v1630_v17  ;;  %v950_v11 = vcombine.high %v942_v2, %v942_v2  ;;  %v951_v13 = vcombine.high %v949_v3, %v949_v3 }
  0x22   :  { %v388_v52 = vcombine.low %v379_v49, %v386_v47  ;;  %v395_v53 = vrot.slane %v387_v50, %v1630_v17  ;;  %1545 = vmatprep.mubr.msk.f32.mxu1 %vm1569_vm0, %v1567_v1  ;;  %v924_v1 = vld [vmem:[%s2032_s3 + $0x8] sm:$0xff]  ;;  %v1103_v14 = vrot.slane %v927_v9, %v1630_v17  ;;  %v1739_v15 = vrot.slane %v846_v62, %v1630_v17 }
  0x23   :  { %v984_v63 = vcombine.high %v924_v1, %v924_v1  ;;  %v991_v6 = vrot.slane %v924_v1, %v1630_v17  ;;  %v1742_v16 = vrot.slane %v847_v4, %v1630_v17  ;;  %v1054_v18 = vrot.slane %v926_v60, %v1630_v17 }
  0x24   :  { %v402_v54 = vrot.slane %v388_v52, %v1630_v17  ;;  %v1746_v19 = vrot.slane %v848_v5, %v1630_v17  ;;  %v1749_v20 = vrot.slane %v942_v2, %v1630_v17  ;;  %v1753_v24 = vcombine.high %v1731_v8, %v1731_v8 }
  0x25   :  { %1546 = vmatmul.mubr.msk.f32.gmra.mxu1 %vm468_vm1, %v467_v51  ;;  %v998_v7 = vrot.slane %v984_v63, %v1630_v17  ;;  %v999_v21 = vcombine.high %v991_v6, %v991_v6  ;;  %v1756_v25 = vrot.slane %v949_v3, %v1630_v17  ;;  %v1063_v26 = vcombine.high %v1061_v10, %v1061_v10 }
  0x26   :  { %v403_v55 = vcombine.low %v395_v53, %v402_v54  ;;  %v1096_v27 = vcombine.high %v927_v9, %v927_v9  ;;  %v1759_v12 = vrot.slane %v950_v11, %v1630_v17  ;;  %v1762_v28 = vrot.slane %v951_v13, %v1630_v17 }
  0x27   :  { %v1000_v22 = vcombine.high %v998_v7, %v998_v7  ;;  %v1765_v29 = vrot.slane %v991_v6, %v1630_v17  ;;  %v1111_v30 = vcombine.high %v1103_v14, %v1103_v14  ;;  %v1769_v31 = vcombine.high %v1739_v15, %v1739_v15 }
  0x28   :  { %1540 = vmatmul.mubr.msk.f32.gmra.mxu0 %vm468_vm1, %v403_v55  ;;  %v1773_v32 = vcombine.high %v1742_v16, %v1742_v16  ;;  %v1776_v33 = vrot.slane %v998_v7, %v1630_v17  ;;  %v1062_v34 = vcombine.high %v1054_v18, %v1054_v18  ;;  %v1780_v23 = vcombine.high %v1746_v19, %v1746_v19  ;;  %v1827_v55 = vld.sshfl [vmem:[%s2032_s3 + $0x10] sm:$0x1 pattern:$0x75316420] }
  0x29   :  { %v980_v35 = vcombine.high %v1749_v20, %v1749_v20  ;;  %v1785_v36 = vrot.slane %v999_v21, %v1630_v17  ;;  %v1788_v37 = vrot.slane %v1000_v22, %v1630_v17  ;;  %v981_v38 = vcombine.high %v1756_v25, %v1756_v25 }
  0x2a   :  { %v1793_v39 = vrot.slane %v1063_v26, %v1630_v17  ;;  %v1110_v40 = vrot.slane %v1096_v27, %v1630_v17  ;;  %v1797_v41 = vrot.slane %v1103_v14, %v1630_v17  ;;  %v982_v42 = vcombine.high %v1759_v12, %v1759_v12 }
  0x2b   :  { %v983_v43 = vcombine.high %v1762_v28, %v1762_v28  ;;  %v1029_v44 = vcombine.high %v1765_v29, %v1765_v29  ;;  %v1806_v45 = vrot.slane %v1111_v30, %v1630_v17  ;;  %v1030_v47 = vcombine.high %v1776_v33, %v1776_v33 }
  0x2c   :  { %v1811_v48 = vrot.slane %v1054_v18, %v1630_v17  ;;  %v1814_v49 = vrot.slane %v1061_v10, %v1630_v17  ;;  %v1817_v50 = vrot.slane %v1062_v34, %v1630_v17  ;;  %v1031_v53 = vcombine.high %v1785_v36, %v1785_v36 }
  0x2d   :  { %v1032_v54 = vcombine.high %v1788_v37, %v1788_v37  ;;  %v1095_v57 = vcombine.high %v1793_v39, %v1793_v39  ;;  %v1832_v58 = vrot.slane %v1110_v40, %v1630_v17  ;;  %v1141_v1 = vcombine.high %v1797_v41, %v1797_v41 }
  0x2e   :  { %v1112_v59 = vcombine.high %v1110_v40, %v1110_v40  ;;  %v1143_v63 = vcombine.high %v1806_v45, %v1806_v45  ;;  %v1046_v2 = vrot.slane %v1827_v55, %v1630_v17  ;;  %v1092_v3 = vcombine.high %v1811_v48, %v1811_v48 }
  0x2f   :  { %v1094_v5 = vcombine.high %v1817_v50, %v1817_v50 }
  0x30   :  { %v1853_v21 = vrot.slane %v1112_v59, %v1630_v17 }
  0xd7   :  { %v545_v46 = vpop.f32.mrf.mxu0 }
  0xd8   :  { %v574_v51 = vcombine.high %v545_v46, %v545_v46  ;;  %v581_v52 = vrot.slane %v545_v46, %v1630_v17 }
  0xd9   :  { %v1535_v56 = vpop.f32.mrf.mxu0 }
  0xda   :  { %v588_v60 = vrot.slane %v574_v51, %v1630_v17  ;;  %v589_v61 = vcombine.high %v581_v52, %v581_v52  ;;  %v597_v62 = vrot.slane %v581_v52, %v1630_v17 }
  0xdb   :  { %v550_v0 = vpop.f32.mrf.mxu0 }
  0xdc   :  { %v590_v6 = vcombine.high %v588_v60, %v588_v60  ;;  %v604_v7 = vrot.slane %v588_v60, %v1630_v17  ;;  %v611_v9 = vrot.slane %v589_v61, %v1630_v17  ;;  %v619_v10 = vcombine.high %v597_v62, %v597_v62 }
  0xdd   :  { %v889_v11 = vadd.f32 %v1731_v8, %v597_v62  ;;  %v623_v13 = vcombine.high %v550_v0, %v550_v0  ;;  %v630_v14 = vrot.slane %v550_v0, %v1630_v17  ;;  %v1538_v18 = vpop.f32.mrf.mxu0 }
  0xde   :  { %v618_v22 = vrot.slane %v590_v6, %v1630_v17  ;;  %v620_v26 = vcombine.high %v604_v7, %v604_v7  ;;  %v621_v27 = vcombine.high %v611_v9, %v611_v9  ;;  %v890_v30 = vadd.f32 %v1742_v16, %v611_v9 }
  0xdf   :  { %v891_v34 = vadd.f32 %v1753_v24, %v619_v10  ;;  %v893_v40 = vadd.f32 %v1739_v15, %v604_v7  ;;  %v1193_v46 = vadd.f32 %v1749_v20, %v889_v11  ;;  %v637_v51 = vrot.slane %v623_v13, %v1630_v17 }
  0xe0   :  { %v622_v52 = vcombine.high %v618_v22, %v618_v22  ;;  %v892_v56 = vadd.f32 %v1773_v32, %v621_v27  ;;  %v894_v59 = vadd.f32 %v1746_v19, %v618_v22  ;;  %v895_v60 = vadd.f32 %v1769_v31, %v620_v26 }
  0xe1   :  { %v1194_v61 = vadd.f32 %v1759_v12, %v890_v30  ;;  %v1195_v62 = vadd.f32 %v980_v35, %v891_v34  ;;  %v1197_v0 = vadd.f32 %v1756_v25, %v893_v40  ;;  %v638_v6 = vcombine.high %v630_v14, %v630_v14  ;;  %v560_v9 = vpop.f32.mrf.mxu1 }
  0xe2   :  { %v896_v7 = vadd.f32 %v1780_v23, %v622_v52  ;;  %v1196_v10 = vadd.f32 %v982_v42, %v892_v56  ;;  %v1198_v20 = vadd.f32 %v1762_v28, %v894_v59  ;;  %v1199_v11 = vadd.f32 %v981_v38, %v895_v60 }
  0xe3   :  { %v1261_v13 = vcombine.low %v1193_v46, %v1194_v61  ;;  %v639_v18 = vcombine.high %v637_v51, %v637_v51  ;;  %v646_v27 = vrot.slane %v630_v14, %v1630_v17  ;;  %v653_v22 = vrot.slane %v637_v51, %v1630_v17  ;;  %v1544_v26 = vpop.f32.mrf.mxu1 }
  0xe4   :  { %v1200_v4 = vadd.f32 %v983_v43, %v896_v7  ;;  %v1262_v12 = vcombine.low %v1195_v62, %v1196_v10  ;;  %v1263_v35 = vcombine.low %v1197_v0, %v1198_v20  ;;  %v660_v25 = vrot.slane %v638_v6, %v1630_v17 }
  0xe5   :  { %v1271_v30 = vrot.slane %v1261_v13, %v1630_v17  ;;  %v667_v34 = vrot.slane %v639_v18, %v1630_v17  ;;  %v668_v42 = vcombine.high %v646_v27, %v646_v27  ;;  %v669_v40 = vcombine.high %v653_v22, %v653_v22  ;;  %v1873_v28 = vpop.f32.mrf.mxu1 }
  0xe6   :  { %v1264_v38 = vcombine.low %v1199_v11, %v1200_v4  ;;  %v1278_v46 = vrot.slane %v1262_v12, %v1630_v17  ;;  %v1285_v14 = vrot.slane %v1263_v35, %v1630_v17  ;;  %v670_v51 = vcombine.high %v660_v25, %v660_v25 }
  0xe7   :  { %v671_v52 = vcombine.high %v667_v34, %v667_v34  ;;  %v897_v43 = vadd.f32 %v1731_v8, %v646_v27  ;;  %v898_v56 = vadd.f32 %v1742_v16, %v660_v25  ;;  %v899_v59 = vadd.f32 %v1753_v24, %v668_v42  ;;  %v1547_v60 = vpop.f32.mrf.mxu1 }
  0xe8   :  { %v1292_v61 = vrot.slane %v1264_v38, %v1630_v17  ;;  %v1293_v62 = vcombine.low %v1271_v30, %v1278_v46  ;;  %v900_v0 = vadd.f32 %v1773_v32, %v670_v51  ;;  %v901_v4 = vadd.f32 %v1739_v15, %v653_v22  ;;  %v1883_v6 = vpop.f32.mrf.mxu0 }
  0xe9   :  { %v902_v7 = vadd.f32 %v1746_v19, %v667_v34  ;;  %v903_v10 = vadd.f32 %v1769_v31, %v669_v40  ;;  %v904_v20 = vadd.f32 %v1780_v23, %v671_v52  ;;  %v1201_v11 = vadd.f32 %v1765_v29, %v897_v43 }
  0xea   :  { %v1294_v13 = vcombine.low %v1285_v14, %v1292_v61  ;;  %v1301_v18 = vrot.slane %v1293_v62, %v1630_v17  ;;  %v1202_v27 = vadd.f32 %v1785_v36, %v898_v56  ;;  %v1203_v26 = vadd.f32 %v1029_v44, %v899_v59  ;;  %v1541_v22 = vpop.f32.mrf.mxu0 }
  0xeb   :  { %v1204_v12 = vadd.f32 %v1031_v53, %v900_v0  ;;  %v1205_v35 = vadd.f32 %v1776_v33, %v901_v4  ;;  %v1206_v25 = vadd.f32 %v1788_v37, %v902_v7  ;;  %v1207_v30 = vadd.f32 %v1030_v47, %v903_v10 }
  0xec   :  { %v1308_v34 = vrot.slane %v1294_v13, %v1630_v17  ;;  %v1208_v29 = vadd.f32 %v1032_v54, %v904_v20  ;;  %v1310_v44 = vcombine.low %v1201_v11, %v1202_v27  ;;  %v721_v42 = vcombine.high %v560_v9, %v560_v9 }
  0xed   :  { %v1311_v40 = vcombine.low %v1203_v26, %v1204_v12  ;;  %v1312_v38 = vcombine.low %v1205_v35, %v1206_v25  ;;  %v728_v36 = vrot.slane %v560_v9, %v1630_v17  ;;  %v1142_v53 = vcombine.high %v1832_v58, %v1832_v58 }
  0xee   :  { %v1309_v46 = vcombine.low %v1301_v18, %v1308_v34  ;;  %v1313_v14 = vcombine.low %v1207_v30, %v1208_v29  ;;  %v735_v33 = vrot.slane %v721_v42, %v1630_v17  ;;  %v672_v47 = vcombine.high %v1883_v6, %v1883_v6 }
  0xef   :  { %v1320_v51 = vrot.slane %v1310_v44, %v1630_v17  ;;  %v1327_v37 = vrot.slane %v1311_v40, %v1630_v17  ;;  %v736_v54 = vcombine.high %v728_v36, %v728_v36  ;;  %v744_v52 = vrot.slane %v728_v36, %v1630_v17 }
  0xf0   :  { %1491 = vst.msk [vmem:[%s2033_s4] sm:$0xff] %vm468_vm1, %v1309_v46  ;;  %v1334_v9 = vrot.slane %v1312_v38, %v1630_v17  ;;  %v1341_v43 = vrot.slane %v1313_v14, %v1630_v17  ;;  %v737_v56 = vcombine.high %v735_v33, %v735_v33  ;;  %v751_v59 = vrot.slane %v735_v33, %v1630_v17 }
  0xf1   :  { %v1342_v60 = vcombine.low %v1320_v51, %v1327_v37  ;;  %v758_v61 = vrot.slane %v736_v54, %v1630_v17  ;;  %v766_v62 = vcombine.high %v744_v52, %v744_v52  ;;  %v679_v0 = vrot.slane %v1883_v6, %v1630_v17 }
  0xf2   :  { %v1343_v4 = vcombine.low %v1334_v9, %v1341_v43  ;;  %v765_v7 = vrot.slane %v737_v56, %v1630_v17  ;;  %v767_v10 = vcombine.high %v751_v59, %v751_v59  ;;  %v913_v20 = vadd.f32 %v1780_v23, %v744_v52 }
  0xf3   :  { %v768_v11 = vcombine.high %v758_v61, %v758_v61  ;;  %v914_v13 = vadd.f32 %v1731_v8, %v758_v61  ;;  %v915_v18 = vadd.f32 %v1742_v16, %v766_v62  ;;  %v917_v27 = vadd.f32 %v1773_v32, %v751_v59 }
  0xf4   :  { %v1350_v6 = vrot.slane %v1342_v60, %v1630_v17  ;;  %v1357_v22 = vrot.slane %v1343_v4, %v1630_v17  ;;  %v769_v12 = vcombine.high %v765_v7, %v765_v7  ;;  %v918_v35 = vadd.f32 %v1739_v15, %v765_v7 }
  0xf5   :  { %v916_v25 = vadd.f32 %v1753_v24, %v768_v11  ;;  %v919_v30 = vadd.f32 %v1746_v19, %v767_v10  ;;  %v1218_v34 = vadd.f32 %v1797_v41, %v914_v13  ;;  %v1219_v29 = vadd.f32 %v1806_v45, %v915_v18 }
  0xf6   :  { %v1358_v44 = vcombine.low %v1350_v6, %v1357_v22  ;;  %v920_v42 = vadd.f32 %v1769_v31, %v769_v12  ;;  %v1144_v40 = vcombine.high %v1853_v21, %v1853_v21  ;;  %v1221_v46 = vadd.f32 %v1143_v63, %v917_v27 }
  0xf7   :  { %v1933_v26 = vld.sshfl [vmem:[%s2032_s3 + $0x28] sm:$0x1 pattern:$0x75316420]  ;;  %v1220_v36 = vadd.f32 %v1141_v1, %v916_v25  ;;  %v686_v14 = vrot.slane %v672_v47, %v1630_v17  ;;  %v687_v33 = vcombine.high %v679_v0, %v679_v0  ;;  %v1217_v51 = vadd.f32 %v1095_v57, %v913_v20 }
  0xf8   :  { %v1158_v38 = vrot.slane %v1933_v26, %v1630_v17  ;;  %1492 = vst.msk [vmem:[%s2033_s4 + $0x8] sm:$0xff] %vm468_vm1, %v1358_v44  ;;  %v1222_v37 = vadd.f32 %v1832_v58, %v918_v35  ;;  %v1422_v41 = vcombine.low %v1218_v34, %v1219_v29  ;;  %v695_v1 = vrot.slane %v679_v0, %v1630_v17 }
  0xf9   :  { %v688_v54 = vcombine.high %v686_v14, %v686_v14  ;;  %v702_v45 = vrot.slane %v686_v14, %v1630_v17  ;;  %v776_v63 = vrot.slane %v1873_v28, %v1630_v17  ;;  %v1223_v47 = vadd.f32 %v1853_v21, %v919_v30 }
  0xfa   :  { %v709_v52 = vrot.slane %v687_v33, %v1630_v17  ;;  %v717_v9 = vcombine.high %v695_v1, %v695_v1  ;;  %v905_v43 = vadd.f32 %v1731_v8, %v695_v1  ;;  %v1224_v57 = vadd.f32 %v1142_v53, %v920_v42 }
  0xfb   :  { %v1423_v56 = vcombine.low %v1220_v36, %v1221_v46  ;;  %v716_v58 = vrot.slane %v688_v54, %v1630_v17  ;;  %v718_v59 = vcombine.high %v702_v45, %v702_v45  ;;  %v909_v60 = vadd.f32 %v1773_v32, %v702_v45 }
  0xfc   :  { %v719_v61 = vcombine.high %v709_v52, %v709_v52  ;;  %v906_v62 = vadd.f32 %v1731_v8, %v709_v52  ;;  %v907_v0 = vadd.f32 %v1742_v16, %v717_v9  ;;  %v1209_v21 = vadd.f32 %v1046_v2, %v905_v43 }
  0xfd   :  { %v720_v28 = vcombine.high %v716_v58, %v716_v58  ;;  %v910_v4 = vadd.f32 %v1739_v15, %v716_v58  ;;  %v911_v53 = vadd.f32 %v1746_v19, %v718_v59  ;;  %v777_v7 = vcombine.high %v776_v63, %v776_v63 }
  0xfe   :  { %v1432_v10 = vrot.slane %v1422_v41, %v1630_v17  ;;  %v908_v20 = vadd.f32 %v1753_v24, %v719_v61  ;;  %v1210_v32 = vadd.f32 %v1811_v48, %v906_v62  ;;  %v1211_v11 = vadd.f32 %v1817_v50, %v907_v0 }
  0xff   :  { %v912_v16 = vadd.f32 %v1769_v31, %v720_v28  ;;  %v1213_v55 = vadd.f32 %v1094_v5, %v909_v60  ;;  %v1214_v2 = vadd.f32 %v1814_v49, %v910_v4  ;;  %v1215_v15 = vadd.f32 %v1793_v39, %v911_v53 }
 0x100   :  { %v1212_v19 = vadd.f32 %v1092_v3, %v908_v20  ;;  %v1365_v24 = vrot.slane %v1209_v21, %v1630_v17  ;;  %v1373_v13 = vcombine.low %v1210_v32, %v1211_v11  ;;  %v784_v18 = vrot.slane %v776_v63, %v1630_v17 }
 0x101   :  { %v1439_v27 = vrot.slane %v1423_v56, %v1630_v17  ;;  %v2034_v31 = vcombine.high %v1814_v49, %v1814_v49  ;;  %v1375_v5 = vcombine.low %v1214_v2, %v1215_v15  ;;  %v791_v26 = vrot.slane %v777_v7, %v1630_v17 }
 0x102   :  { %v1372_v39 = vrot.slane %v1365_v24, %v1630_v17  ;;  %v1374_v6 = vcombine.low %v1212_v19, %v1213_v55  ;;  %v921_v48 = vadd.f32 %v1780_v23, %v784_v18  ;;  %v1424_v3 = vcombine.low %v1222_v37, %v1223_v47 }
 0x103   :  { %v1216_v50 = vadd.f32 %v2034_v31, %v912_v16  ;;  %v922_v12 = vadd.f32 %v1731_v8, %v791_v26  ;;  %v1383_v35 = vrot.slane %v1373_v13, %v1630_v17  ;;  %v1397_v30 = vrot.slane %v1375_v5, %v1630_v17 }
 0x104   :  { %v1390_v25 = vrot.slane %v1374_v6, %v1630_v17  ;;  %1494 = vst.msk [vmem:[%s2033_s4 + $0x10] sm:$0x1] %vm1493_vm2, %v1372_v39  ;;  %v1225_v49 = vadd.f32 %v1144_v40, %v921_v48  ;;  %v1454_v23 = vcombine.low %v1432_v10, %v1439_v27  ;;  %v1446_v8 = vrot.slane %v1424_v3, %v1630_v17 }
 0x105   :  { %v1376_v22 = vcombine.low %v1216_v50, %v1217_v51  ;;  %v1226_v29 = vadd.f32 %v1158_v38, %v922_v12 }
 0x106   :  { %v1405_v44 = vcombine.low %v1383_v35, %v1390_v25  ;;  %v1425_v42 = vcombine.low %v1224_v57, %v1225_v49  ;;  %v1462_v37 = vrot.slane %v1454_v23, %v1630_v17 }
 0x107   :  { %v1404_v34 = vrot.slane %v1376_v22, %v1630_v17  ;;  %v1477_v46 = vrot.slane %v1226_v29, %v1630_v17 }
 0x108   :  { %v1453_v14 = vrot.slane %v1425_v42, %v1630_v17  ;;  %v1413_v33 = vrot.slane %v1405_v44, %v1630_v17 }
 0x109   :  { %v1406_v36 = vcombine.low %v1397_v30, %v1404_v34  ;;  %v1484_v40 = vrot.slane %v1477_v46, %v1630_v17 }
 0x10a   :  { %v1455_v41 = vcombine.low %v1446_v8, %v1453_v14 }
 0x10b   :  { %v1420_v51 = vrot.slane %v1406_v36, %v1630_v17  ;;  %1497 = vst.msk [vmem:[%s2033_s4 + $0x28] sm:$0x1] %vm1493_vm2, %v1484_v40 }
 0x10c   :  { %v1469_v1 = vrot.slane %v1455_v41, %v1630_v17 }
 0x10d   :  { %v1421_v38 = vcombine.low %v1413_v33, %v1420_v51 }
 0x10e   :  { %v1470_v54 = vcombine.low %v1462_v37, %v1469_v1 }
 0x10f   :  { %1495 = vst.msk [vmem:[%s2033_s4 + $0x18] sm:$0xff] %vm468_vm1, %v1421_v38 }
 0x110   :  { %1496 = vst.msk [vmem:[%s2033_s4 + $0x20] sm:$0xff] %vm468_vm1, %v1470_v54 }

// kernel: _lambda_.28
= control target key start
LH: loop header
LB: loop body
LE: loop exit
PB: predicated region body
PF: predicated region fallthrough
CT: control target
= control target key end

     0   :  { %v30_v0 = vlaneseq  ;;  %v1629_v1 = vmov 0.0   ;;  %v1630_v4 = vmov 1966171168   ;;  %vm1631_vm0 = vmmov 0   ;;  %s2208_s1 = inlined_call_operand.vmem [shape: f32[32,128], index: 1, kind: input, shape index: {}]   ;;  %s2209_s0 = inlined_call_operand.vmem [shape: f32[2,17,32], index: 0, kind: input, shape index: {}]   ;;  %s2210_s2 = inlined_call_operand.vmem [shape: f32[1,1,128], index: 2, kind: input, shape index: {}]   ;;  %s2211_s3 = inlined_call_operand.vmem [shape: f32[2,17,128], index: 3, kind: output, shape index: {}]  }
   0x1   :  { %1523 = vmatprep.subr.mxu0 %v1629_v1  ;;  %v253_v2 = vld [vmem:[%s2208_s1 + $0x18] sm:$0xff]  ;;  %1546 = vmatprep.subr.mxu1 %v1629_v1  ;;  %v252_v3 = vld [vmem:[%s2208_s1 + $0x10] sm:$0xff]  ;;  %v28_v5 = vunpack.c.l.s4 %v1630_v4  ;;  %v14_v6 = vld [vmem:[%s2209_s0] sm:$0xff]  ;;  %vm465_vm1 = vcmask 261120  }
   0x2   :  { %1524 = vmatpush3.msra.mxu0 %v253_v2  ;;  %1550 = vmatpush3.msra.mxu1 %v253_v2  ;;  %v31_v7 = vshrl.u32 %v30_v0, 7  ;;  %v1666_v8 = vld [vmem:[%s2209_s0 + $0x18] sm:$0xff]  ;;  %v251_v9 = vld [vmem:[%s2208_s1 + $0x8] sm:$0xff]  ;;  %v26_v10 = vcombine.high %v14_v6, %v14_v6  ;;  %v18_v12 = vld [vmem:[%s2209_s0 + $0x20] sm:$0xff] }
   0x3   :  { %1525 = vmatprep.subr.mxu0 %v1629_v1  ;;  %1547 = vmatprep.subr.mxu1 %v1629_v1  ;;  %v29_v11 = vunpack.c.0.s8 %v28_v5  ;;  %v138_v13 = vcombine.high %v1666_v8, %v1666_v8  ;;  %v15_v14 = vld [vmem:[%s2209_s0 + $0x8] sm:$0xff]  ;;  %v187_v15 = vcombine.high %v18_v12, %v18_v12  ;;  %v250_v16 = vld [vmem:[%s2208_s1] sm:$0xff] }
   0x4   :  { %1526 = vmatpush3.msra.mxu0 %v252_v3  ;;  %1551 = vmatpush3.msra.mxu1 %v252_v3  ;;  %v75_v18 = vcombine.high %v15_v14, %v15_v14  ;;  %v1501_v2 = vld.sshfl [vmem:[%s2209_s0 + $0x28] sm:$0x1 pattern:$0x75316420] }
   0x5   :  { %1527 = vmatprep.subr.mxu0 %v1629_v1  ;;  %1548 = vmatprep.subr.mxu1 %v1629_v1  ;;  %v1686_v17 = vsub.s32 %v29_v11, %v31_v7 }
   0x6   :  { %1528 = vmatpush3.msra.mxu0 %v251_v9  ;;  %1552 = vmatpush3.msra.mxu1 %v251_v9 }
   0x7   :  { %1529 = vmatprep.subr.mxu0 %v1629_v1  ;;  %1531 = vmatprep.mubr.msk.f32.mxu0 %vm1631_vm0, %v1629_v1  ;;  %v33_v19 = vrot.slane %v14_v6, %v1686_v17  ;;  %v40_v20 = vrot.slane %v26_v10, %v1686_v17  ;;  %v1694_v21 = vrot.slane %v138_v13, %v1686_v17 }
   0x8   :  { %1530 = vmatpush3.msra.mxu0 %v250_v16  ;;  %1549 = vmatprep.subr.mxu1 %v1629_v1  ;;  %v194_v22 = vrot.slane %v18_v12, %v1686_v17  ;;  %v201_v23 = vrot.slane %v187_v15, %v1686_v17  ;;  %v82_v24 = vrot.slane %v15_v14, %v1686_v17  ;;  %v1500_v12 = vld.sshfl [vmem:[%s2209_s0 + $0x10] sm:$0x1 pattern:$0x75316420] }
   0x9   :  { %v41_v25 = vcombine.high %v33_v19, %v33_v19  ;;  %v42_v26 = vcombine.high %v40_v20, %v40_v20  ;;  %v49_v27 = vrot.slane %v33_v19, %v1686_v17  ;;  %v56_v28 = vrot.slane %v40_v20, %v1686_v17  ;;  %1553 = vmatpush3.msra.mxu1 %v250_v16 }
   0xa   :  { %1540 = vmatprep.mubr.msk.f32.mxu1 %vm1631_vm0, %v1629_v1  ;;  %v154_v29 = vcombine.high %v1694_v21, %v1694_v21  ;;  %v202_v30 = vcombine.high %v194_v22, %v194_v22  ;;  %v203_v31 = vcombine.high %v201_v23, %v201_v23  ;;  %v210_v32 = vrot.slane %v194_v22, %v1686_v17 }
   0xb   :  { %v63_v33 = vrot.slane %v41_v25, %v1686_v17  ;;  %v70_v34 = vrot.slane %v42_v26, %v1686_v17  ;;  %v217_v35 = vrot.slane %v201_v23, %v1686_v17  ;;  %v89_v36 = vrot.slane %v75_v18, %v1686_v17 }
   0xc   :  { %v1712_v37 = vrot.slane %v154_v29, %v1686_v17  ;;  %v224_v38 = vrot.slane %v202_v30, %v1686_v17  ;;  %v231_v39 = vrot.slane %v203_v31, %v1686_v17  ;;  %v232_v40 = vcombine.high %v210_v32, %v210_v32 }
   0xd   :  { %v254_v41 = vcombine.low %v49_v27, %v63_v33  ;;  %v1502_v42 = vcombine.high %v49_v27, %v63_v33  ;;  %v256_v43 = vcombine.low %v56_v28, %v70_v34  ;;  %v1503_v44 = vcombine.high %v56_v28, %v70_v34 }
   0xe   :  { %v186_v45 = vcombine.high %v1712_v37, %v1712_v37  ;;  %v233_v46 = vcombine.high %v217_v35, %v217_v35  ;;  %v234_v47 = vcombine.high %v224_v38, %v224_v38  ;;  %v402_v48 = vcombine.low %v224_v38, %v232_v40 }
   0xf   :  { %v264_v49 = vrot.slane %v254_v41, %v1686_v17  ;;  %v271_v50 = vrot.slane %v1502_v42, %v1686_v17  ;;  %v278_v51 = vrot.slane %v256_v43, %v1686_v17  ;;  %v285_v52 = vrot.slane %v1503_v44, %v1686_v17 }
  0x10   :  { %v401_v53 = vcombine.low %v186_v45, %v210_v32  ;;  %v403_v54 = vcombine.low %v234_v47, %v217_v35  ;;  %v404_v55 = vcombine.low %v231_v39, %v233_v46  ;;  %v418_v56 = vrot.slane %v402_v48, %v1686_v17 }
  0x11   :  { %v286_v57 = vcombine.low %v264_v49, %v271_v50  ;;  %v287_v58 = vcombine.low %v278_v51, %v285_v52  ;;  %v90_v59 = vcombine.high %v82_v24, %v82_v24  ;;  %v91_v60 = vcombine.high %v89_v36, %v89_v36 }
  0x12   :  { %v411_v61 = vrot.slane %v401_v53, %v1686_v17  ;;  %v425_v62 = vrot.slane %v403_v54, %v1686_v17  ;;  %v432_v63 = vrot.slane %v404_v55, %v1686_v17  ;;  %v98_v0 = vrot.slane %v82_v24, %v1686_v17 }
  0x13   :  { %v294_v3 = vrot.slane %v286_v57, %v1686_v17  ;;  %v301_v4 = vrot.slane %v287_v58, %v1686_v17  ;;  %v105_v5 = vrot.slane %v89_v36, %v1686_v17  ;;  %v112_v6 = vrot.slane %v90_v59, %v1686_v17 }
  0x14   :  { %v433_v7 = vcombine.low %v411_v61, %v418_v56  ;;  %v434_v9 = vcombine.low %v425_v62, %v432_v63  ;;  %v119_v10 = vrot.slane %v91_v60, %v1686_v17  ;;  %v235_v11 = vcombine.high %v231_v39, %v231_v39  ;;  %v1511_v56 = vld [vmem:[%s2210_s2] ss:$0 sm:$0xff] }
  0x15   :  { %v302_v13 = vcombine.low %v294_v3, %v301_v4  ;;  %v303_v14 = vcombine.low %v98_v0, %v112_v6  ;;  %v1504_v15 = vcombine.high %v98_v0, %v112_v6  ;;  %v249_v16 = vrot.slane %v1501_v2, %v1686_v17 }
  0x16   :  { %v441_v18 = vrot.slane %v433_v7, %v1686_v17  ;;  %v448_v19 = vrot.slane %v434_v9, %v1686_v17  ;;  %v305_v20 = vcombine.low %v105_v5, %v119_v10  ;;  %v1505_v22 = vcombine.high %v105_v5, %v119_v10 }
  0x17   :  { %1532 = vmatmul.mubr.msk.f32.vlgmr.msra.gmra.mxu0 %vm465_vm1, %v302_v13  ;;  %v313_v23 = vrot.slane %v303_v14, %v1686_v17  ;;  %v320_v24 = vrot.slane %v1504_v15, %v1686_v17  ;;  %v450_v25 = vcombine.low %v235_v11, %v249_v16  ;;  %v137_v26 = vrot.slane %v1500_v12, %v1686_v17 }
  0x18   :  { %v449_v27 = vcombine.low %v441_v18, %v448_v19  ;;  %1534 = vmatprep.mubr.msk.f32.mxu0 %vm1631_vm0, %v1629_v1  ;;  %v327_v28 = vrot.slane %v305_v20, %v1686_v17  ;;  %v334_v29 = vrot.slane %v1505_v22, %v1686_v17  ;;  %v145_v30 = vrot.slane %v1666_v8, %v1686_v17 }
  0x19   :  { %v335_v31 = vcombine.low %v313_v23, %v320_v24  ;;  %v457_v32 = vrot.slane %v450_v25, %v1686_v17  ;;  %v168_v33 = vrot.slane %v1694_v21, %v1686_v17  ;;  %v829_v57 = vcombine.high %v1511_v56, %v1511_v56 }
  0x1a   :  { %1541 = vmatmul.mubr.msk.f32.vlgmr.msra.gmra.mxu1 %vm465_vm1, %v449_v27  ;;  %v336_v34 = vcombine.low %v327_v28, %v334_v29  ;;  %v153_v35 = vcombine.high %v145_v30, %v145_v30  ;;  %v161_v36 = vrot.slane %v145_v30, %v1686_v17  ;;  %v836_v58 = vrot.slane %v1511_v56, %v1686_v17 }
  0x1b   :  { %v343_v38 = vrot.slane %v335_v31, %v1686_v17  ;;  %1543 = vmatprep.mubr.msk.f32.mxu1 %vm1631_vm0, %v1629_v1  ;;  %v464_v39 = vrot.slane %v457_v32, %v1686_v17  ;;  %v184_v8 = vcombine.high %v168_v33, %v168_v33 }
  0x1c   :  { %v350_v40 = vrot.slane %v336_v34, %v1686_v17  ;;  %v175_v41 = vrot.slane %v153_v35, %v1686_v17  ;;  %v183_v42 = vcombine.high %v161_v36, %v161_v36  ;;  %v352_v21 = vcombine.low %v137_v26, %v161_v36 }
  0x1d   :  { %v355_v43 = vcombine.low %v1712_v37, %v184_v8  ;;  %v844_v59 = vcombine.high %v836_v58, %v836_v58  ;;  %v1780_v61 = vrot.slane %v836_v58, %v1686_v17 }
  0x1e   :  { %v351_v44 = vcombine.low %v343_v38, %v350_v40  ;;  %1544 = vmatmul.mubr.msk.f32.gmra.mxu1 %vm465_vm1, %v464_v39  ;;  %v185_v45 = vcombine.high %v175_v41, %v175_v41  ;;  %v353_v46 = vcombine.low %v175_v41, %v183_v42  ;;  %v362_v47 = vrot.slane %v352_v21, %v1686_v17 }
  0x1f   :  { %v383_v50 = vrot.slane %v355_v43, %v1686_v17  ;;  %v1786_v0 = vrot.slane %v844_v59, %v1686_v17  ;;  %v1794_v5 = vcombine.high %v1780_v61, %v1780_v61 }
  0x20   :  { %1535 = vmatmul.mubr.msk.f32.gmra.mxu0 %vm465_vm1, %v351_v44  ;;  %v354_v48 = vcombine.low %v185_v45, %v168_v33  ;;  %v369_v49 = vrot.slane %v353_v46, %v1686_v17 }
  0x21   :  { %1537 = vmatprep.mubr.msk.f32.mxu0 %vm1631_vm0, %v1629_v1  ;;  %v843_v1 = vrot.slane %v829_v57, %v1686_v17  ;;  %v1804_v13 = vcombine.high %v1786_v0, %v1786_v0 }
  0x22   :  { %v376_v51 = vrot.slane %v354_v48, %v1686_v17  ;;  %v384_v37 = vcombine.low %v362_v47, %v369_v49 }
  0x23   :  { %v845_v60 = vcombine.high %v843_v1, %v843_v1  ;;  %v1783_v62 = vrot.slane %v843_v1, %v1686_v17 }
  0x24   :  { %v385_v52 = vcombine.low %v376_v51, %v383_v50  ;;  %v392_v53 = vrot.slane %v384_v37, %v1686_v17 }
  0x25   :  { %v1789_v2 = vrot.slane %v845_v60, %v1686_v17  ;;  %v1800_v11 = vcombine.high %v1783_v62, %v1783_v62 }
  0x26   :  { %v399_v54 = vrot.slane %v385_v52, %v1686_v17 }
  0x27   :  { %v1808_v14 = vcombine.high %v1789_v2, %v1789_v2 }
  0x28   :  { %v400_v55 = vcombine.low %v392_v53, %v399_v54 }
  0x2a   :  { %1538 = vmatmul.mubr.msk.f32.gmra.mxu0 %vm465_vm1, %v400_v55 }
  0xd7   :  { %v542_v63 = vpop.f32.mrf.mxu0 }
  0xd8   :  { %v571_v3 = vcombine.high %v542_v63, %v542_v63  ;;  %v578_v4 = vrot.slane %v542_v63, %v1686_v17 }
  0xd9   :  { %v1533_v6 = vpop.f32.mrf.mxu0 }
  0xda   :  { %v585_v7 = vrot.slane %v571_v3, %v1686_v17  ;;  %v586_v9 = vcombine.high %v578_v4, %v578_v4  ;;  %v594_v10 = vrot.slane %v578_v4, %v1686_v17  ;;  %v557_v12 = vpop.f32.mrf.mxu1 }
  0xdb   :  { %v718_v15 = vcombine.high %v557_v12, %v557_v12  ;;  %v1811_v16 = vrot.slane %v557_v12, %v1686_v17 }
  0xdc   :  { %v587_v18 = vcombine.high %v585_v7, %v585_v7  ;;  %v601_v19 = vrot.slane %v585_v7, %v1686_v17  ;;  %v608_v20 = vrot.slane %v586_v9, %v1686_v17  ;;  %v616_v22 = vcombine.high %v594_v10, %v594_v10  ;;  %v1542_v23 = vpop.f32.mrf.mxu1 }
  0xdd   :  { %v1816_v24 = vadd.f32 %v1780_v61, %v594_v10  ;;  %v1819_v25 = vrot.slane %v718_v15, %v1686_v17  ;;  %v733_v26 = vcombine.high %v1811_v16, %v1811_v16  ;;  %v1825_v27 = vrot.slane %v1811_v16, %v1686_v17 }
  0xde   :  { %v615_v28 = vrot.slane %v587_v18, %v1686_v17  ;;  %v617_v29 = vcombine.high %v601_v19, %v601_v19  ;;  %v618_v30 = vcombine.high %v608_v20, %v608_v20  ;;  %v1829_v31 = vadd.f32 %v1786_v0, %v608_v20  ;;  %v1831_v32 = vpop.f32.mrf.mxu1 }
  0xdf   :  { %v1834_v33 = vadd.f32 %v1794_v5, %v616_v22  ;;  %v1837_v34 = vadd.f32 %v1783_v62, %v601_v19  ;;  %v920_v35 = vmul.f32 %v1816_v24, %v1816_v24  ;;  %v734_v36 = vcombine.high %v1819_v25, %v1819_v25 }
  0xe0   :  { %v619_v38 = vcombine.high %v615_v28, %v615_v28  ;;  %v1844_v39 = vadd.f32 %v1804_v13, %v618_v30  ;;  %v1847_v8 = vadd.f32 %v1789_v2, %v615_v28  ;;  %v1850_v40 = vadd.f32 %v1800_v11, %v617_v29  ;;  %v1852_v41 = vpop.f32.mrf.mxu0  ;;  %v1545_v42 = vpop.f32.mrf.mxu1 }
  0xe1   :  { %v921_v21 = vmul.f32 %v1829_v31, %v1829_v31  ;;  %v922_v43 = vmul.f32 %v1834_v33, %v1834_v33  ;;  %v924_v44 = vmul.f32 %v1837_v34, %v1837_v34  ;;  %v954_v45 = vmul.f32 %v920_v35, %v1816_v24 }
  0xe2   :  { %v1862_v46 = vadd.f32 %v1808_v14, %v619_v38  ;;  %v923_v47 = vmul.f32 %v1844_v39, %v1844_v39  ;;  %v925_v48 = vmul.f32 %v1847_v8, %v1847_v8  ;;  %v926_v49 = vmul.f32 %v1850_v40, %v1850_v40  ;;  %v1536_v50 = vpop.f32.mrf.mxu0 }
  0xe3   :  { %v955_v51 = vmul.f32 %v921_v21, %v1829_v31  ;;  %v956_v37 = vmul.f32 %v922_v43, %v1834_v33  ;;  %v958_v52 = vmul.f32 %v924_v44, %v1837_v34  ;;  %v988_v53 = vmul.f32 0.044715, %v954_v45 }
  0xe4   :  { %v927_v54 = vmul.f32 %v1862_v46, %v1862_v46  ;;  %v957_v55 = vmul.f32 %v923_v47, %v1844_v39  ;;  %v959_v56 = vmul.f32 %v925_v48, %v1847_v8  ;;  %v960_v57 = vmul.f32 %v926_v49, %v1850_v40 }
  0xe5   :  { %v989_v58 = vmul.f32 0.044715, %v955_v51  ;;  %v990_v1 = vmul.f32 0.044715, %v956_v37  ;;  %v992_v59 = vmul.f32 0.044715, %v958_v52  ;;  %v1022_v60 = vadd.f32 %v988_v53, %v1816_v24 }
  0xe6   :  { %v961_v63 = vmul.f32 %v927_v54, %v1862_v46  ;;  %v991_v3 = vmul.f32 0.044715, %v957_v55  ;;  %v993_v4 = vmul.f32 0.044715, %v959_v56  ;;  %v994_v6 = vmul.f32 0.044715, %v960_v57 }
  0xe7   :  { %v1023_v7 = vadd.f32 %v989_v58, %v1829_v31  ;;  %v1024_v9 = vadd.f32 %v990_v1, %v1834_v33  ;;  %v1026_v10 = vadd.f32 %v992_v59, %v1837_v34  ;;  %v1056_v12 = vmul.f32 0.7978846, %v1022_v60 }
  0xe8   :  { %v995_v15 = vmul.f32 0.044715, %v961_v63  ;;  %v1025_v16 = vadd.f32 %v991_v3, %v1844_v39  ;;  %v1027_v18 = vadd.f32 %v993_v4, %v1847_v8  ;;  %v1028_v19 = vadd.f32 %v994_v6, %v1850_v40 }
  0xe9   :  { %v1057_v20 = vmul.f32 0.7978846, %v1023_v7  ;;  %v1058_v22 = vmul.f32 0.7978846, %v1024_v9  ;;  %1561 = vtanh.f32 %v1056_v12  ;;  %v1060_v29 = vmul.f32 0.7978846, %v1026_v10 }
  0xea   :  { %v1029_v23 = vadd.f32 %v995_v15, %v1862_v46  ;;  %v1059_v28 = vmul.f32 0.7978846, %v1025_v16  ;;  %v1061_v30 = vmul.f32 0.7978846, %v1027_v18  ;;  %v1887_v35 = vpop.f32.mrf.mxu0  ;;  %v748_v38 = vrot.slane %v1819_v25, %v1686_v17 }
  0xeb   :  { %1563 = vtanh.f32 %v1057_v20  ;;  %v755_v42 = vrot.slane %v733_v26, %v1686_v17  ;;  %v762_v21 = vrot.slane %v734_v36, %v1686_v17  ;;  %v1062_v43 = vmul.f32 0.7978846, %v1028_v19 }
  0xec   :  { %v1063_v44 = vmul.f32 0.7978846, %v1029_v23  ;;  %1565 = vtanh.f32 %v1058_v22  ;;  %v763_v45 = vcombine.high %v1825_v27, %v1825_v27  ;;  %v1539_v47 = vpop.f32.mrf.mxu0  ;;  %v764_v48 = vcombine.high %v748_v38, %v748_v38 }
  0xed   :  { %1567 = vtanh.f32 %v1059_v28  ;;  %v765_v49 = vcombine.high %v755_v42, %v755_v42  ;;  %v766_v50 = vcombine.high %v762_v21, %v762_v21  ;;  %v1896_v51 = vadd.f32 %v1780_v61, %v755_v42 }
  0xee   :  { %1569 = vtanh.f32 %v1060_v29  ;;  %v1899_v25 = vadd.f32 %v1786_v0, %v763_v45  ;;  %v1902_v26 = vadd.f32 %v1804_v13, %v748_v38  ;;  %v1908_v37 = vadd.f32 %v1783_v62, %v762_v21 }
  0xef   :  { %1571 = vtanh.f32 %v1061_v30  ;;  %v1905_v36 = vadd.f32 %v1794_v5, %v765_v49  ;;  %v1911_v52 = vadd.f32 %v1789_v2, %v764_v48  ;;  %v1915_v53 = vadd.f32 %v1808_v14, %v1825_v27 }
  0xf0   :  { %1573 = vtanh.f32 %v1062_v43  ;;  %v1918_v54 = vadd.f32 %v1800_v11, %v766_v50  ;;  %v945_v55 = vmul.f32 %v1896_v51, %v1896_v51  ;;  %v946_v56 = vmul.f32 %v1899_v25, %v1899_v25 }
  0xf1   :  { %1575 = vtanh.f32 %v1063_v44  ;;  %v947_v57 = vmul.f32 %v1905_v36, %v1905_v36  ;;  %v948_v58 = vmul.f32 %v1902_v26, %v1902_v26  ;;  %v949_v27 = vmul.f32 %v1908_v37, %v1908_v37 }
  0xf2   :  { %v950_v1 = vmul.f32 %v1911_v52, %v1911_v52  ;;  %v951_v59 = vmul.f32 %v1918_v54, %v1918_v54  ;;  %v979_v60 = vmul.f32 %v945_v55, %v1896_v51  ;;  %v980_v63 = vmul.f32 %v946_v56, %v1899_v25 }
  0xf3   :  { %v981_v3 = vmul.f32 %v947_v57, %v1905_v36  ;;  %v982_v4 = vmul.f32 %v948_v58, %v1902_v26  ;;  %v944_v6 = vmul.f32 %v1915_v53, %v1915_v53  ;;  %v983_v7 = vmul.f32 %v949_v27, %v1908_v37 }
  0xf4   :  { %v984_v9 = vmul.f32 %v950_v1, %v1911_v52  ;;  %v985_v10 = vmul.f32 %v951_v59, %v1918_v54  ;;  %v1013_v12 = vmul.f32 0.044715, %v979_v60  ;;  %v1014_v15 = vmul.f32 0.044715, %v980_v63 }
  0xf5   :  { %v1015_v16 = vmul.f32 0.044715, %v981_v3  ;;  %v1016_v19 = vmul.f32 0.044715, %v982_v4  ;;  %v1017_v20 = vmul.f32 0.044715, %v983_v7  ;;  %v1946_v42 = vmul.f32 %v944_v6, %v1915_v53 }
  0xf6   :  { %v1562_v18 = vpop.eup %1561  ;;  %v1018_v22 = vmul.f32 0.044715, %v984_v9  ;;  %v1019_v28 = vmul.f32 0.044715, %v985_v10  ;;  %v1047_v29 = vadd.f32 %v1013_v12, %v1896_v51  ;;  %v1048_v30 = vadd.f32 %v1014_v15, %v1899_v25 }
  0xf7   :  { %v1124_v23 = vadd.f32 1.0, %v1562_v18  ;;  %v1049_v21 = vadd.f32 %v1015_v16, %v1905_v36  ;;  %v620_v43 = vcombine.high %v1852_v41, %v1852_v41  ;;  %v1050_v48 = vadd.f32 %v1016_v19, %v1902_v26 }
  0xf8   :  { %v1564_v38 = vpop.eup %1563  ;;  %v1051_v49 = vadd.f32 %v1017_v20, %v1908_v37  ;;  %v1052_v56 = vadd.f32 %v1018_v22, %v1911_v52  ;;  %v1053_v57 = vadd.f32 %v1019_v28, %v1918_v54  ;;  %v1081_v58 = vmul.f32 0.7978846, %v1047_v29 }
  0xf9   :  { %v1566_v44 = vpop.eup %1565  ;;  %v1125_v45 = vadd.f32 1.0, %v1564_v38  ;;  %v1158_v47 = vmul.f32 0.5, %v1124_v23  ;;  %v1082_v60 = vmul.f32 0.7978846, %v1048_v30  ;;  %v627_v63 = vrot.slane %v1852_v41, %v1686_v17 }
  0xfa   :  { %v1568_v50 = vpop.eup %1567  ;;  %v1126_v55 = vadd.f32 1.0, %v1566_v44  ;;  %v1083_v9 = vmul.f32 0.7978846, %v1049_v21  ;;  %v1084_v18 = vmul.f32 0.7978846, %v1050_v48  ;;  %1577 = vtanh.f32 %v1081_v58 }
  0xfb   :  { %v1570_v27 = vpop.eup %1569  ;;  %v1127_v1 = vadd.f32 1.0, %v1568_v50  ;;  %v1159_v59 = vmul.f32 0.5, %v1125_v45  ;;  %v1192_v7 = vmul.f32 %v1158_v47, %v1816_v24  ;;  %v1085_v28 = vmul.f32 0.7978846, %v1051_v49 }
  0xfc   :  { %v1572_v3 = vpop.eup %1571  ;;  %v1128_v4 = vadd.f32 1.0, %v1570_v27  ;;  %v1160_v6 = vmul.f32 0.5, %v1126_v55  ;;  %v1086_v21 = vmul.f32 0.7978846, %v1052_v56  ;;  %v634_v45 = vrot.slane %v620_v43, %v1686_v17 }
  0xfd   :  { %v1574_v10 = vpop.eup %1573  ;;  %v1129_v12 = vadd.f32 1.0, %v1572_v3  ;;  %v1161_v15 = vmul.f32 0.5, %v1127_v1  ;;  %v1193_v16 = vmul.f32 %v1159_v59, %v1829_v31  ;;  %v635_v49 = vcombine.high %v627_v63, %v627_v63 }
  0xfe   :  { %v1576_v19 = vpop.eup %1575  ;;  %v1130_v20 = vadd.f32 1.0, %v1574_v10  ;;  %v1162_v22 = vmul.f32 0.5, %v1128_v4  ;;  %v1194_v23 = vmul.f32 %v1160_v6, %v1834_v33  ;;  %v636_v55 = vcombine.high %v634_v45, %v634_v45 }
  0xff   :  { %v1131_v29 = vadd.f32 1.0, %v1576_v19  ;;  %v1163_v41 = vmul.f32 0.5, %v1129_v12  ;;  %v1195_v30 = vmul.f32 %v1161_v15, %v1844_v39  ;;  %v1260_v38 = vcombine.low %v1192_v7, %v1193_v16 }
 0x100   :  { %v1164_v44 = vmul.f32 0.5, %v1130_v20  ;;  %v1196_v24 = vmul.f32 %v1162_v22, %v1837_v34  ;;  %1579 = vtanh.f32 %v1082_v60  ;;  %v643_v34 = vrot.slane %v627_v63, %v1686_v17 }
 0x101   :  { %v1165_v47 = vmul.f32 0.5, %v1131_v29  ;;  %v1197_v31 = vmul.f32 %v1163_v41, %v1847_v8  ;;  %v1261_v48 = vcombine.low %v1194_v23, %v1195_v30  ;;  %v1270_v50 = vrot.slane %v1260_v38, %v1686_v17 }
 0x102   :  { %v1198_v33 = vmul.f32 %v1164_v44, %v1850_v40  ;;  %1581 = vtanh.f32 %v1083_v9  ;;  %v650_v43 = vrot.slane %v634_v45, %v1686_v17  ;;  %v657_v8 = vrot.slane %v635_v49, %v1686_v17 }
 0x103   :  { %v1199_v39 = vmul.f32 %v1165_v47, %v1862_v46  ;;  %v1262_v27 = vcombine.low %v1196_v24, %v1197_v31  ;;  %v1277_v1 = vrot.slane %v1261_v48, %v1686_v17  ;;  %v1087_v3 = vmul.f32 0.7978846, %v1053_v57 }
 0x104   :  { %1583 = vtanh.f32 %v1084_v18  ;;  %v664_v40 = vrot.slane %v636_v55, %v1686_v17  ;;  %v665_v58 = vcombine.high %v643_v34, %v643_v34  ;;  %v666_v46 = vcombine.high %v650_v43, %v650_v43 }
 0x105   :  { %v1263_v56 = vcombine.low %v1198_v33, %v1199_v39  ;;  %v1292_v59 = vcombine.low %v1270_v50, %v1277_v1  ;;  %1585 = vtanh.f32 %v1085_v28  ;;  %v1284_v4 = vrot.slane %v1262_v27, %v1686_v17 }
 0x106   :  { %1587 = vtanh.f32 %v1086_v21  ;;  %v667_v6 = vcombine.high %v657_v8, %v657_v8  ;;  %v668_v7 = vcombine.high %v664_v40, %v664_v40  ;;  %v1976_v9 = vadd.f32 %v1780_v61, %v643_v34 }
 0x107   :  { %v1291_v60 = vrot.slane %v1263_v56, %v1686_v17  ;;  %v1300_v63 = vrot.slane %v1292_v59, %v1686_v17  ;;  %v1979_v57 = vadd.f32 %v1786_v0, %v657_v8  ;;  %v1982_v12 = vadd.f32 %v1794_v5, %v665_v58  ;;  %v1578_v50 = vpop.eup %1577 }
 0x108   :  { %v1985_v15 = vadd.f32 %v1804_v13, %v667_v6  ;;  %v1988_v16 = vadd.f32 %v1783_v62, %v650_v43  ;;  %v1991_v18 = vadd.f32 %v1789_v2, %v664_v40  ;;  %v1994_v19 = vadd.f32 %v1800_v11, %v666_v46 }
 0x109   :  { %v1293_v10 = vcombine.low %v1284_v4, %v1291_v60  ;;  %v1997_v20 = vadd.f32 %v1808_v14, %v668_v7  ;;  %v928_v22 = vmul.f32 %v1976_v9, %v1976_v9  ;;  %v929_v28 = vmul.f32 %v1979_v57, %v1979_v57 }
 0x10a   :  { %v930_v29 = vmul.f32 %v1982_v12, %v1982_v12  ;;  %v931_v41 = vmul.f32 %v1985_v15, %v1985_v15  ;;  %v1012_v30 = vmul.f32 0.044715, %v1946_v42  ;;  %v932_v38 = vmul.f32 %v1988_v16, %v1988_v16 }
 0x10b   :  { %v1307_v23 = vrot.slane %v1293_v10, %v1686_v17  ;;  %v933_v44 = vmul.f32 %v1991_v18, %v1991_v18  ;;  %v934_v24 = vmul.f32 %v1994_v19, %v1994_v19  ;;  %v962_v45 = vmul.f32 %v928_v22, %v1976_v9 }
 0x10c   :  { %v963_v47 = vmul.f32 %v929_v28, %v1979_v57  ;;  %v964_v31 = vmul.f32 %v930_v29, %v1982_v12  ;;  %v935_v48 = vmul.f32 %v1997_v20, %v1997_v20  ;;  %v965_v42 = vmul.f32 %v931_v41, %v1985_v15 }
 0x10d   :  { %v1308_v21 = vcombine.low %v1300_v63, %v1307_v23  ;;  %1589 = vtanh.f32 %v1087_v3  ;;  %v966_v33 = vmul.f32 %v932_v38, %v1988_v16  ;;  %v1580_v49 = vpop.eup %1579  ;;  %v1149_v55 = vadd.f32 1.0, %v1578_v50 }
 0x10e   :  { %v967_v39 = vmul.f32 %v933_v44, %v1991_v18  ;;  %v996_v27 = vmul.f32 0.044715, %v962_v45  ;;  %v997_v1 = vmul.f32 0.044715, %v963_v47  ;;  %v1046_v43 = vadd.f32 %v1012_v30, %v1915_v53 }
 0x10f   :  { %1490 = vst [vmem:[%s2211_s3] sm:$0xff] %v1308_v21  ;;  %v1582_v34 = vpop.eup %1581  ;;  %v1150_v8 = vadd.f32 1.0, %v1580_v49  ;;  %v968_v56 = vmul.f32 %v934_v24, %v1994_v19  ;;  %v998_v59 = vmul.f32 0.044715, %v964_v31  ;;  %v1183_v46 = vmul.f32 0.5, %v1149_v55 }
 0x110   :  { %v1151_v58 = vadd.f32 1.0, %v1582_v34  ;;  %v969_v3 = vmul.f32 %v935_v48, %v1997_v20  ;;  %v999_v4 = vmul.f32 0.044715, %v965_v42  ;;  %v1000_v7 = vmul.f32 0.044715, %v966_v33 }
 0x111   :  { %v1584_v40 = vpop.eup %1583  ;;  %v1184_v63 = vmul.f32 0.5, %v1150_v8  ;;  %v1001_v22 = vmul.f32 0.044715, %v967_v39  ;;  %v1030_v23 = vadd.f32 %v996_v27, %v1976_v9  ;;  %v1031_v28 = vadd.f32 %v997_v1, %v1979_v57 }
 0x112   :  { %v1586_v60 = vpop.eup %1585  ;;  %v1152_v6 = vadd.f32 1.0, %v1584_v40  ;;  %v1080_v29 = vmul.f32 0.7978846, %v1046_v43  ;;  %v1002_v30 = vmul.f32 0.044715, %v968_v56  ;;  %v1032_v38 = vadd.f32 %v998_v59, %v1982_v12 }
 0x113   :  { %v1588_v10 = vpop.eup %1587  ;;  %v1153_v41 = vadd.f32 1.0, %v1586_v60  ;;  %v1185_v44 = vmul.f32 0.5, %v1151_v58  ;;  %v2033_v24 = vmul.f32 %v1183_v46, %v1896_v51  ;;  %v1003_v21 = vmul.f32 0.044715, %v969_v3 }
 0x114   :  { %v1033_v45 = vadd.f32 %v999_v4, %v1985_v15  ;;  %v1154_v47 = vadd.f32 1.0, %v1588_v10  ;;  %v1186_v31 = vmul.f32 0.5, %v1152_v6  ;;  %v2037_v48 = vmul.f32 %v1184_v63, %v1899_v25 }
 0x115   :  { %v1034_v42 = vadd.f32 %v1000_v7, %v1988_v16  ;;  %v1035_v50 = vadd.f32 %v1001_v22, %v1991_v18  ;;  %v1064_v33 = vmul.f32 0.7978846, %v1030_v23  ;;  %v1065_v49 = vmul.f32 0.7978846, %v1031_v28 }
 0x116   :  { %1591 = vtanh.f32 %v1080_v29  ;;  %v1187_v55 = vmul.f32 0.5, %v1153_v41  ;;  %v1036_v39 = vadd.f32 %v1002_v30, %v1994_v19  ;;  %v1066_v51 = vmul.f32 0.7978846, %v1032_v38 }
 0x117   :  { %v2043_v27 = vmul.f32 %v1185_v44, %v1905_v36  ;;  %v1037_v1 = vadd.f32 %v1003_v21, %v1997_v20  ;;  %v1067_v34 = vmul.f32 0.7978846, %v1033_v45  ;;  %1593 = vtanh.f32 %v1064_v33 }
 0x118   :  { %v1188_v25 = vmul.f32 0.5, %v1154_v47  ;;  %v2047_v43 = vmul.f32 %v1186_v31, %v1902_v26  ;;  %v1421_v8 = vcombine.low %v2033_v24, %v2037_v48  ;;  %v1068_v56 = vmul.f32 0.7978846, %v1034_v42 }
 0x119   :  { %v1069_v40 = vmul.f32 0.7978846, %v1035_v50  ;;  %1595 = vtanh.f32 %v1065_v49  ;;  %v773_v58 = vrot.slane %v1831_v32, %v1686_v17  ;;  %v669_v36 = vcombine.high %v1887_v35, %v1887_v35 }
 0x11a   :  { %v1590_v59 = vpop.eup %1589  ;;  %v2056_v46 = vmul.f32 %v1187_v55, %v1908_v37  ;;  %v1070_v3 = vmul.f32 0.7978846, %v1036_v39  ;;  %1597 = vtanh.f32 %v1066_v51  ;;  %v676_v26 = vrot.slane %v1887_v35, %v1686_v17 }
 0x11b   :  { %v1071_v4 = vmul.f32 0.7978846, %v1037_v1  ;;  %1599 = vtanh.f32 %v1067_v34  ;;  %v774_v60 = vcombine.high %v773_v58, %v773_v58  ;;  %v781_v6 = vrot.slane %v773_v58, %v1686_v17 }
 0x11c   :  { %v2062_v63 = vmul.f32 %v1188_v25, %v1911_v52  ;;  %1601 = vtanh.f32 %v1068_v56  ;;  %v683_v32 = vrot.slane %v669_v36, %v1686_v17  ;;  %v684_v7 = vcombine.high %v676_v26, %v676_v26 }
 0x11d   :  { %1603 = vtanh.f32 %v1069_v40  ;;  %v788_v37 = vrot.slane %v774_v60, %v1686_v17  ;;  %v2067_v10 = vadd.f32 %v1808_v14, %v781_v6  ;;  %v2069_v22 = vadd.f32 1.0, %v1590_v59 }
 0x11e   :  { %1605 = vtanh.f32 %v1070_v3  ;;  %v685_v35 = vcombine.high %v683_v32, %v683_v32  ;;  %v692_v23 = vrot.slane %v676_v26, %v1686_v17  ;;  %v699_v28 = vrot.slane %v683_v32, %v1686_v17 }
 0x11f   :  { %1607 = vtanh.f32 %v1071_v4  ;;  %v2074_v52 = vadd.f32 %v1780_v61, %v788_v37  ;;  %v952_v29 = vmul.f32 %v2067_v10, %v2067_v10  ;;  %v706_v41 = vrot.slane %v684_v7, %v1686_v17 }
 0x120   :  { %v713_v14 = vrot.slane %v685_v35, %v1686_v17  ;;  %v714_v30 = vcombine.high %v692_v23, %v692_v23  ;;  %v715_v38 = vcombine.high %v699_v28, %v699_v28  ;;  %v2081_v44 = vadd.f32 %v1780_v61, %v692_v23 }
 0x121   :  { %v953_v21 = vmul.f32 %v2074_v52, %v2074_v52  ;;  %v986_v45 = vmul.f32 %v952_v29, %v2067_v10  ;;  %v716_v47 = vcombine.high %v706_v41, %v706_v41  ;;  %v2087_v31 = vadd.f32 %v1780_v61, %v706_v41 }
 0x122   :  { %v717_v42 = vcombine.high %v713_v14, %v713_v14  ;;  %v2090_v50 = vadd.f32 %v1786_v0, %v714_v30  ;;  %v2093_v33 = vadd.f32 %v1804_v13, %v699_v28  ;;  %v2096_v49 = vadd.f32 %v1783_v62, %v713_v14 }
 0x123   :  { %v2098_v55 = vpop.eup %1591  ;;  %v987_v39 = vmul.f32 %v953_v21, %v2074_v52  ;;  %v1020_v51 = vmul.f32 0.044715, %v986_v45  ;;  %v2102_v1 = vadd.f32 %v1794_v5, %v716_v47  ;;  %v2105_v61 = vadd.f32 %v1789_v2, %v715_v38 }
 0x124   :  { %v1594_v34 = vpop.eup %1593  ;;  %v2108_v0 = vadd.f32 %v1800_v11, %v717_v42  ;;  %v936_v13 = vmul.f32 %v2081_v44, %v2081_v44  ;;  %v937_v62 = vmul.f32 %v2087_v31, %v2087_v31  ;;  %v938_v25 = vmul.f32 %v2090_v50, %v2090_v50 }
 0x125   :  { %v1132_v56 = vadd.f32 1.0, %v1594_v34  ;;  %v1021_v59 = vmul.f32 0.044715, %v987_v39  ;;  %v1054_v5 = vadd.f32 %v1020_v51, %v2067_v10  ;;  %v939_v2 = vmul.f32 %v2102_v1, %v2102_v1 }
 0x126   :  { %v1596_v40 = vpop.eup %1595  ;;  %v940_v11 = vmul.f32 %v2093_v33, %v2093_v33  ;;  %v941_v58 = vmul.f32 %v2096_v49, %v2096_v49  ;;  %v942_v36 = vmul.f32 %v2105_v61, %v2105_v61  ;;  %v943_v3 = vmul.f32 %v2108_v0, %v2108_v0 }
 0x127   :  { %v1598_v26 = vpop.eup %1597  ;;  %v1133_v4 = vadd.f32 1.0, %v1596_v40  ;;  %v1166_v60 = vmul.f32 0.5, %v1132_v56  ;;  %v1055_v6 = vadd.f32 %v1021_v59, %v2074_v52  ;;  %v1088_v32 = vmul.f32 0.7978846, %v1054_v5 }
 0x128   :  { %v1600_v7 = vpop.eup %1599  ;;  %v1134_v37 = vadd.f32 1.0, %v1598_v26  ;;  %v970_v35 = vmul.f32 %v936_v13, %v2081_v44  ;;  %v971_v23 = vmul.f32 %v937_v62, %v2087_v31  ;;  %v972_v28 = vmul.f32 %v938_v25, %v2090_v50 }
 0x129   :  { %v1602_v29 = vpop.eup %1601  ;;  %v1135_v41 = vadd.f32 1.0, %v1600_v7  ;;  %v1167_v14 = vmul.f32 0.5, %v1133_v4  ;;  %v1200_v30 = vmul.f32 %v1166_v60, %v1976_v9  ;;  %v1089_v38 = vmul.f32 0.7978846, %v1055_v6 }
 0x12a   :  { %v1604_v21 = vpop.eup %1603  ;;  %v1136_v45 = vadd.f32 1.0, %v1602_v29  ;;  %v1168_v47 = vmul.f32 0.5, %v1134_v37  ;;  %1609 = vtanh.f32 %v1088_v32  ;;  %v973_v42 = vmul.f32 %v939_v2, %v2102_v1 }
 0x12b   :  { %v1606_v39 = vpop.eup %1605  ;;  %v1137_v51 = vadd.f32 1.0, %v1604_v21  ;;  %v1169_v34 = vmul.f32 0.5, %v1135_v41  ;;  %v1201_v13 = vmul.f32 %v1167_v14, %v1979_v57  ;;  %1611 = vtanh.f32 %v1089_v38 }
 0x12c   :  { %v1608_v62 = vpop.eup %1607  ;;  %v1138_v25 = vadd.f32 1.0, %v1606_v39  ;;  %v1170_v56 = vmul.f32 0.5, %v1136_v45  ;;  %v1202_v59 = vmul.f32 %v1168_v47, %v1982_v12  ;;  %v974_v9 = vmul.f32 %v940_v11, %v2093_v33 }
 0x12d   :  { %v1139_v5 = vadd.f32 1.0, %v1608_v62  ;;  %v1171_v40 = vmul.f32 0.5, %v1137_v51  ;;  %v1203_v26 = vmul.f32 %v1169_v34, %v1985_v15  ;;  %v1309_v4 = vcombine.low %v1200_v30, %v1201_v13 }
 0x12e   :  { %v1172_v60 = vmul.f32 0.5, %v1138_v25  ;;  %v1204_v2 = vmul.f32 %v1170_v56, %v1988_v16  ;;  %v975_v6 = vmul.f32 %v941_v58, %v2096_v49  ;;  %v976_v57 = vmul.f32 %v942_v36, %v2105_v61 }
 0x12f   :  { %v1173_v32 = vmul.f32 0.5, %v1139_v5  ;;  %v1205_v7 = vmul.f32 %v1171_v40, %v1991_v18  ;;  %v1310_v37 = vcombine.low %v1202_v59, %v1203_v26  ;;  %v1319_v12 = vrot.slane %v1309_v4, %v1686_v17 }
 0x130   :  { %v1206_v11 = vmul.f32 %v1172_v60, %v1994_v19  ;;  %v977_v29 = vmul.f32 %v943_v3, %v2108_v0  ;;  %v1004_v41 = vmul.f32 0.044715, %v970_v35  ;;  %v1005_v15 = vmul.f32 0.044715, %v971_v23 }
 0x131   :  { %v1207_v14 = vmul.f32 %v1173_v32, %v1997_v20  ;;  %v1311_v30 = vcombine.low %v1204_v2, %v1205_v7  ;;  %v1326_v16 = vrot.slane %v1310_v37, %v1686_v17  ;;  %v1006_v58 = vmul.f32 0.044715, %v972_v28 }
 0x132   :  { %v1007_v38 = vmul.f32 0.044715, %v973_v42  ;;  %v1008_v36 = vmul.f32 0.044715, %v974_v9  ;;  %v1009_v21 = vmul.f32 0.044715, %v975_v6  ;;  %v1038_v18 = vadd.f32 %v1004_v41, %v2081_v44 }
 0x133   :  { %v1422_v45 = vcombine.low %v2043_v27, %v2047_v43  ;;  %v1312_v47 = vcombine.low %v1206_v11, %v1207_v14  ;;  %v1341_v19 = vcombine.low %v1319_v12, %v1326_v16  ;;  %v1010_v39 = vmul.f32 0.044715, %v976_v57 }
 0x134   :  { %v1011_v3 = vmul.f32 0.044715, %v977_v29  ;;  %v1039_v35 = vadd.f32 %v1005_v15, %v2087_v31  ;;  %v1040_v20 = vadd.f32 %v1006_v58, %v2090_v50  ;;  %v1041_v23 = vadd.f32 %v1007_v38, %v2102_v1 }
 0x135   :  { %v1333_v28 = vrot.slane %v1311_v30, %v1686_v17  ;;  %v1340_v42 = vrot.slane %v1312_v47, %v1686_v17  ;;  %v1042_v51 = vadd.f32 %v1008_v36, %v2093_v33  ;;  %v1043_v34 = vadd.f32 %v1009_v21, %v2096_v49 }
 0x136   :  { %v1189_v27 = vmul.f32 0.5, %v2069_v22  ;;  %v1044_v43 = vadd.f32 %v1010_v39, %v2105_v61  ;;  %v1072_v13 = vmul.f32 0.7978846, %v1038_v18  ;;  %v1073_v62 = vmul.f32 0.7978846, %v1039_v35 }
 0x137   :  { %v1610_v25 = vpop.eup %1609  ;;  %v1342_v56 = vcombine.low %v1333_v28, %v1340_v42  ;;  %v1045_v59 = vadd.f32 %v1011_v3, %v2108_v0  ;;  %v1074_v9 = vmul.f32 0.7978846, %v1040_v20  ;;  %v1075_v5 = vmul.f32 0.7978846, %v1041_v23 }
 0x138   :  { %v1612_v40 = vpop.eup %1611  ;;  %v1349_v26 = vrot.slane %v1341_v19, %v1686_v17  ;;  %v1156_v4 = vadd.f32 1.0, %v1610_v25  ;;  %v1076_v60 = vmul.f32 0.7978846, %v1042_v51  ;;  %1613 = vtanh.f32 %v1072_v13 }
 0x139   :  { %v1356_v2 = vrot.slane %v1342_v56, %v1686_v17  ;;  %v1157_v6 = vadd.f32 1.0, %v1612_v40  ;;  %v1077_v22 = vmul.f32 0.7978846, %v1043_v34  ;;  %1615 = vtanh.f32 %v1073_v62 }
 0x13a   :  { %v1190_v57 = vmul.f32 0.5, %v1156_v4  ;;  %v1223_v32 = vmul.f32 %v1189_v27, %v1918_v54  ;;  %v1078_v7 = vmul.f32 0.7978846, %v1044_v43  ;;  %1617 = vtanh.f32 %v1074_v9 }
 0x13b   :  { %v1357_v37 = vcombine.low %v1349_v26, %v1356_v2  ;;  %v1191_v12 = vmul.f32 0.5, %v1157_v6  ;;  %v1079_v11 = vmul.f32 0.7978846, %v1045_v59  ;;  %1619 = vtanh.f32 %v1075_v5 }
 0x13c   :  { %v1423_v29 = vcombine.low %v2056_v46, %v2062_v63  ;;  %v1438_v41 = vrot.slane %v1422_v45, %v1686_v17  ;;  %v1224_v15 = vmul.f32 %v1190_v57, %v2067_v10  ;;  %1621 = vtanh.f32 %v1076_v60 }
 0x13d   :  { %1491 = vst [vmem:[%s2211_s3 + $0x8] sm:$0xff] %v1357_v37  ;;  %v1225_v54 = vmul.f32 %v1191_v12, %v2074_v52  ;;  %1623 = vtanh.f32 %v1077_v22  ;;  %v1431_v14 = vrot.slane %v1421_v8, %v1686_v17  ;;  %v1148_v3 = vadd.f32 1.0, %v2098_v55 }
 0x13e   :  { %v1424_v30 = vcombine.low %v1223_v32, %v1224_v15  ;;  %1625 = vtanh.f32 %v1078_v7  ;;  %v1445_v10 = vrot.slane %v1423_v29, %v1686_v17 }
 0x13f   :  { %v1476_v46 = vrot.slane %v1225_v54, %v1686_v17  ;;  %1627 = vtanh.f32 %v1079_v11  ;;  %v1453_v63 = vcombine.low %v1431_v14, %v1438_v41  ;;  %v1182_v55 = vmul.f32 0.5, %v1148_v3 }
 0x140   :  { %v1452_v16 = vrot.slane %v1424_v30, %v1686_v17 }
 0x141   :  { %1513 = vst.sshfl [vmem:[%s2211_s3 + $0x28] sm:$0x1 pattern:$0x73625140] %v1476_v46  ;;  %v1461_v58 = vrot.slane %v1453_v63, %v1686_v17  ;;  %v1216_v22 = vmul.f32 %v1182_v55, %v1915_v53 }
 0x142   :  { %v1454_v52 = vcombine.low %v1445_v10, %v1452_v16 }
 0x144   :  { %v1468_v24 = vrot.slane %v1454_v52, %v1686_v17 }
 0x145   :  { %v1614_v48 = vpop.eup %1613 }
 0x146   :  { %v1616_v8 = vpop.eup %1615  ;;  %v1469_v38 = vcombine.low %v1461_v58, %v1468_v24  ;;  %v1140_v36 = vadd.f32 1.0, %v1614_v48 }
 0x147   :  { %v1618_v21 = vpop.eup %1617  ;;  %v1141_v18 = vadd.f32 1.0, %v1616_v8 }
 0x148   :  { %v1620_v45 = vpop.eup %1619  ;;  %1494 = vst [vmem:[%s2211_s3 + $0x20] sm:$0xff] %v1469_v38  ;;  %v1142_v47 = vadd.f32 1.0, %v1618_v21  ;;  %v1174_v19 = vmul.f32 0.5, %v1140_v36 }
 0x149   :  { %v1622_v39 = vpop.eup %1621  ;;  %v1143_v35 = vadd.f32 1.0, %v1620_v45  ;;  %v1175_v20 = vmul.f32 0.5, %v1141_v18 }
 0x14a   :  { %v1624_v23 = vpop.eup %1623  ;;  %v1144_v28 = vadd.f32 1.0, %v1622_v39  ;;  %v1176_v42 = vmul.f32 0.5, %v1142_v47  ;;  %v1208_v51 = vmul.f32 %v1174_v19, %v2081_v44 }
 0x14b   :  { %v1626_v34 = vpop.eup %1625  ;;  %v1145_v27 = vadd.f32 1.0, %v1624_v23  ;;  %v1177_v43 = vmul.f32 0.5, %v1143_v35  ;;  %v1209_v13 = vmul.f32 %v1175_v20, %v2087_v31 }
 0x14c   :  { %v1628_v62 = vpop.eup %1627  ;;  %v1146_v25 = vadd.f32 1.0, %v1626_v34  ;;  %v1178_v56 = vmul.f32 0.5, %v1144_v28  ;;  %v1210_v59 = vmul.f32 %v1176_v42, %v2090_v50  ;;  %v1364_v9 = vrot.slane %v1208_v51, %v1686_v17 }
 0x14d   :  { %v1147_v5 = vadd.f32 1.0, %v1628_v62  ;;  %v1179_v40 = vmul.f32 0.5, %v1145_v27  ;;  %v1211_v26 = vmul.f32 %v1177_v43, %v2102_v1 }
 0x14e   :  { %v1180_v4 = vmul.f32 0.5, %v1146_v25  ;;  %v1212_v44 = vmul.f32 %v1178_v56, %v2093_v33  ;;  %1512 = vst.sshfl [vmem:[%s2211_s3 + $0x10] sm:$0x1 pattern:$0x73625140] %v1364_v9  ;;  %v1372_v2 = vcombine.low %v1209_v13, %v1210_v59 }
 0x14f   :  { %v1181_v31 = vmul.f32 0.5, %v1147_v5  ;;  %v1213_v60 = vmul.f32 %v1179_v40, %v2096_v49 }
 0x150   :  { %v1214_v50 = vmul.f32 %v1180_v4, %v2105_v61  ;;  %v1373_v6 = vcombine.low %v1211_v26, %v1212_v44  ;;  %v1382_v33 = vrot.slane %v1372_v2, %v1686_v17 }
 0x151   :  { %v1215_v57 = vmul.f32 %v1181_v31, %v2108_v0 }
 0x152   :  { %v1374_v32 = vcombine.low %v1213_v60, %v1214_v50  ;;  %v1389_v1 = vrot.slane %v1373_v6, %v1686_v17 }
 0x153   :  { %v1375_v7 = vcombine.low %v1215_v57, %v1216_v22 }
 0x154   :  { %v1396_v37 = vrot.slane %v1374_v32, %v1686_v17  ;;  %v1404_v11 = vcombine.low %v1382_v33, %v1389_v1 }
 0x155   :  { %v1403_v12 = vrot.slane %v1375_v7, %v1686_v17 }
 0x156   :  { %v1412_v29 = vrot.slane %v1404_v11, %v1686_v17 }
 0x157   :  { %v1405_v49 = vcombine.low %v1396_v37, %v1403_v12 }
 0x159   :  { %v1419_v61 = vrot.slane %v1405_v49, %v1686_v17 }
 0x15b   :  { %v1420_v41 = vcombine.low %v1412_v29, %v1419_v61 }
 0x15d   :  { %1493 = vst [vmem:[%s2211_s3 + $0x18] sm:$0xff] %v1420_v41 }

// kernel: _lambda_.29
= control target key start
LH: loop header
LB: loop body
LE: loop exit
PB: predicated region body
PF: predicated region fallthrough
CT: control target
= control target key end

     0   :  { %v33_v0 = vlaneseq  ;;  %v1629_v1 = vmov 0.0   ;;  %v1630_v4 = vmov 1966171168   ;;  %vm1631_vm0 = vmmov 0   ;;  %s2172_s1 = inlined_call_operand.vmem [shape: f32[128,32], index: 1, kind: input, shape index: {}]   ;;  %s2173_s0 = inlined_call_operand.vmem [shape: f32[2,17,128], index: 0, kind: input, shape index: {}]   ;;  %s2174_s2 = inlined_call_operand.vmem [shape: f32[1,1,32], index: 2, kind: input, shape index: {}]   ;;  %s2175_s3 = inlined_call_operand.vmem [shape: f32[2,17,32], index: 3, kind: input, shape index: {}, may-alias: {3,4}]   ;;  %s2176_s4 = inlined_call_operand.vmem [shape: f32[2,17,32], index: 4, kind: output, shape index: {}, may-alias: {3,4}]  }
   0x1   :  { %1539 = vmatprep.subr.mxu0 %v1629_v1  ;;  %v268_v2 = vld [vmem:[%s2172_s1 + $0x78] sm:$0xff]  ;;  %v267_v3 = vld [vmem:[%s2172_s1 + $0x70] sm:$0xff]  ;;  %1586 = vmatprep.subr.mxu1 %v1629_v1  ;;  %v31_v5 = vunpack.c.l.s4 %v1630_v4  ;;  %v266_v7 = vld [vmem:[%s2172_s1 + $0x68] sm:$0xff]  ;;  %vm1497_vm1 = vcmask 261120   ;;  %vm1500_vm2 = vcmask 253952  }
   0x2   :  { %1540 = vmatpush3.msra.mxu0 %v268_v2  ;;  %1602 = vmatpush3.msra.mxu1 %v268_v2  ;;  %v34_v6 = vshrl.u32 %v33_v0, 7  ;;  %v265_v9 = vld [vmem:[%s2172_s1 + $0x60] sm:$0xff]  ;;  %v18_v12 = vld [vmem:[%s2173_s0 + $0x8] sm:$0xff]  ;;  %v264_v13 = vld [vmem:[%s2172_s1 + $0x58] sm:$0xff] }
   0x3   :  { %1541 = vmatprep.subr.mxu0 %v1629_v1  ;;  %1587 = vmatprep.subr.mxu1 %v1629_v1  ;;  %v32_v8 = vunpack.c.0.s8 %v31_v5  ;;  %v17_v11 = vld [vmem:[%s2173_s0] sm:$0xff]  ;;  %v78_v16 = vcombine.high %v18_v12, %v18_v12  ;;  %v1692_v17 = vld [vmem:[%s2173_s0 + $0x18] sm:$0xff]  ;;  %v263_v22 = vld [vmem:[%s2172_s1 + $0x50] sm:$0xff] }
   0x4   :  { %1542 = vmatpush3.msra.mxu0 %v267_v3  ;;  %1603 = vmatpush3.msra.mxu1 %v267_v3  ;;  %v29_v14 = vcombine.high %v17_v11, %v17_v11  ;;  %v1697_v18 = vld [vmem:[%s2173_s0 + $0x20] sm:$0xff]  ;;  %v141_v20 = vcombine.high %v1692_v17, %v1692_v17  ;;  %v262_v29 = vld [vmem:[%s2172_s1 + $0x48] sm:$0xff]  ;;  %v260_v43 = vld [vmem:[%s2172_s1 + $0x38] sm:$0xff] }
   0x5   :  { %1543 = vmatprep.subr.mxu0 %v1629_v1  ;;  %1588 = vmatprep.subr.mxu1 %v1629_v1  ;;  %v1675_v10 = vsub.s32 %v32_v8, %v34_v6  ;;  %v190_v21 = vcombine.high %v1697_v18, %v1697_v18  ;;  %v261_v36 = vld [vmem:[%s2172_s1 + $0x40] sm:$0xff]  ;;  %v259_v50 = vld [vmem:[%s2172_s1 + $0x30] sm:$0xff]  ;;  %v258_v57 = vld [vmem:[%s2172_s1 + $0x28] sm:$0xff] }
   0x6   :  { %1544 = vmatpush3.msra.mxu0 %v266_v7  ;;  %1604 = vmatpush3.msra.mxu1 %v266_v7  ;;  %v257_v0 = vld [vmem:[%s2172_s1 + $0x20] sm:$0xff]  ;;  %v256_v8 = vld [vmem:[%s2172_s1 + $0x18] sm:$0xff] }
   0x7   :  { %1545 = vmatprep.subr.mxu0 %v1629_v1  ;;  %1589 = vmatprep.subr.mxu1 %v1629_v1  ;;  %v36_v15 = vrot.slane %v17_v11, %v1675_v10  ;;  %v85_v19 = vrot.slane %v18_v12, %v1675_v10  ;;  %v43_v23 = vrot.slane %v29_v14, %v1675_v10 }
   0x8   :  { %1546 = vmatpush3.msra.mxu0 %v265_v9  ;;  %1605 = vmatpush3.msra.mxu1 %v265_v9  ;;  %v92_v26 = vrot.slane %v78_v16, %v1675_v10  ;;  %v155_v60 = vrot.slane %v141_v20, %v1675_v10  ;;  %v197_v63 = vrot.slane %v1697_v18, %v1675_v10  ;;  %v1509_v16 = vld.sshfl [vmem:[%s2173_s0 + $0x10] sm:$0x1 pattern:$0x75316420] }
   0x9   :  { %1547 = vmatprep.subr.mxu0 %v1629_v1  ;;  %1590 = vmatprep.subr.mxu1 %v1629_v1  ;;  %v44_v24 = vcombine.high %v36_v15, %v36_v15  ;;  %v52_v25 = vrot.slane %v36_v15, %v1675_v10  ;;  %v93_v27 = vcombine.high %v85_v19, %v85_v19  ;;  %v255_v18 = vld [vmem:[%s2172_s1 + $0x10] sm:$0xff] }
   0xa   :  { %1548 = vmatpush3.msra.mxu0 %v264_v13  ;;  %1606 = vmatpush3.msra.mxu1 %v264_v13  ;;  %v101_v28 = vrot.slane %v85_v19, %v1675_v10  ;;  %v45_v30 = vcombine.high %v43_v23, %v43_v23  ;;  %v59_v31 = vrot.slane %v43_v23, %v1675_v10 }
   0xb   :  { %1549 = vmatprep.subr.mxu0 %v1629_v1  ;;  %1591 = vmatprep.subr.mxu1 %v1629_v1  ;;  %v66_v32 = vrot.slane %v44_v24, %v1675_v10  ;;  %v94_v33 = vcombine.high %v92_v26, %v92_v26  ;;  %v108_v34 = vrot.slane %v92_v26, %v1675_v10 }
   0xc   :  { %1550 = vmatpush3.msra.mxu0 %v263_v22  ;;  %1607 = vmatpush3.msra.mxu1 %v263_v22  ;;  %v115_v35 = vrot.slane %v93_v27, %v1675_v10  ;;  %v73_v37 = vrot.slane %v45_v30, %v1675_v10  ;;  %v157_v4 = vcombine.high %v155_v60, %v155_v60 }
   0xd   :  { %1551 = vmatprep.subr.mxu0 %v1629_v1  ;;  %1592 = vmatprep.subr.mxu1 %v1629_v1  ;;  %v269_v38 = vcombine.low %v52_v25, %v66_v32  ;;  %v1511_v39 = vcombine.high %v52_v25, %v66_v32  ;;  %v122_v40 = vrot.slane %v94_v33, %v1675_v10  ;;  %v254_v25 = vld [vmem:[%s2172_s1 + $0x8] sm:$0xff]  ;;  %v253_v32 = vld [vmem:[%s2172_s1] sm:$0xff] }
   0xe   :  { %1552 = vmatpush3.msra.mxu0 %v262_v29  ;;  %1608 = vmatpush3.msra.mxu1 %v262_v29  ;;  %v318_v41 = vcombine.low %v101_v28, %v115_v35  ;;  %v1513_v42 = vcombine.high %v101_v28, %v115_v35  ;;  %v271_v44 = vcombine.low %v59_v31, %v73_v37 }
   0xf   :  { %1553 = vmatprep.subr.mxu0 %v1629_v1  ;;  %1593 = vmatprep.subr.mxu1 %v1629_v1  ;;  %v1512_v45 = vcombine.high %v59_v31, %v73_v37  ;;  %v279_v46 = vrot.slane %v269_v38, %v1675_v10  ;;  %v286_v47 = vrot.slane %v1511_v39, %v1675_v10 }
  0x10   :  { %1554 = vmatpush3.msra.mxu0 %v261_v36  ;;  %1609 = vmatpush3.msra.mxu1 %v261_v36  ;;  %v320_v48 = vcombine.low %v108_v34, %v122_v40  ;;  %v1514_v49 = vcombine.high %v108_v34, %v122_v40  ;;  %v293_v51 = vrot.slane %v271_v44, %v1675_v10 }
  0x11   :  { %1555 = vmatprep.subr.mxu0 %v1629_v1  ;;  %1594 = vmatprep.subr.mxu1 %v1629_v1  ;;  %v300_v52 = vrot.slane %v1512_v45, %v1675_v10  ;;  %v328_v53 = vrot.slane %v318_v41, %v1675_v10  ;;  %v301_v54 = vcombine.low %v279_v46, %v286_v47 }
  0x12   :  { %1556 = vmatpush3.msra.mxu0 %v260_v43  ;;  %1610 = vmatpush3.msra.mxu1 %v260_v43  ;;  %v335_v55 = vrot.slane %v1513_v42, %v1675_v10  ;;  %v342_v56 = vrot.slane %v320_v48, %v1675_v10  ;;  %v349_v59 = vrot.slane %v1514_v49, %v1675_v10  ;;  %v1510_v43 = vld.sshfl [vmem:[%s2173_s0 + $0x28] sm:$0x1 pattern:$0x75316420] }
  0x13   :  { %1557 = vmatprep.subr.mxu0 %v1629_v1  ;;  %1595 = vmatprep.subr.mxu1 %v1629_v1  ;;  %v302_v58 = vcombine.low %v293_v51, %v300_v52  ;;  %v1754_v61 = vrot.slane %v301_v54, %v1675_v10  ;;  %v204_v6 = vrot.slane %v190_v21, %v1675_v10 }
  0x14   :  { %1558 = vmatpush3.msra.mxu0 %v259_v50  ;;  %1611 = vmatpush3.msra.mxu1 %v259_v50  ;;  %v350_v62 = vcombine.low %v328_v53, %v335_v55  ;;  %v351_v3 = vcombine.low %v342_v56, %v349_v59  ;;  %v205_v7 = vcombine.high %v197_v63, %v197_v63 }
  0x15   :  { %1559 = vmatprep.subr.mxu0 %v1629_v1  ;;  %1596 = vmatprep.subr.mxu1 %v1629_v1  ;;  %v1764_v2 = vrot.slane %v302_v58, %v1675_v10  ;;  %v185_v12 = vrot.slane %v157_v4, %v1675_v10  ;;  %v206_v13 = vcombine.high %v204_v6, %v204_v6 }
  0x16   :  { %1560 = vmatpush3.msra.mxu0 %v258_v57  ;;  %1612 = vmatpush3.msra.mxu1 %v258_v57  ;;  %v1767_v5 = vrot.slane %v350_v62, %v1675_v10  ;;  %v1781_v11 = vrot.slane %v351_v3, %v1675_v10  ;;  %v213_v14 = vrot.slane %v197_v63, %v1675_v10 }
  0x17   :  { %1561 = vmatprep.subr.mxu0 %v1629_v1  ;;  %1597 = vmatprep.subr.mxu1 %v1629_v1  ;;  %v317_v9 = vcombine.low %v1754_v61, %v1764_v2  ;;  %v220_v15 = vrot.slane %v204_v6, %v1675_v10  ;;  %v189_v20 = vcombine.high %v185_v12, %v185_v12  ;;  %v929_v6 = vld [vmem:[%s2175_s3] sm:$0xff] }
  0x18   :  { %1562 = vmatpush3.msra.mxu0 %v257_v0  ;;  %1613 = vmatpush3.msra.mxu1 %v257_v0  ;;  %v366_v19 = vcombine.low %v1767_v5, %v1781_v11  ;;  %v227_v21 = vrot.slane %v205_v7, %v1675_v10  ;;  %v234_v22 = vrot.slane %v206_v13, %v1675_v10  ;;  %v1515_v5 = vld [vmem:[%s2174_s2] ss:$0 sm:$0xff] }
  0x19   :  { %1563 = vmatprep.subr.mxu0 %v1629_v1  ;;  %1598 = vmatprep.subr.mxu1 %v1629_v1  ;;  %v235_v23 = vcombine.high %v213_v14, %v213_v14  ;;  %v236_v24 = vcombine.high %v220_v15, %v220_v15  ;;  %v416_v27 = vcombine.low %v189_v20, %v213_v14 }
  0x1a   :  { %1564 = vmatpush3.msra.mxu0 %v256_v8  ;;  %1614 = vmatpush3.msra.mxu1 %v256_v8  ;;  %v237_v26 = vcombine.high %v227_v21, %v227_v21  ;;  %v140_v28 = vrot.slane %v1509_v16, %v1675_v10  ;;  %v148_v31 = vrot.slane %v1692_v17, %v1675_v10 }
  0x1b   :  { %1565 = vmatprep.subr.mxu0 %v1629_v1  ;;  %1599 = vmatprep.subr.mxu1 %v1629_v1  ;;  %v417_v29 = vcombine.low %v227_v21, %v235_v23  ;;  %v419_v30 = vcombine.low %v234_v22, %v236_v24  ;;  %v426_v34 = vrot.slane %v416_v27, %v1675_v10  ;;  %v933_v23 = vld [vmem:[%s2175_s3 + $0x20] sm:$0xff] }
  0x1c   :  { %1566 = vmatpush3.msra.mxu0 %v255_v18  ;;  %1615 = vmatpush3.msra.mxu1 %v255_v18  ;;  %v418_v33 = vcombine.low %v237_v26, %v220_v15  ;;  %v171_v35 = vrot.slane %v155_v60, %v1675_v10  ;;  %v156_v37 = vcombine.high %v148_v31, %v148_v31 }
  0x1d   :  { %1567 = vmatprep.subr.mxu0 %v1629_v1  ;;  %1571 = vmatprep.mubr.msk.f32.mxu0 %vm1631_vm0, %v1629_v1  ;;  %v433_v17 = vrot.slane %v417_v29, %v1675_v10  ;;  %v447_v36 = vrot.slane %v419_v30, %v1675_v10  ;;  %v164_v39 = vrot.slane %v148_v31, %v1675_v10 }
  0x1e   :  { %1568 = vmatpush3.msra.mxu0 %v254_v25  ;;  %1600 = vmatprep.subr.mxu1 %v1629_v1  ;;  %v440_v38 = vrot.slane %v418_v33, %v1675_v10  ;;  %v187_v40 = vcombine.high %v171_v35, %v171_v35  ;;  %v178_v42 = vrot.slane %v156_v37, %v1675_v10 }
  0x1f   :  { %1569 = vmatprep.subr.mxu0 %v1629_v1  ;;  %1616 = vmatpush3.msra.mxu1 %v254_v25  ;;  %v448_v41 = vcombine.low %v426_v34, %v433_v17  ;;  %v238_v44 = vcombine.high %v234_v22, %v234_v22  ;;  %v186_v46 = vcombine.high %v164_v39, %v164_v39 }
  0x20   :  { %1570 = vmatpush3.msra.mxu0 %v253_v32  ;;  %1601 = vmatprep.subr.mxu1 %v1629_v1  ;;  %v449_v45 = vcombine.low %v440_v38, %v447_v36  ;;  %v367_v47 = vcombine.low %v140_v28, %v164_v39  ;;  %v188_v49 = vcombine.high %v178_v42, %v178_v42 }
  0x21   :  { %1572 = vmatmul.mubr.f32.vlgmr.msra.gmra.mxu0 %v317_v9  ;;  %1617 = vmatpush3.msra.mxu1 %v253_v32  ;;  %v456_v48 = vrot.slane %v448_v41, %v1675_v10  ;;  %v370_v50 = vcombine.low %v185_v12, %v187_v40  ;;  %v368_v52 = vcombine.low %v178_v42, %v186_v46  ;;  %v932_v9 = vld [vmem:[%s2175_s3 + $0x18] sm:$0xff] }
  0x22   :  { %1574 = vmatprep.mubr.msk.f32.mxu0 %vm1631_vm0, %v1629_v1  ;;  %1580 = vmatprep.mubr.msk.f32.mxu1 %vm1631_vm0, %v1629_v1  ;;  %v463_v51 = vrot.slane %v449_v45, %v1675_v10  ;;  %v377_v53 = vrot.slane %v367_v47, %v1675_v10  ;;  %v252_v54 = vrot.slane %v1510_v43, %v1675_v10 }
  0x23   :  { %v369_v55 = vcombine.low %v188_v49, %v171_v35  ;;  %v398_v56 = vrot.slane %v370_v50, %v1675_v10  ;;  %v384_v58 = vrot.slane %v368_v52, %v1675_v10  ;;  %v838_v7 = vcombine.high %v1515_v5, %v1515_v5 }
  0x24   :  { %v464_v57 = vcombine.low %v456_v48, %v463_v51  ;;  %v465_v59 = vcombine.low %v238_v44, %v252_v54  ;;  %v941_v8 = vcombine.high %v929_v6, %v929_v6  ;;  %v845_v11 = vrot.slane %v1515_v5, %v1675_v10 }
  0x25   :  { %1575 = vmatmul.mubr.f32.gmra.mxu0 %v366_v19  ;;  %v391_v60 = vrot.slane %v369_v55, %v1675_v10  ;;  %v399_v61 = vcombine.low %v377_v53, %v384_v58  ;;  %v852_v12 = vrot.slane %v838_v7, %v1675_v10  ;;  %v1053_v14 = vcombine.high %v932_v9, %v932_v9 }
  0x26   :  { %1577 = vmatprep.mubr.msk.f32.mxu0 %vm1631_vm0, %v1629_v1  ;;  %1581 = vmatmul.mubr.f32.vlgmr.msra.gmra.mxu1 %v464_v57  ;;  %v472_v62 = vrot.slane %v465_v59, %v1675_v10  ;;  %v948_v15 = vrot.slane %v929_v6, %v1675_v10  ;;  %v955_v16 = vrot.slane %v941_v8, %v1675_v10 }
  0x27   :  { %v400_v63 = vcombine.low %v391_v60, %v398_v56  ;;  %1583 = vmatprep.mubr.msk.f32.mxu1 %vm1631_vm0, %v1629_v1  ;;  %v407_v0 = vrot.slane %v399_v61, %v1675_v10  ;;  %v930_v1 = vld [vmem:[%s2175_s3 + $0x8] sm:$0xff]  ;;  %v853_v18 = vcombine.high %v845_v11, %v845_v11  ;;  %v854_v19 = vcombine.high %v852_v12, %v852_v12 }
  0x28   :  { %v479_v2 = vrot.slane %v472_v62, %v1675_v10  ;;  %v990_v13 = vcombine.high %v930_v1, %v930_v1  ;;  %v997_v20 = vrot.slane %v930_v1, %v1675_v10  ;;  %v1863_v22 = vrot.slane %v845_v11, %v1675_v10 }
  0x29   :  { %v414_v3 = vrot.slane %v400_v63, %v1675_v10  ;;  %v1067_v24 = vrot.slane %v1053_v14, %v1675_v10  ;;  %v956_v25 = vcombine.high %v948_v15, %v948_v15  ;;  %v957_v26 = vcombine.high %v955_v16, %v955_v16 }
  0x2a   :  { %1584 = vmatmul.mubr.f32.gmra.mxu1 %v479_v2  ;;  %v1004_v21 = vrot.slane %v990_v13, %v1675_v10  ;;  %v1109_v27 = vrot.slane %v933_v23, %v1675_v10  ;;  %v1871_v28 = vrot.slane %v852_v12, %v1675_v10  ;;  %v1874_v29 = vrot.slane %v853_v18, %v1675_v10 }
  0x2b   :  { %v415_v4 = vcombine.low %v407_v0, %v414_v3  ;;  %v1060_v30 = vrot.slane %v932_v9, %v1675_v10  ;;  %v1878_v31 = vrot.slane %v854_v19, %v1675_v10  ;;  %v1881_v32 = vrot.slane %v948_v15, %v1675_v10 }
  0x2c   :  { %v1005_v33 = vcombine.high %v997_v20, %v997_v20  ;;  %v1006_v34 = vcombine.high %v1004_v21, %v1004_v21  ;;  %v1885_v35 = vcombine.high %v1863_v22, %v1863_v22  ;;  %v1888_v17 = vrot.slane %v955_v16, %v1675_v10 }
  0x2d   :  { %1578 = vmatmul.mubr.f32.gmra.mxu0 %v415_v4  ;;  %v1069_v36 = vcombine.high %v1067_v24, %v1067_v24  ;;  %v1102_v37 = vcombine.high %v933_v23, %v933_v23  ;;  %v1891_v38 = vrot.slane %v956_v25, %v1675_v10  ;;  %v1894_v39 = vrot.slane %v957_v26, %v1675_v10  ;;  %v1959_v4 = vld.sshfl [vmem:[%s2175_s3 + $0x10] sm:$0x1 pattern:$0x75316420] }
  0x2e   :  { %v1897_v40 = vrot.slane %v997_v20, %v1675_v10  ;;  %v1117_v41 = vcombine.high %v1109_v27, %v1109_v27  ;;  %v1901_v42 = vcombine.high %v1871_v28, %v1871_v28  ;;  %v1905_v43 = vcombine.high %v1874_v29, %v1874_v29 }
  0x2f   :  { %v1908_v44 = vrot.slane %v1004_v21, %v1675_v10  ;;  %v1068_v45 = vcombine.high %v1060_v30, %v1060_v30  ;;  %v1912_v46 = vcombine.high %v1878_v31, %v1878_v31  ;;  %v986_v47 = vcombine.high %v1881_v32, %v1881_v32 }
  0x30   :  { %v1917_v48 = vrot.slane %v1005_v33, %v1675_v10  ;;  %v1920_v49 = vrot.slane %v1006_v34, %v1675_v10  ;;  %v987_v50 = vcombine.high %v1888_v17, %v1888_v17  ;;  %v1925_v51 = vrot.slane %v1069_v36, %v1675_v10 }
  0x31   :  { %v1116_v52 = vrot.slane %v1102_v37, %v1675_v10  ;;  %v1929_v53 = vrot.slane %v1109_v27, %v1675_v10  ;;  %v988_v54 = vcombine.high %v1891_v38, %v1891_v38  ;;  %v989_v55 = vcombine.high %v1894_v39, %v1894_v39 }
  0x32   :  { %v1035_v56 = vcombine.high %v1897_v40, %v1897_v40  ;;  %v1938_v57 = vrot.slane %v1117_v41, %v1675_v10  ;;  %v1036_v59 = vcombine.high %v1908_v44, %v1908_v44  ;;  %v1943_v60 = vrot.slane %v1060_v30, %v1675_v10 }
  0x33   :  { %v1946_v61 = vrot.slane %v1067_v24, %v1675_v10  ;;  %v1949_v62 = vrot.slane %v1068_v45, %v1675_v10  ;;  %v1037_v2 = vcombine.high %v1917_v48, %v1917_v48  ;;  %v1038_v3 = vcombine.high %v1920_v49, %v1920_v49 }
  0x34   :  { %v1101_v6 = vcombine.high %v1925_v51, %v1925_v51  ;;  %v1964_v7 = vrot.slane %v1116_v52, %v1675_v10  ;;  %v1147_v1 = vcombine.high %v1929_v53, %v1929_v53  ;;  %v1118_v8 = vcombine.high %v1116_v52, %v1116_v52 }
  0x35   :  { %v1149_v13 = vcombine.high %v1938_v57, %v1938_v57  ;;  %v1052_v15 = vrot.slane %v1959_v4, %v1675_v10  ;;  %v1098_v16 = vcombine.high %v1943_v60, %v1943_v60  ;;  %v1099_v18 = vcombine.high %v1946_v61, %v1946_v61 }
  0x36   :  { %v1100_v19 = vcombine.high %v1949_v62, %v1949_v62  ;;  %v1987_v34 = vrot.slane %v1118_v8, %v1675_v10 }
  0xe1   :  { %v551_v58 = vpop.f32.mrf.mxu0 }
  0xe2   :  { %v580_v63 = vcombine.high %v551_v58, %v551_v58  ;;  %v587_v0 = vrot.slane %v551_v58, %v1675_v10 }
  0xe3   :  { %v1573_v5 = vpop.f32.mrf.mxu0 }
  0xe4   :  { %v594_v9 = vrot.slane %v580_v63, %v1675_v10  ;;  %v595_v11 = vcombine.high %v587_v0, %v587_v0  ;;  %v603_v12 = vrot.slane %v587_v0, %v1675_v10 }
  0xe5   :  { %v556_v14 = vpop.f32.mrf.mxu0 }
  0xe6   :  { %v596_v20 = vcombine.high %v594_v9, %v594_v9  ;;  %v610_v21 = vrot.slane %v594_v9, %v1675_v10  ;;  %v617_v23 = vrot.slane %v595_v11, %v1675_v10  ;;  %v625_v24 = vcombine.high %v603_v12, %v603_v12  ;;  %v1984_v30 = vpop.f32.mrf.mxu1 }
  0xe7   :  { %v895_v25 = vadd.f32 %v1863_v22, %v603_v12  ;;  %v629_v26 = vcombine.high %v556_v14, %v556_v14  ;;  %v636_v27 = vrot.slane %v556_v14, %v1675_v10  ;;  %v1576_v33 = vpop.f32.mrf.mxu0 }
  0xe8   :  { %v624_v36 = vrot.slane %v596_v20, %v1675_v10  ;;  %v626_v37 = vcombine.high %v610_v21, %v610_v21  ;;  %v627_v41 = vcombine.high %v617_v23, %v617_v23  ;;  %v896_v45 = vadd.f32 %v1874_v29, %v617_v23  ;;  %v1582_v5 = vpop.f32.mrf.mxu1 }
  0xe9   :  { %v897_v52 = vadd.f32 %v1885_v35, %v625_v24  ;;  %v899_v58 = vadd.f32 %v1871_v28, %v610_v21  ;;  %v1199_v63 = vadd.f32 %v1881_v32, %v895_v25  ;;  %v643_v0 = vrot.slane %v629_v26, %v1675_v10 }
  0xea   :  { %v628_v9 = vcombine.high %v624_v36, %v624_v36  ;;  %v898_v11 = vadd.f32 %v1905_v43, %v627_v41  ;;  %v900_v8 = vadd.f32 %v1878_v31, %v624_v36  ;;  %v901_v12 = vadd.f32 %v1901_v42, %v626_v37  ;;  %v2000_v33 = vpop.f32.mrf.mxu1 }
  0xeb   :  { %v1200_v14 = vadd.f32 %v1891_v38, %v896_v45  ;;  %v1201_v20 = vadd.f32 %v986_v47, %v897_v52  ;;  %v1203_v23 = vadd.f32 %v1888_v17, %v899_v58  ;;  %v644_v24 = vcombine.high %v636_v27, %v636_v27 }
  0xec   :  { %v902_v32 = vadd.f32 %v1912_v46, %v628_v9  ;;  %v1202_v21 = vadd.f32 %v988_v54, %v898_v11  ;;  %v1204_v25 = vadd.f32 %v1894_v39, %v900_v8  ;;  %v1205_v26 = vadd.f32 %v987_v50, %v901_v12  ;;  %v1585_v47 = vpop.f32.mrf.mxu1 }
  0xed   :  { %v1267_v36 = vcombine.low %v1199_v63, %v1200_v14  ;;  %v645_v41 = vcombine.high %v643_v0, %v643_v0  ;;  %v652_v37 = vrot.slane %v636_v27, %v1675_v10  ;;  %v659_v38 = vrot.slane %v643_v0, %v1675_v10  ;;  %v2013_v5 = vpop.f32.mrf.mxu0 }
  0xee   :  { %v1206_v45 = vadd.f32 %v989_v55, %v902_v32  ;;  %v1268_v52 = vcombine.low %v1201_v20, %v1202_v21  ;;  %v1269_v58 = vcombine.low %v1203_v23, %v1204_v25  ;;  %v666_v54 = vrot.slane %v644_v24, %v1675_v10 }
  0xef   :  { %v1277_v17 = vrot.slane %v1267_v36, %v1675_v10  ;;  %v673_v50 = vrot.slane %v645_v41, %v1675_v10  ;;  %v674_v63 = vcombine.high %v652_v37, %v652_v37  ;;  %v675_v27 = vcombine.high %v659_v38, %v659_v38  ;;  %v1579_v55 = vpop.f32.mrf.mxu0 }
  0xf0   :  { %v1270_v9 = vcombine.low %v1205_v26, %v1206_v45  ;;  %v1284_v0 = vrot.slane %v1268_v52, %v1675_v10  ;;  %v1291_v11 = vrot.slane %v1269_v58, %v1675_v10  ;;  %v676_v39 = vcombine.high %v666_v54, %v666_v54 }
  0xf1   :  { %v677_v8 = vcombine.high %v673_v50, %v673_v50  ;;  %v903_v12 = vadd.f32 %v1863_v22, %v652_v37  ;;  %v904_v14 = vadd.f32 %v1874_v29, %v666_v54  ;;  %v905_v20 = vadd.f32 %v1885_v35, %v674_v63 }
  0xf2   :  { %v1298_v23 = vrot.slane %v1270_v9, %v1675_v10  ;;  %v1299_v24 = vcombine.low %v1277_v17, %v1284_v0  ;;  %v906_v32 = vadd.f32 %v1905_v43, %v676_v39  ;;  %v907_v21 = vadd.f32 %v1871_v28, %v659_v38 }
  0xf3   :  { %v908_v25 = vadd.f32 %v1878_v31, %v673_v50  ;;  %v909_v26 = vadd.f32 %v1901_v42, %v675_v27  ;;  %v910_v36 = vadd.f32 %v1912_v46, %v677_v8  ;;  %v1207_v41 = vadd.f32 %v1897_v40, %v903_v12 }
  0xf4   :  { %v1300_v37 = vcombine.low %v1291_v11, %v1298_v23  ;;  %v1307_v47 = vrot.slane %v1299_v24, %v1675_v10  ;;  %v1208_v45 = vadd.f32 %v1917_v48, %v904_v14  ;;  %v1209_v52 = vadd.f32 %v1035_v56, %v905_v20 }
  0xf5   :  { %v1210_v38 = vadd.f32 %v1037_v2, %v906_v32  ;;  %v1211_v58 = vadd.f32 %v1908_v44, %v907_v21  ;;  %v1212_v54 = vadd.f32 %v1920_v49, %v908_v25  ;;  %v1213_v17 = vadd.f32 %v1036_v59, %v909_v26 }
  0xf6   :  { %v1314_v50 = vrot.slane %v1300_v37, %v1675_v10  ;;  %v1214_v63 = vadd.f32 %v1038_v3, %v910_v36  ;;  %v1316_v40 = vcombine.low %v1207_v41, %v1208_v45  ;;  %v727_v56 = vcombine.high %v1984_v30, %v1984_v30 }
  0xf7   :  { %v1317_v48 = vcombine.low %v1209_v52, %v1210_v38  ;;  %v1318_v2 = vcombine.low %v1211_v58, %v1212_v54  ;;  %v734_v27 = vrot.slane %v1984_v30, %v1675_v10  ;;  %v1148_v9 = vcombine.high %v1964_v7, %v1964_v7 }
  0xf8   :  { %v1315_v44 = vcombine.low %v1307_v47, %v1314_v50  ;;  %v1319_v59 = vcombine.low %v1213_v17, %v1214_v63  ;;  %v741_v0 = vrot.slane %v727_v56, %v1675_v10  ;;  %v678_v49 = vcombine.high %v2013_v5, %v2013_v5 }
  0xf9   :  { %v1326_v3 = vrot.slane %v1316_v40, %v1675_v10  ;;  %v1333_v11 = vrot.slane %v1317_v48, %v1675_v10  ;;  %v742_v39 = vcombine.high %v734_v27, %v734_v27  ;;  %v750_v55 = vrot.slane %v734_v27, %v1675_v10 }
  0xfa   :  { %1498 = vst.msk [vmem:[%s2176_s4] sm:$0xff] %vm1497_vm1, %v1315_v44  ;;  %v1340_v30 = vrot.slane %v1318_v2, %v1675_v10  ;;  %v1347_v8 = vrot.slane %v1319_v59, %v1675_v10  ;;  %v743_v12 = vcombine.high %v741_v0, %v741_v0  ;;  %v757_v14 = vrot.slane %v741_v0, %v1675_v10 }
  0xfb   :  { %v1348_v20 = vcombine.low %v1326_v3, %v1333_v11  ;;  %v764_v23 = vrot.slane %v742_v39, %v1675_v10  ;;  %v772_v24 = vcombine.high %v750_v55, %v750_v55  ;;  %v685_v32 = vrot.slane %v2013_v5, %v1675_v10 }
  0xfc   :  { %v1349_v21 = vcombine.low %v1340_v30, %v1347_v8  ;;  %v771_v25 = vrot.slane %v743_v12, %v1675_v10  ;;  %v773_v26 = vcombine.high %v757_v14, %v757_v14  ;;  %v919_v36 = vadd.f32 %v1912_v46, %v750_v55 }
  0xfd   :  { %v774_v41 = vcombine.high %v764_v23, %v764_v23  ;;  %v920_v37 = vadd.f32 %v1863_v22, %v764_v23  ;;  %v921_v47 = vadd.f32 %v1874_v29, %v772_v24  ;;  %v923_v45 = vadd.f32 %v1905_v43, %v757_v14 }
  0xfe   :  { %v1356_v5 = vrot.slane %v1348_v20, %v1675_v10  ;;  %v1363_v38 = vrot.slane %v1349_v21, %v1675_v10  ;;  %v775_v58 = vcombine.high %v771_v25, %v771_v25  ;;  %v924_v54 = vadd.f32 %v1871_v28, %v771_v25 }
  0xff   :  { %v922_v17 = vadd.f32 %v1885_v35, %v774_v41  ;;  %v925_v50 = vadd.f32 %v1878_v31, %v773_v26  ;;  %v1224_v63 = vadd.f32 %v1929_v53, %v920_v37  ;;  %v1225_v40 = vadd.f32 %v1938_v57, %v921_v47 }
 0x100   :  { %v1364_v56 = vcombine.low %v1356_v5, %v1363_v38  ;;  %v926_v48 = vadd.f32 %v1901_v42, %v775_v58  ;;  %v1150_v2 = vcombine.high %v1987_v34, %v1987_v34  ;;  %v1227_v59 = vadd.f32 %v1149_v13, %v923_v45 }
 0x101   :  { %v2076_v52 = vld.sshfl [vmem:[%s2175_s3 + $0x28] sm:$0x1 pattern:$0x75316420]  ;;  %v1226_v44 = vadd.f32 %v1147_v1, %v922_v17  ;;  %v692_v0 = vrot.slane %v678_v49, %v1675_v10  ;;  %v693_v3 = vcombine.high %v685_v32, %v685_v32  ;;  %v1223_v11 = vadd.f32 %v1101_v6, %v919_v36 }
 0x102   :  { %v1164_v27 = vrot.slane %v2076_v52, %v1675_v10  ;;  %1499 = vst.msk [vmem:[%s2176_s4 + $0x8] sm:$0xff] %vm1497_vm1, %v1364_v56  ;;  %v1228_v39 = vadd.f32 %v1964_v7, %v924_v54  ;;  %v1428_v53 = vcombine.low %v1224_v63, %v1225_v40  ;;  %v701_v1 = vrot.slane %v685_v32, %v1675_v10 }
 0x103   :  { %v694_v55 = vcombine.high %v692_v0, %v692_v0  ;;  %v708_v57 = vrot.slane %v692_v0, %v1675_v10  ;;  %v782_v13 = vrot.slane %v2000_v33, %v1675_v10  ;;  %v1229_v49 = vadd.f32 %v1987_v34, %v925_v50 }
 0x104   :  { %v715_v30 = vrot.slane %v693_v3, %v1675_v10  ;;  %v723_v8 = vcombine.high %v701_v1, %v701_v1  ;;  %v911_v12 = vadd.f32 %v1863_v22, %v701_v1  ;;  %v1230_v6 = vadd.f32 %v1148_v9, %v926_v48 }
 0x105   :  { %v1429_v14 = vcombine.low %v1226_v44, %v1227_v59  ;;  %v722_v7 = vrot.slane %v694_v55, %v1675_v10  ;;  %v724_v20 = vcombine.high %v708_v57, %v708_v57  ;;  %v915_v23 = vadd.f32 %v1905_v43, %v708_v57 }
 0x106   :  { %v725_v24 = vcombine.high %v715_v30, %v715_v30  ;;  %v912_v32 = vadd.f32 %v1863_v22, %v715_v30  ;;  %v913_v21 = vadd.f32 %v1874_v29, %v723_v8  ;;  %v1215_v34 = vadd.f32 %v1052_v15, %v911_v12 }
 0x107   :  { %v726_v33 = vcombine.high %v722_v7, %v722_v7  ;;  %v916_v25 = vadd.f32 %v1871_v28, %v722_v7  ;;  %v917_v9 = vadd.f32 %v1878_v31, %v724_v20  ;;  %v783_v26 = vcombine.high %v782_v13, %v782_v13 }
 0x108   :  { %v1438_v36 = vrot.slane %v1428_v53, %v1675_v10  ;;  %v914_v41 = vadd.f32 %v1885_v35, %v725_v24  ;;  %v1216_v43 = vadd.f32 %v1943_v60, %v912_v32  ;;  %v1217_v37 = vadd.f32 %v1949_v62, %v913_v21 }
 0x109   :  { %v918_v29 = vadd.f32 %v1901_v42, %v726_v33  ;;  %v1219_v4 = vadd.f32 %v1100_v19, %v915_v23  ;;  %v1220_v15 = vadd.f32 %v1946_v61, %v916_v25  ;;  %v1221_v28 = vadd.f32 %v1925_v51, %v917_v9 }
 0x10a   :  { %v1218_v31 = vadd.f32 %v1098_v16, %v914_v41  ;;  %v1371_v35 = vrot.slane %v1215_v34, %v1675_v10  ;;  %v1379_v47 = vcombine.low %v1216_v43, %v1217_v37  ;;  %v790_v45 = vrot.slane %v782_v13, %v1675_v10 }
 0x10b   :  { %v1445_v52 = vrot.slane %v1429_v14, %v1675_v10  ;;  %v1222_v42 = vadd.f32 %v1099_v18, %v918_v29  ;;  %v1381_v62 = vcombine.low %v1220_v15, %v1221_v28  ;;  %v797_v19 = vrot.slane %v783_v26, %v1675_v10 }
 0x10c   :  { %v1378_v51 = vrot.slane %v1371_v35, %v1675_v10  ;;  %v1380_v5 = vcombine.low %v1218_v31, %v1219_v4  ;;  %v927_v60 = vadd.f32 %v1912_v46, %v790_v45  ;;  %v1430_v16 = vcombine.low %v1228_v39, %v1229_v49 }
 0x10d   :  { %v1382_v38 = vcombine.low %v1222_v42, %v1223_v11  ;;  %v928_v58 = vadd.f32 %v1863_v22, %v797_v19  ;;  %v1389_v54 = vrot.slane %v1379_v47, %v1675_v10  ;;  %v1403_v18 = vrot.slane %v1381_v62, %v1675_v10 }
 0x10e   :  { %v1396_v17 = vrot.slane %v1380_v5, %v1675_v10  ;;  %1501 = vst.msk [vmem:[%s2176_s4 + $0x10] sm:$0x1] %vm1500_vm2, %v1378_v51  ;;  %v1231_v61 = vadd.f32 %v1150_v2, %v927_v60  ;;  %v1460_v46 = vcombine.low %v1438_v36, %v1445_v52  ;;  %v1452_v22 = vrot.slane %v1430_v16, %v1675_v10 }
 0x10f   :  { %v1410_v50 = vrot.slane %v1382_v38, %v1675_v10  ;;  %v1232_v63 = vadd.f32 %v1164_v27, %v928_v58 }
 0x110   :  { %v1411_v40 = vcombine.low %v1389_v54, %v1396_v17  ;;  %v1431_v56 = vcombine.low %v1230_v6, %v1231_v61  ;;  %v1468_v11 = vrot.slane %v1460_v46, %v1675_v10 }
 0x111   :  { %v1412_v48 = vcombine.low %v1403_v18, %v1410_v50  ;;  %v1483_v44 = vrot.slane %v1232_v63, %v1675_v10 }
 0x112   :  { %v1459_v59 = vrot.slane %v1431_v56, %v1675_v10  ;;  %v1419_v0 = vrot.slane %v1411_v40, %v1675_v10 }
 0x113   :  { %v1426_v3 = vrot.slane %v1412_v48, %v1675_v10  ;;  %v1490_v2 = vrot.slane %v1483_v44, %v1675_v10 }
 0x114   :  { %v1461_v39 = vcombine.low %v1452_v22, %v1459_v59 }
 0x115   :  { %v1427_v27 = vcombine.low %v1419_v0, %v1426_v3  ;;  %1504 = vst.msk [vmem:[%s2176_s4 + $0x28] sm:$0x1] %vm1500_vm2, %v1490_v2 }
 0x116   :  { %v1475_v53 = vrot.slane %v1461_v39, %v1675_v10 }
 0x117   :  { %1502 = vst.msk [vmem:[%s2176_s4 + $0x18] sm:$0xff] %vm1497_vm1, %v1427_v27 }
 0x118   :  { %v1476_v1 = vcombine.low %v1468_v11, %v1475_v53 }
 0x11a   :  { %1503 = vst.msk [vmem:[%s2176_s4 + $0x20] sm:$0xff] %vm1497_vm1, %v1476_v1 }

// kernel: _lambda_.39
= control target key start
LH: loop header
LB: loop body
LE: loop exit
PB: predicated region body
PF: predicated region fallthrough
CT: control target
= control target key end

     0   :  { %v166_v1 = vmov 0.0   ;;  %vm167_vm0 = vmmov 0   ;;  %s204_s0 = inlined_call_operand.vmem [shape: f32[2,32], index: 0, kind: input, shape index: {}]   ;;  %s205_s1 = inlined_call_operand.vmem [shape: f32[32,32], index: 1, kind: input, shape index: {}]   ;;  %s206_s2 = inlined_call_operand.hbm [shape: f32[2,32], index: 2, kind: output, shape index: {}]  }
   0x1   :  { %v16_v0 = vld [vmem:[%s205_s1 + $0x18] sm:$0xff]  ;;  %126 = vmatprep.subr.mxu0 %v166_v1  ;;  %v15_v2 = vld [vmem:[%s205_s1 + $0x10] sm:$0xff]  ;;  %134 = vmatprep.mubr.msk.f32.mxu0 %vm167_vm0, %v166_v1 }
   0x2   :  { %7 = vsyncpa [#allocation3], 0  ;;  %127 = vmatpush3.msra.mxu0 %v16_v0  ;;  %v14_v3 = vld [vmem:[%s205_s1 + $0x8] sm:$0xff]  ;;  %v13_v4 = vld [vmem:[%s205_s1] sm:$0xff]  ;;  %vm17_vm1 = vcmask 261120   ;;  %vm92_vm2 = vcmask 254976  }
   0x3   :  { %128 = vmatprep.subr.mxu0 %v166_v1  ;;  %v12_v5 = vld [vmem:[%s204_s0] sm:$0x3]  ;;  %s168_s0 = smov [#allocation2]  }
   0x4   :  { %129 = vmatpush3.msra.mxu0 %v15_v2  ;;  %s112_s1 = sshll.u32 %s168_s0, 4  ;;  %s113_s1 = int_to_ptr.vmem [resolvable:$true] %s112_s1 }
   0x5   :  { %130 = vmatprep.subr.mxu0 %v166_v1  ;;  %s144_s19 = scalar_lea.vmem %s113_s1, 32  ;;  %p149_p1 = scmp.lt.s32.totalorder %s113_s1, %s113_s1 }
   0x6   :  { %131 = vmatpush3.msra.mxu0 %v14_v3  ;;  %p145_p0 = scmp.ne.s32.totalorder %s113_s1, %s144_s19  ;;  %p150_p2 = scmp.lt.s32.totalorder %s144_s19, %s144_s19 }
   0x7   :  { %132 = vmatprep.subr.mxu0 %v166_v1 }
   0x8   :  { %133 = vmatpush3.msra.mxu0 %v13_v4  ;;  %p151_p3 = por %p150_p2, %p149_p1 }
   0x9   :  { %135 = vmatmul.mubr.msk.f32.vlgmr.msra.gmra.mxu0 %vm17_vm1, %v12_v5 }
   0xa   :  { %p152_p4 = pnand %p151_p3, %p145_p0 }
  0xc9   :  { %v87_v6 = vpop.f32.mrf.mxu0 }
  0xca   :  { %v91_v7 = vmul.f32 %v87_v6, %v87_v6 }
  0xcb   :  { %v136_v8 = vpop.f32.mrf.mxu0 }
  0xcc   :  { %v93_v9 = vsel %vm92_vm2, %v91_v7, 0.0 }
  0xcd   :  { %94 = vadd.xlane.f32.xlu0 %v93_v9 }
 0x156   :  { %v95_v10 = vpop.xlane.xlu0 %94 }
 0x157   :  { %140 = vrsqrt.f32 %v95_v10  ;;  %vm98_vm3 = vcmp.eq.f32.partialorder %v95_v10, inf  ;;  %v101_v13 = vand.u32 2147483648, %v95_v10  ;;  %vm100_vm4 = vcmp.eq.f32.partialorder %v95_v10, 0.0 }
 0x164   :  { %v141_v11 = vpop.eup %140 }
 0x165   :  { %v97_v12 = vmul.f32 %v141_v11, %v95_v10 }
 0x167   :  { %v99_v14 = vsel %vm98_vm3, %v95_v10, %v97_v12 }
 0x168   :  { %v102_v15 = vsel %vm100_vm4, %v101_v13, %v99_v14 }
 0x169   :  { %142 = vrcp.f32 %v102_v15 }
 0x176   :  { %v143_v16 = vpop.eup %142 }
 0x177   :  { %v104_v17 = vmul.f32 %v143_v16, %v87_v6 }
 0x179   :  { %105 = vst.msk [vmem:[#allocation2] sm:$0x3] %vm92_vm2, %v104_v17 }
 0x17a   :  { %155 = shalt.err (!%p152_p4)
}
 0x17b   :  { %115 = dma.vmem_to_hbm [thread:$0]  %s113_s1, 32, %s206_s2, [#allocation3]  }
 0x17c   :  { %164 = dma.done.wait [#allocation3], 32  }
 0x17d   :  { %165 = vsyncadd [#allocation3], 4294967264 }
 0x17e   :  { %119 = vsyncpa [#allocation3], 1 }

</bundles_post_ra>
